<compile_context>
chip_gen: v7x
topology: tpu7x:2x2x1
jax: 0.10.0
libtpu: 0.0.40
codegen_flags: <defaults>
</compile_context>

<pallas_src>
import jax
import jax.numpy as jnp
import numpy as np
from jax import lax
from jax.experimental import pallas as pl
from jax.experimental.pallas import tpu as pltpu

KSIZE = 3


def residual_block_kernel(x_ref, w1_ref, b1_ref, w2_ref, b2_ref, out_ref, pad_ref):
    """out = relu(conv2(relu(conv1(x))) + x), fully fused in VMEM, NCHW layout.

    x_ref:   (NB, C, H, W)      f32
    w*_ref:  (Cout, 9*Cin)      f32  (torch (Cout,Cin,3,3) reshaped; k = ci*9 + kh*3 + kw)
    b*_ref:  (Cout, 1)          f32
    out_ref: (NB, Cout, H*W)    f32  (lane-dense minor dim)
    pad_ref: (NB, C, H+2, W+2)  f32  shared zero-halo scratch for both convs
    """
    NB, C, H, W = x_ref.shape
    HW = H * W

    # Zero only the 1-pixel halo ring; the interior is fully overwritten every step.
    zrow = jnp.zeros((NB, C, 1, W + 2), dtype=pad_ref.dtype)
    zcol = jnp.zeros((NB, C, H + 2, 1), dtype=pad_ref.dtype)
    pad_ref[:, :, 0:1, :] = zrow
    pad_ref[:, :, H + 1:H + 2, :] = zrow
    pad_ref[:, :, :, 0:1] = zcol
    pad_ref[:, :, :, W + 1:W + 2] = zcol

    def conv3x3(n, w_ref, b_ref):
        # im2col in CHW form: slab[(ci, kh, kw), (h, w)] = pad[n, ci, h+kh, w+kw].
        # Row ordering k = ci*9 + kh*3 + kw matches the wrapper's weight reshape.
        # (For large C this concat would be replaced by 9 accumulating (Cout,C)@(C,HW)
        #  matmuls to avoid the 9x slab; at C=4 it is negligible.)
        patches = [pad_ref[n, :, kh:kh + H, kw:kw + W]
                   for kh in range(KSIZE) for kw in range(KSIZE)]
        slab = jnp.stack(patches, axis=1).reshape(C * KSIZE * KSIZE, HW)
        y = jnp.dot(w_ref[...], slab, preferred_element_type=jnp.float32)
        return y + b_ref[...]                                    # (Cout, H*W)

    for n in range(NB):                       # NB is small & static -> unrolled
        x_img = x_ref[n]                                         # (C, H, W) f32, resident
        pad_ref[n, :, 1:H + 1, 1:W + 1] = x_img                  # conv1 input
        y1 = jnp.maximum(conv3x3(n, w1_ref, b1_ref), 0.0)        # (C, H*W)
        pad_ref[n, :, 1:H + 1, 1:W + 1] = y1.reshape(C, H, W)    # conv2 input (scratch reuse)
        y2 = conv3x3(n, w2_ref, b2_ref)
        out = jnp.maximum(y2 + x_img.reshape(C, HW), 0.0)        # residual + ReLU, f32
        out_ref[n] = out.astype(out_ref.dtype)                   # lane-dense store


def residual_block_forward(x_nchw, w1, b1, w2, b2):
    """ResidualBlock forward. x: (N,C,H,W) f32; w*: (Cout,Cin,3,3); b*: (Cout,)."""
    N, C, H, W = x_nchw.shape
    HW = H * W
    K2C = KSIZE * KSIZE * C

    # Weight packing: a tiny one-time reshape (no transpose needed for CHW im2col).
    w1m = w1.reshape(C, K2C)
    w2m = w2.reshape(C, K2C)
    b1m = b1.reshape(C, 1)
    b2m = b2.reshape(C, 1)

    # <=2 balanced grid steps: one per TensorCore on v7x, minimal step overhead on
    # single-core v5e/v6e. Odd batches collapse to a single step.
    if N >= 2 and N % 2 == 0:
        steps, NB = 2, N // 2
    else:
        steps, NB = 1, N

    # Whole-image blocks: fine at these sizes. Larger images would need H-tiling with a
    # 2-row halo; size that against v7x's 64 MiB VMEM and set vmem_limit_bytes explicitly.
    out = pl.pallas_call(
        residual_block_kernel,
        out_shape=jax.ShapeDtypeStruct((N, C, HW), x_nchw.dtype),
        grid=(steps,),
        in_specs=[
            pl.BlockSpec((NB, C, H, W), lambda s: (s, 0, 0, 0)),
            pl.BlockSpec((C, K2C), lambda s: (0, 0)),
            pl.BlockSpec((C, 1), lambda s: (0, 0)),
            pl.BlockSpec((C, K2C), lambda s: (0, 0)),
            pl.BlockSpec((C, 1), lambda s: (0, 0)),
        ],
        out_specs=pl.BlockSpec((NB, C, HW), lambda s: (s, 0, 0)),
        scratch_shapes=[pltpu.VMEM((NB, C, H + 2, W + 2), jnp.float32)],
        compiler_params=pltpu.CompilerParams(
            dimension_semantics=("parallel",)),
    )(x_nchw, w1m, b1m, w2m, b2m)

    # Free relayout: (N, C, H*W) and (N, C, H, W) share the same HBM layout.
    return out.reshape(N, C, H, W)


# ---------------- pure-JAX reference (for correctness check) ----------------
def _reference(x_nchw, w1, b1, w2, b2):
    def conv(x, w_oihw, b):
        y = lax.conv_general_dilated(
            x, w_oihw, window_strides=(1, 1), padding="SAME",
            dimension_numbers=("NCHW", "OIHW", "NCHW"))
        return y + b[None, :, None, None]

    y1 = jnp.maximum(conv(x_nchw, w1, b1), 0.0)
    return jnp.maximum(conv(y1, w2, b2) + x_nchw, 0.0)


if __name__ == "__main__":
    key = jax.random.PRNGKey(0)
    kx, k1, k2, k3, k4 = jax.random.split(key, 5)
    N, C, H, W = 2, 4, 16, 16

    x = jax.random.normal(kx, (N, C, H, W), dtype=jnp.float32)

    # Deterministic synthetic params in PyTorch Conv2d layout (Cout, Cin, kh, kw).
    fan_in = C * KSIZE * KSIZE
    bound = 1.0 / np.sqrt(fan_in)
    w1 = jax.random.uniform(k1, (C, C, KSIZE, KSIZE), jnp.float32, -bound, bound)
    b1 = jax.random.uniform(k2, (C,), jnp.float32, -bound, bound)
    w2 = jax.random.uniform(k3, (C, C, KSIZE, KSIZE), jnp.float32, -bound, bound)
    b2 = jax.random.uniform(k4, (C,), jnp.float32, -bound, bound)

    fwd = jax.jit(residual_block_forward)
    out = jax.block_until_ready(fwd(x, w1, b1, w2, b2))
    assert out.shape == (N, C, H, W)

    ref = jax.block_until_ready(_reference(x, w1, b1, w2, b2))
    # All operands are f32; tolerance covers whatever default contraction precision the
    # MXU uses for f32 matmuls across TPU generations (structural bugs would be O(1)).
    np.testing.assert_allclose(np.asarray(out), np.asarray(ref), rtol=2e-2, atol=2e-2)

    print("KERNEL_OK")
</pallas_src>

<mosaic_0001>
module attributes {stable_mosaic.version = 11 : i64} {
  func.func @residual_block_kernel(%arg0: i32, %arg1: memref<1x4x16x16xf32, #tpu.memory_space<vmem>>, %arg2: memref<4x36xf32, #tpu.memory_space<vmem>>, %arg3: memref<4x1xf32, #tpu.memory_space<vmem>>, %arg4: memref<4x36xf32, #tpu.memory_space<vmem>>, %arg5: memref<4x1xf32, #tpu.memory_space<vmem>>, %arg6: memref<1x4x256xf32, #tpu.memory_space<vmem>>, %arg7: memref<1x4x18x18xf32, #tpu.memory_space<vmem>>) attributes {dimension_semantics = [#tpu.dimension_semantics<parallel>], iteration_bounds = array<i64: 2>, scalar_prefetch = 0 : i64, scratch_operands = 1 : i64, tpu.core_type = #tpu.core_type<tc>, window_params = [{transform_indices = @transform_0, window_bounds = array<i64: 1, 4, 16, 16>}, {pipeline_mode = #tpu.pipeline_mode<synchronous>, transform_indices = @transform_1, window_bounds = array<i64: 4, 36>}, {pipeline_mode = #tpu.pipeline_mode<synchronous>, transform_indices = @transform_2, window_bounds = array<i64: 4, 1>}, {pipeline_mode = #tpu.pipeline_mode<synchronous>, transform_indices = @transform_3, window_bounds = array<i64: 4, 36>}, {pipeline_mode = #tpu.pipeline_mode<synchronous>, transform_indices = @transform_4, window_bounds = array<i64: 4, 1>}, {transform_indices = @transform_5, window_bounds = array<i64: 1, 4, 256>}]} {
    %cst = arith.constant 0.000000e+00 : f32
    %0 = vector.broadcast %cst : f32 to vector<1x4x1x18xf32>
    %cst_0 = arith.constant 0.000000e+00 : f32
    %1 = vector.broadcast %cst_0 : f32 to vector<1x4x18x1xf32>
    %c0 = arith.constant 0 : index
    %c0_1 = arith.constant 0 : index
    %c0_2 = arith.constant 0 : index
    %c0_3 = arith.constant 0 : index
    %2 = vector.load %arg7[%c0, %c0_1, %c0_2, %c0_3] : memref<1x4x18x18xf32, #tpu.memory_space<vmem>>, vector<1x4x1x18xf32>
    tpu.vector_store %arg7[%c0, %c0_1, %c0_2, %c0_3], %0 {strides = array<i32>} : memref<1x4x18x18xf32, #tpu.memory_space<vmem>>, vector<1x4x1x18xf32>,
    %c0_4 = arith.constant 0 : index
    %c0_5 = arith.constant 0 : index
    %c17 = arith.constant 17 : index
    %c0_6 = arith.constant 0 : index
    %3 = vector.load %arg7[%c0_4, %c0_5, %c17, %c0_6] : memref<1x4x18x18xf32, #tpu.memory_space<vmem>>, vector<1x4x1x18xf32>
    tpu.vector_store %arg7[%c0_4, %c0_5, %c17, %c0_6], %0 {strides = array<i32>} : memref<1x4x18x18xf32, #tpu.memory_space<vmem>>, vector<1x4x1x18xf32>,
    %c0_7 = arith.constant 0 : index
    %c0_8 = arith.constant 0 : index
    %c0_9 = arith.constant 0 : index
    %c0_10 = arith.constant 0 : index
    %4 = vector.load %arg7[%c0_7, %c0_8, %c0_9, %c0_10] : memref<1x4x18x18xf32, #tpu.memory_space<vmem>>, vector<1x4x18x1xf32>
    tpu.vector_store %arg7[%c0_7, %c0_8, %c0_9, %c0_10], %1 {strides = array<i32>} : memref<1x4x18x18xf32, #tpu.memory_space<vmem>>, vector<1x4x18x1xf32>,
    %c0_11 = arith.constant 0 : index
    %c0_12 = arith.constant 0 : index
    %c0_13 = arith.constant 0 : index
    %c17_14 = arith.constant 17 : index
    %5 = vector.load %arg7[%c0_11, %c0_12, %c0_13, %c17_14] : memref<1x4x18x18xf32, #tpu.memory_space<vmem>>, vector<1x4x18x1xf32>
    tpu.vector_store %arg7[%c0_11, %c0_12, %c0_13, %c17_14], %1 {strides = array<i32>} : memref<1x4x18x18xf32, #tpu.memory_space<vmem>>, vector<1x4x18x1xf32>,
    %c0_15 = arith.constant 0 : index
    %c0_16 = arith.constant 0 : index
    %c0_17 = arith.constant 0 : index
    %c0_18 = arith.constant 0 : index
    %6 = vector.load %arg1[%c0_15, %c0_16, %c0_17, %c0_18] : memref<1x4x16x16xf32, #tpu.memory_space<vmem>>, vector<1x4x16x16xf32>
    %7 = vector.shape_cast %6 : vector<1x4x16x16xf32> to vector<4x16x16xf32>
    %c0_19 = arith.constant 0 : index
    %c0_20 = arith.constant 0 : index
    %c1 = arith.constant 1 : index
    %c1_21 = arith.constant 1 : index
    %8 = vector.load %arg7[%c0_19, %c0_20, %c1, %c1_21] : memref<1x4x18x18xf32, #tpu.memory_space<vmem>>, vector<1x4x16x16xf32>
    %9 = vector.shape_cast %8 : vector<1x4x16x16xf32> to vector<4x16x16xf32>
    %10 = vector.shape_cast %7 : vector<4x16x16xf32> to vector<1x4x16x16xf32>
    tpu.vector_store %arg7[%c0_19, %c0_20, %c1, %c1_21], %10 {strides = array<i32>} : memref<1x4x18x18xf32, #tpu.memory_space<vmem>>, vector<1x4x16x16xf32>,
    %c0_22 = arith.constant 0 : index
    %c0_23 = arith.constant 0 : index
    %c0_24 = arith.constant 0 : index
    %c0_25 = arith.constant 0 : index
    %11 = vector.load %arg7[%c0_22, %c0_23, %c0_24, %c0_25] : memref<1x4x18x18xf32, #tpu.memory_space<vmem>>, vector<1x4x16x16xf32>
    %12 = vector.shape_cast %11 : vector<1x4x16x16xf32> to vector<4x16x16xf32>
    %c0_26 = arith.constant 0 : index
    %c0_27 = arith.constant 0 : index
    %c0_28 = arith.constant 0 : index
    %c1_29 = arith.constant 1 : index
    %13 = vector.load %arg7[%c0_26, %c0_27, %c0_28, %c1_29] : memref<1x4x18x18xf32, #tpu.memory_space<vmem>>, vector<1x4x16x16xf32>
    %14 = vector.shape_cast %13 : vector<1x4x16x16xf32> to vector<4x16x16xf32>
    %c0_30 = arith.constant 0 : index
    %c0_31 = arith.constant 0 : index
    %c0_32 = arith.constant 0 : index
    %c2 = arith.constant 2 : index
    %15 = vector.load %arg7[%c0_30, %c0_31, %c0_32, %c2] : memref<1x4x18x18xf32, #tpu.memory_space<vmem>>, vector<1x4x16x16xf32>
    %16 = vector.shape_cast %15 : vector<1x4x16x16xf32> to vector<4x16x16xf32>
    %c0_33 = arith.constant 0 : index
    %c0_34 = arith.constant 0 : index
    %c1_35 = arith.constant 1 : index
    %c0_36 = arith.constant 0 : index
    %17 = vector.load %arg7[%c0_33, %c0_34, %c1_35, %c0_36] : memref<1x4x18x18xf32, #tpu.memory_space<vmem>>, vector<1x4x16x16xf32>
    %18 = vector.shape_cast %17 : vector<1x4x16x16xf32> to vector<4x16x16xf32>
    %c0_37 = arith.constant 0 : index
    %c0_38 = arith.constant 0 : index
    %c1_39 = arith.constant 1 : index
    %c1_40 = arith.constant 1 : index
    %19 = vector.load %arg7[%c0_37, %c0_38, %c1_39, %c1_40] : memref<1x4x18x18xf32, #tpu.memory_space<vmem>>, vector<1x4x16x16xf32>
    %20 = vector.shape_cast %19 : vector<1x4x16x16xf32> to vector<4x16x16xf32>
    %c0_41 = arith.constant 0 : index
    %c0_42 = arith.constant 0 : index
    %c1_43 = arith.constant 1 : index
    %c2_44 = arith.constant 2 : index
    %21 = vector.load %arg7[%c0_41, %c0_42, %c1_43, %c2_44] : memref<1x4x18x18xf32, #tpu.memory_space<vmem>>, vector<1x4x16x16xf32>
    %22 = vector.shape_cast %21 : vector<1x4x16x16xf32> to vector<4x16x16xf32>
    %c0_45 = arith.constant 0 : index
    %c0_46 = arith.constant 0 : index
    %c2_47 = arith.constant 2 : index
    %c0_48 = arith.constant 0 : index
    %23 = vector.load %arg7[%c0_45, %c0_46, %c2_47, %c0_48] : memref<1x4x18x18xf32, #tpu.memory_space<vmem>>, vector<1x4x16x16xf32>
    %24 = vector.shape_cast %23 : vector<1x4x16x16xf32> to vector<4x16x16xf32>
    %c0_49 = arith.constant 0 : index
    %c0_50 = arith.constant 0 : index
    %c2_51 = arith.constant 2 : index
    %c1_52 = arith.constant 1 : index
    %25 = vector.load %arg7[%c0_49, %c0_50, %c2_51, %c1_52] : memref<1x4x18x18xf32, #tpu.memory_space<vmem>>, vector<1x4x16x16xf32>
    %26 = vector.shape_cast %25 : vector<1x4x16x16xf32> to vector<4x16x16xf32>
    %c0_53 = arith.constant 0 : index
    %c0_54 = arith.constant 0 : index
    %c2_55 = arith.constant 2 : index
    %c2_56 = arith.constant 2 : index
    %27 = vector.load %arg7[%c0_53, %c0_54, %c2_55, %c2_56] : memref<1x4x18x18xf32, #tpu.memory_space<vmem>>, vector<1x4x16x16xf32>
    %28 = vector.shape_cast %27 : vector<1x4x16x16xf32> to vector<4x16x16xf32>
    %29 = vector.shape_cast %12 : vector<4x16x16xf32> to vector<4x1x16x16xf32>
    %30 = vector.shape_cast %14 : vector<4x16x16xf32> to vector<4x1x16x16xf32>
    %31 = vector.shape_cast %16 : vector<4x16x16xf32> to vector<4x1x16x16xf32>
    %32 = vector.shape_cast %18 : vector<4x16x16xf32> to vector<4x1x16x16xf32>
    %33 = vector.shape_cast %20 : vector<4x16x16xf32> to vector<4x1x16x16xf32>
    %34 = vector.shape_cast %22 : vector<4x16x16xf32> to vector<4x1x16x16xf32>
    %35 = vector.shape_cast %24 : vector<4x16x16xf32> to vector<4x1x16x16xf32>
    %36 = vector.shape_cast %26 : vector<4x16x16xf32> to vector<4x1x16x16xf32>
    %37 = vector.shape_cast %28 : vector<4x16x16xf32> to vector<4x1x16x16xf32>
    %38 = tpu.concatenate %29, %30, %31, %32, %33, %34, %35, %36, %37 in 1 : vector<4x1x16x16xf32>, vector<4x1x16x16xf32>, vector<4x1x16x16xf32>, vector<4x1x16x16xf32>, vector<4x1x16x16xf32>, vector<4x1x16x16xf32>, vector<4x1x16x16xf32>, vector<4x1x16x16xf32>, vector<4x1x16x16xf32> -> vector<4x9x16x16xf32>
    %39 = vector.shape_cast %38 : vector<4x9x16x16xf32> to vector<36x256xf32>
    %c0_57 = arith.constant 0 : index
    %c0_58 = arith.constant 0 : index
    %40 = vector.load %arg2[%c0_57, %c0_58] : memref<4x36xf32, #tpu.memory_space<vmem>>, vector<4x36xf32>
    %cst_59 = arith.constant dense<0.000000e+00> : vector<4x256xf32>
    %41 = tpu.matmul %40, %39, %cst_59 {dimension_numbers = #tpu.dot_dimension_numbers<[1], [0], [0], [1], [0, 0, 1, 1], [], []>} : vector<4x36xf32>, vector<36x256xf32>, vector<4x256xf32> -> vector<4x256xf32>
    %c0_60 = arith.constant 0 : index
    %c0_61 = arith.constant 0 : index
    %42 = vector.load %arg3[%c0_60, %c0_61] : memref<4x1xf32, #tpu.memory_space<vmem>>, vector<4x1xf32>
    %43 = vector.broadcast %42 : vector<4x1xf32> to vector<4x256xf32>
    %44 = arith.addf %41, %43 : vector<4x256xf32>
    %cst_62 = arith.constant 0.000000e+00 : f32
    %45 = vector.broadcast %cst_62 : f32 to vector<4x256xf32>
    %46 = arith.maximumf %44, %45 : vector<4x256xf32>
    %47 = vector.shape_cast %46 : vector<4x256xf32> to vector<4x16x16xf32>
    %c0_63 = arith.constant 0 : index
    %c0_64 = arith.constant 0 : index
    %c1_65 = arith.constant 1 : index
    %c1_66 = arith.constant 1 : index
    %48 = vector.load %arg7[%c0_63, %c0_64, %c1_65, %c1_66] : memref<1x4x18x18xf32, #tpu.memory_space<vmem>>, vector<1x4x16x16xf32>
    %49 = vector.shape_cast %48 : vector<1x4x16x16xf32> to vector<4x16x16xf32>
    %50 = vector.shape_cast %47 : vector<4x16x16xf32> to vector<1x4x16x16xf32>
    tpu.vector_store %arg7[%c0_63, %c0_64, %c1_65, %c1_66], %50 {strides = array<i32>} : memref<1x4x18x18xf32, #tpu.memory_space<vmem>>, vector<1x4x16x16xf32>,
    %c0_67 = arith.constant 0 : index
    %c0_68 = arith.constant 0 : index
    %c0_69 = arith.constant 0 : index
    %c0_70 = arith.constant 0 : index
    %51 = vector.load %arg7[%c0_67, %c0_68, %c0_69, %c0_70] : memref<1x4x18x18xf32, #tpu.memory_space<vmem>>, vector<1x4x16x16xf32>
    %52 = vector.shape_cast %51 : vector<1x4x16x16xf32> to vector<4x16x16xf32>
    %c0_71 = arith.constant 0 : index
    %c0_72 = arith.constant 0 : index
    %c0_73 = arith.constant 0 : index
    %c1_74 = arith.constant 1 : index
    %53 = vector.load %arg7[%c0_71, %c0_72, %c0_73, %c1_74] : memref<1x4x18x18xf32, #tpu.memory_space<vmem>>, vector<1x4x16x16xf32>
    %54 = vector.shape_cast %53 : vector<1x4x16x16xf32> to vector<4x16x16xf32>
    %c0_75 = arith.constant 0 : index
    %c0_76 = arith.constant 0 : index
    %c0_77 = arith.constant 0 : index
    %c2_78 = arith.constant 2 : index
    %55 = vector.load %arg7[%c0_75, %c0_76, %c0_77, %c2_78] : memref<1x4x18x18xf32, #tpu.memory_space<vmem>>, vector<1x4x16x16xf32>
    %56 = vector.shape_cast %55 : vector<1x4x16x16xf32> to vector<4x16x16xf32>
    %c0_79 = arith.constant 0 : index
    %c0_80 = arith.constant 0 : index
    %c1_81 = arith.constant 1 : index
    %c0_82 = arith.constant 0 : index
    %57 = vector.load %arg7[%c0_79, %c0_80, %c1_81, %c0_82] : memref<1x4x18x18xf32, #tpu.memory_space<vmem>>, vector<1x4x16x16xf32>
    %58 = vector.shape_cast %57 : vector<1x4x16x16xf32> to vector<4x16x16xf32>
    %c0_83 = arith.constant 0 : index
    %c0_84 = arith.constant 0 : index
    %c1_85 = arith.constant 1 : index
    %c1_86 = arith.constant 1 : index
    %59 = vector.load %arg7[%c0_83, %c0_84, %c1_85, %c1_86] : memref<1x4x18x18xf32, #tpu.memory_space<vmem>>, vector<1x4x16x16xf32>
    %60 = vector.shape_cast %59 : vector<1x4x16x16xf32> to vector<4x16x16xf32>
    %c0_87 = arith.constant 0 : index
    %c0_88 = arith.constant 0 : index
    %c1_89 = arith.constant 1 : index
    %c2_90 = arith.constant 2 : index
    %61 = vector.load %arg7[%c0_87, %c0_88, %c1_89, %c2_90] : memref<1x4x18x18xf32, #tpu.memory_space<vmem>>, vector<1x4x16x16xf32>
    %62 = vector.shape_cast %61 : vector<1x4x16x16xf32> to vector<4x16x16xf32>
    %c0_91 = arith.constant 0 : index
    %c0_92 = arith.constant 0 : index
    %c2_93 = arith.constant 2 : index
    %c0_94 = arith.constant 0 : index
    %63 = vector.load %arg7[%c0_91, %c0_92, %c2_93, %c0_94] : memref<1x4x18x18xf32, #tpu.memory_space<vmem>>, vector<1x4x16x16xf32>
    %64 = vector.shape_cast %63 : vector<1x4x16x16xf32> to vector<4x16x16xf32>
    %c0_95 = arith.constant 0 : index
    %c0_96 = arith.constant 0 : index
    %c2_97 = arith.constant 2 : index
    %c1_98 = arith.constant 1 : index
    %65 = vector.load %arg7[%c0_95, %c0_96, %c2_97, %c1_98] : memref<1x4x18x18xf32, #tpu.memory_space<vmem>>, vector<1x4x16x16xf32>
    %66 = vector.shape_cast %65 : vector<1x4x16x16xf32> to vector<4x16x16xf32>
    %c0_99 = arith.constant 0 : index
    %c0_100 = arith.constant 0 : index
    %c2_101 = arith.constant 2 : index
    %c2_102 = arith.constant 2 : index
    %67 = vector.load %arg7[%c0_99, %c0_100, %c2_101, %c2_102] : memref<1x4x18x18xf32, #tpu.memory_space<vmem>>, vector<1x4x16x16xf32>
    %68 = vector.shape_cast %67 : vector<1x4x16x16xf32> to vector<4x16x16xf32>
    %69 = vector.shape_cast %52 : vector<4x16x16xf32> to vector<4x1x16x16xf32>
    %70 = vector.shape_cast %54 : vector<4x16x16xf32> to vector<4x1x16x16xf32>
    %71 = vector.shape_cast %56 : vector<4x16x16xf32> to vector<4x1x16x16xf32>
    %72 = vector.shape_cast %58 : vector<4x16x16xf32> to vector<4x1x16x16xf32>
    %73 = vector.shape_cast %60 : vector<4x16x16xf32> to vector<4x1x16x16xf32>
    %74 = vector.shape_cast %62 : vector<4x16x16xf32> to vector<4x1x16x16xf32>
    %75 = vector.shape_cast %64 : vector<4x16x16xf32> to vector<4x1x16x16xf32>
    %76 = vector.shape_cast %66 : vector<4x16x16xf32> to vector<4x1x16x16xf32>
    %77 = vector.shape_cast %68 : vector<4x16x16xf32> to vector<4x1x16x16xf32>
    %78 = tpu.concatenate %69, %70, %71, %72, %73, %74, %75, %76, %77 in 1 : vector<4x1x16x16xf32>, vector<4x1x16x16xf32>, vector<4x1x16x16xf32>, vector<4x1x16x16xf32>, vector<4x1x16x16xf32>, vector<4x1x16x16xf32>, vector<4x1x16x16xf32>, vector<4x1x16x16xf32>, vector<4x1x16x16xf32> -> vector<4x9x16x16xf32>
    %79 = vector.shape_cast %78 : vector<4x9x16x16xf32> to vector<36x256xf32>
    %c0_103 = arith.constant 0 : index
    %c0_104 = arith.constant 0 : index
    %80 = vector.load %arg4[%c0_103, %c0_104] : memref<4x36xf32, #tpu.memory_space<vmem>>, vector<4x36xf32>
    %cst_105 = arith.constant dense<0.000000e+00> : vector<4x256xf32>
    %81 = tpu.matmul %80, %79, %cst_105 {dimension_numbers = #tpu.dot_dimension_numbers<[1], [0], [0], [1], [0, 0, 1, 1], [], []>} : vector<4x36xf32>, vector<36x256xf32>, vector<4x256xf32> -> vector<4x256xf32>
    %c0_106 = arith.constant 0 : index
    %c0_107 = arith.constant 0 : index
    %82 = vector.load %arg5[%c0_106, %c0_107] : memref<4x1xf32, #tpu.memory_space<vmem>>, vector<4x1xf32>
    %83 = vector.broadcast %82 : vector<4x1xf32> to vector<4x256xf32>
    %84 = arith.addf %81, %83 : vector<4x256xf32>
    %85 = vector.shape_cast %7 : vector<4x16x16xf32> to vector<4x256xf32>
    %86 = arith.addf %84, %85 : vector<4x256xf32>
    %cst_108 = arith.constant 0.000000e+00 : f32
    %87 = vector.broadcast %cst_108 : f32 to vector<4x256xf32>
    %88 = arith.maximumf %86, %87 : vector<4x256xf32>
    %c0_109 = arith.constant 0 : index
    %c0_110 = arith.constant 0 : index
    %c0_111 = arith.constant 0 : index
    %89 = vector.load %arg6[%c0_109, %c0_110, %c0_111] : memref<1x4x256xf32, #tpu.memory_space<vmem>>, vector<1x4x256xf32>
    %90 = vector.shape_cast %89 : vector<1x4x256xf32> to vector<4x256xf32>
    %91 = vector.shape_cast %88 : vector<4x256xf32> to vector<1x4x256xf32>
    tpu.vector_store %arg6[%c0_109, %c0_110, %c0_111], %91 {strides = array<i32>} : memref<1x4x256xf32, #tpu.memory_space<vmem>>, vector<1x4x256xf32>,
    return
  }
  func.func @transform_0(%arg0: i32) -> (i32, i32, i32, i32) {
    %c0_i32 = arith.constant 0 : i32
    %c0_i32_0 = arith.constant 0 : i32
    %c0_i32_1 = arith.constant 0 : i32
    %c0_i32_2 = arith.constant 0 : i32
    return %arg0, %c0_i32, %c0_i32_0, %c0_i32_1 : i32, i32, i32, i32
  }
  func.func @transform_1(%arg0: i32) -> (i32, i32) {
    %c0_i32 = arith.constant 0 : i32
    %c0_i32_0 = arith.constant 0 : i32
    %c0_i32_1 = arith.constant 0 : i32
    return %c0_i32, %c0_i32_0 : i32, i32
  }
  func.func @transform_2(%arg0: i32) -> (i32, i32) {
    %c0_i32 = arith.constant 0 : i32
    %c0_i32_0 = arith.constant 0 : i32
    %c0_i32_1 = arith.constant 0 : i32
    return %c0_i32, %c0_i32_0 : i32, i32
  }
  func.func @transform_3(%arg0: i32) -> (i32, i32) {
    %c0_i32 = arith.constant 0 : i32
    %c0_i32_0 = arith.constant 0 : i32
    %c0_i32_1 = arith.constant 0 : i32
    return %c0_i32, %c0_i32_0 : i32, i32
  }
  func.func @transform_4(%arg0: i32) -> (i32, i32) {
    %c0_i32 = arith.constant 0 : i32
    %c0_i32_0 = arith.constant 0 : i32
    %c0_i32_1 = arith.constant 0 : i32
    return %c0_i32, %c0_i32_0 : i32, i32
  }
  func.func @transform_5(%arg0: i32) -> (i32, i32, i32) {
    %c0_i32 = arith.constant 0 : i32
    %c0_i32_0 = arith.constant 0 : i32
    %c0_i32_1 = arith.constant 0 : i32
    return %arg0, %c0_i32, %c0_i32_0 : i32, i32, i32
  }
}

</mosaic_0001>

<bundles_post_ra>
// kernel: residual_block_forward.1
= control target key start
LH: loop header
LB: loop body
LE: loop exit
PB: predicated region body
PF: predicated region fallthrough
CT: control target
= control target key end

     0   :  { %s4908_s18 = smov 0   ;;  %s7501_s0 = inlined_call_operand.vmem [shape: f32[2,4,16,16], index: 0, kind: input, shape index: {}]   ;;  %s7502_s1 = inlined_call_operand.vmem [shape: f32[4,36], index: 1, kind: input, shape index: {}]   ;;  %s7503_s2 = inlined_call_operand.vmem [shape: f32[4,1], index: 2, kind: input, shape index: {}]   ;;  %s7504_s3 = inlined_call_operand.vmem [shape: f32[4,36], index: 3, kind: input, shape index: {}]   ;;  %s7505_s4 = inlined_call_operand.vmem [shape: f32[4,1], index: 4, kind: input, shape index: {}]   ;;  %s7506_s5 = inlined_call_operand.vmem [shape: f32[2,4,256], index: 5, kind: output, shape index: {}]  }
   0x1 LB: > { %s4518_s19 = sadd.s32 4294967295, %s4862_s18   ;;  %p4522_p0 = scmp.ge.s32.totalorder %s4862_s18, 1  ;;  %s4862_s18 = sphi %s4908_s18, %s15_s18  }
   0x2   : > { %p187_p1 = scmp.lt.s32.totalorder %s4862_s18, 3 }
   0x4   : > { %p188_p2 = pnand %p4522_p0, %p187_p1 }
   0x6   : > { %191 = sbr.rel (%p188_p2) target bundleno = 1674 (0x68a), region = 40 }
   0xd   : > { %p4916_p3 = scmp.lt.s32.totalorder %s4518_s19, 1  ;;  %v508_v0 = vlaneseq  ;;  %vm225_vm0 = vcmask 139264   ;;  %v4864_v1 = vmov 1983009808   ;;  %v7507_v3 = vmov 0.0   ;;  %s4866_s25 = smov 1  }
   0xe   : > { %v506_v2 = vunpack.c.l.s4 %v4864_v1  ;;  %227 = vst.msk [vmem:[#allocation2 + $0x18] sm:$0x1] %vm225_vm0, %v7507_v3  ;;  %vm234_vm1 = vcmask 7168   ;;  %vm248_vm2 = vcmask 146568   ;;  %226 = vst.msk [vmem:[#allocation2] sm:$0x1] %vm225_vm0, %v7507_v3  ;;  %2166 = vmatprep.mubr.f32.mxu0 %v7507_v3  ;;  %4241 = vmatprep.mubr.f32.mxu1 %v7507_v3 }
   0xf   : > { %228 = vst.msk [vmem:[#allocation2 + $0x30] sm:$0x1] %vm225_vm0, %v7507_v3  ;;  %229 = vst.msk [vmem:[#allocation2 + $0x48] sm:$0x1] %vm225_vm0, %v7507_v3  ;;  %s7942_s19 = smov (!%p4916_p3, %s4518_s19), 1  ;;  %vm237_vm3 = vcmask 1024  }
  0x10   : > { %230 = vst.msk [vmem:[#allocation2 + $0x11] sm:$0x1] %vm225_vm0, %v7507_v3  ;;  %231 = vst.msk [vmem:[#allocation2 + $0x29] sm:$0x1] %vm225_vm0, %v7507_v3  ;;  %vm251_vm4 = vcmask 140424   ;;  %s4535_s21 = sshll.u32 %s7942_s19, 6  ;;  %v507_v4 = vunpack.c.0.s8 %v506_v2 }
  0x11   : > { %232 = vst.msk [vmem:[#allocation2 + $0x41] sm:$0x1] %vm225_vm0, %v7507_v3  ;;  %233 = vst.msk [vmem:[#allocation2 + $0x59] sm:$0x1] %vm225_vm0, %v7507_v3  ;;  %v4971_v5 = vshrl.u32 %v508_v0, 7  ;;  %s219_s24 = scalar_lea.vmem %s7501_s0, %s4535_s21  ;;  %vm302_vm5 = vcmask 138248  }
  0x12   : > { %239 = vst.msk [vmem:[#allocation2 + $0x18] sm:$0xff] %vm234_vm1, %v7507_v3  ;;  %240 = vst.msk [vmem:[#allocation2 + $0x20] sm:$0xff] %vm234_vm1, %v7507_v3  ;;  %v264_v6 = vld [vmem:[%s219_s24 + $0x10] sm:$0xff]  ;;  %v262_v7 = vld [vmem:[%s219_s24] sm:$0xff]  ;;  %s4867_s26 = smov 127   ;;  %s4868_s27 = smov 126  }
  0x13   : > { %236 = vst.msk [vmem:[#allocation2 + $0x8] sm:$0xff] %vm234_vm1, %v7507_v3  ;;  %243 = vst.msk [vmem:[#allocation2 + $0x38] sm:$0xff] %vm234_vm1, %v7507_v3  ;;  %282 = vrot.lane.b32.xlu1 %v264_v6, %s4866_s25  ;;  %278 = vrot.lane.b32.xlu0 %v262_v7, %s4866_s25  ;;  %v263_v8 = vld [vmem:[%s219_s24 + $0x8] sm:$0xff]  ;;  %v265_v10 = vld [vmem:[%s219_s24 + $0x18] sm:$0xff]  ;;  %v4987_v11 = vsub.s32 %v507_v4, %v4971_v5  ;;  %s4870_s28 = smov 32   ;;  %s4871_s29 = smov 64  }
  0x14   : > { %246 = vst.msk [vmem:[#allocation2 + $0x50] sm:$0xff] %vm234_vm1, %v7507_v3  ;;  %235 = vst.msk [vmem:[#allocation2] sm:$0xff] %vm234_vm1, %v7507_v3  ;;  %v267_v9 = vld [vmem:[%s219_s24 + $0x28] sm:$0xff]  ;;  %v266_v14 = vld [vmem:[%s219_s24 + $0x20] sm:$0xff]  ;;  %s4872_s30 = smov 96   ;;  %s4873_s6 = smov 16  }
  0x15   : > { %242 = vst.msk [vmem:[#allocation2 + $0x30] sm:$0xff] %vm234_vm1, %v7507_v3  ;;  %245 = vst.msk [vmem:[#allocation2 + $0x48] sm:$0xff] %vm234_vm1, %v7507_v3  ;;  %v4316_v12 = vcombine.low %v263_v8, %v267_v9  ;;  %v4317_v13 = vcombine.high %v263_v8, %v267_v9  ;;  %v269_v15 = vld [vmem:[%s219_s24 + $0x38] sm:$0xff]  ;;  %v4248_v16 = vcombine.low %v262_v7, %v266_v14  ;;  %v268_v20 = vld [vmem:[%s219_s24 + $0x30] sm:$0xff]  ;;  %s4874_s7 = smov 48   ;;  %s4875_s8 = smov 80  }
  0x16   : > { %253 = vst.msk [vmem:[#allocation2 + $0x18] sm:$0xff] %vm248_vm2, %v7507_v3  ;;  %254 = vst.msk [vmem:[#allocation2 + $0x20] sm:$0xff] %vm248_vm2, %v7507_v3  ;;  %v4249_v17 = vcombine.high %v262_v7, %v266_v14  ;;  %v4332_v18 = vcombine.low %v265_v10, %v269_v15  ;;  %v4333_v19 = vcombine.high %v265_v10, %v269_v15  ;;  %s4876_s9 = smov 112   ;;  %vm2007_vm6 = vcmask 130048   ;;  %s4536_s20 = sshll.u32 %s7942_s19, 3 }
  0x17   : > { %249 = vst.msk [vmem:[#allocation2] sm:$0xff] %vm248_vm2, %v7507_v3  ;;  %250 = vst.msk [vmem:[#allocation2 + $0x8] sm:$0xff] %vm248_vm2, %v7507_v3  ;;  %v4990_v21 = vrot.slane %v4316_v12, %v4987_v11  ;;  %v4993_v22 = vrot.slane %v4317_v13, %v4987_v11  ;;  %v4264_v23 = vcombine.low %v264_v6, %v268_v20  ;;  %284 = vrot.lane.b32.xlu1 %v265_v10, %s4866_s25  ;;  %vm2013_vm7 = vcmask 261120   ;;  %s224_s23 = scalar_lea.vmem %s7506_s5, %s4536_s20 }
  0x18   : > { %257 = vst.msk [vmem:[#allocation2 + $0x38] sm:$0xff] %vm248_vm2, %v7507_v3  ;;  %260 = vst.msk [vmem:[#allocation2 + $0x50] sm:$0xff] %vm248_vm2, %v7507_v3  ;;  %v4265_v24 = vcombine.high %v264_v6, %v268_v20  ;;  %280 = vrot.lane.b32.xlu0 %v263_v8, %s4866_s25  ;;  %v4998_v25 = vrot.slane %v4248_v16, %v4987_v11  ;;  %v5001_v26 = vrot.slane %v4249_v17, %v4987_v11  ;;  %vm2019_vm8 = vcmask 392192  }
  0x19   : > { %241 = vst.msk [vmem:[#allocation2 + $0x28] sm:$0x3] %vm237_vm3, %v7507_v3  ;;  %238 = vst.msk [vmem:[#allocation2 + $0x10] sm:$0x3] %vm237_vm3, %v7507_v3  ;;  %v5004_v27 = vrot.slane %v4332_v18, %v4987_v11  ;;  %v5007_v28 = vrot.slane %v4333_v19, %v4987_v11  ;;  %v5010_v29 = vrot.slane %v4264_v23, %v4987_v11  ;;  %v4869_v19 = vmov 1934713408  }
  0x1a   : > { %244 = vst.msk [vmem:[#allocation2 + $0x40] sm:$0x3] %vm237_vm3, %v7507_v3  ;;  %247 = vst.msk [vmem:[#allocation2 + $0x58] sm:$0x3] %vm237_vm3, %v7507_v3  ;;  %v5013_v30 = vrot.slane %v4265_v24, %v4987_v11  ;;  %vm2025_vm9 = vcmask 523264   ;;  %vm2031_vm10 = vcmask 654336  }
  0x1b   : > { %256 = vst.msk [vmem:[#allocation2 + $0x30] sm:$0xff] %vm248_vm2, %v7507_v3  ;;  %259 = vst.msk [vmem:[#allocation2 + $0x48] sm:$0xff] %vm248_vm2, %v7507_v3  ;;  %288 = vrot.lane.b32.xlu1 %v267_v9, %s4866_s25  ;;  %vm2037_vm11 = vcmask 785408   ;;  %vm2043_vm12 = vcmask 916480   ;;  %vm2095_vm13 = vcmask 1043456   ;;  %vm2091_vm14 = vcmask 293888  }
  0x1c   : > { %255 = vst.msk [vmem:[#allocation2 + $0x28] sm:$0x3] %vm251_vm4, %v7507_v3  ;;  %252 = vst.msk [vmem:[#allocation2 + $0x10] sm:$0x3] %vm251_vm4, %v7507_v3  ;;  %286 = vrot.lane.b32.xlu0 %v266_v14, %s4866_s25 }
  0x1d   : > { %258 = vst.msk [vmem:[#allocation2 + $0x40] sm:$0x3] %vm251_vm4, %v7507_v3  ;;  %261 = vst.msk [vmem:[#allocation2 + $0x58] sm:$0x3] %vm251_vm4, %v7507_v3 }
  0x1e   : > { %7648 = vst [vmem:[#allocation3_spill] sm:$0xff] %v4990_v21  ;;  %7649 = vst [vmem:[#allocation4_spill] sm:$0xff] %v4993_v22 }
  0x1f   : > { %7650 = vst [vmem:[#allocation5_spill] sm:$0xff] %v4998_v25  ;;  %7651 = vst [vmem:[#allocation6_spill] sm:$0xff] %v5001_v26  ;;  %292 = vrot.lane.b32.xlu1 %v269_v15, %s4866_s25 }
  0x20   : > { %7652 = vst [vmem:[#allocation7_spill] sm:$0xff] %v5004_v27  ;;  %7653 = vst [vmem:[#allocation8_spill] sm:$0xff] %v5007_v28  ;;  %290 = vrot.lane.b32.xlu0 %v268_v20, %s4866_s25  ;;  %v570_v20 = vunpack.c.l.s4 %v4869_v19 }
  0x21   : > { %7654 = vst [vmem:[#allocation9_spill] sm:$0xff] %v5010_v29  ;;  %7655 = vst [vmem:[#allocation10_spill] sm:$0xff] %v5013_v30 }
  0x85   : > { %v283_v39 = vpop.permute.xlu1 %282  ;;  %v279_v40 = vpop.permute.xlu0 %278 }
  0x86   : > { %305 = vst.msk [vmem:[#allocation2 + $0x19] sm:$0xff] %vm302_vm5, %v283_v39  ;;  %303 = vst.msk [vmem:[#allocation2 + $0x1] sm:$0xff] %vm302_vm5, %v279_v40 }
  0x89   : > { %v285_v41 = vpop.permute.xlu1 %284 }
  0x8a   : > { %v281_v42 = vpop.permute.xlu0 %280  ;;  %306 = vst.msk [vmem:[#allocation2 + $0x21] sm:$0xff] %vm302_vm5, %v285_v41 }
  0x8b   : > { %304 = vst.msk [vmem:[#allocation2 + $0x9] sm:$0xff] %vm302_vm5, %v281_v42 }
  0x8d   : > { %v289_v43 = vpop.permute.xlu1 %288  ;;  %v5073_v52 = vld [vmem:[#allocation2 + $0x18] sm:$0xff]  ;;  %v5075_v53 = vld [vmem:[#allocation2] sm:$0xff] }
  0x8e   : > { %v287_v44 = vpop.permute.xlu0 %286  ;;  %308 = vst.msk [vmem:[#allocation2 + $0x39] sm:$0xff] %vm302_vm5, %v289_v43  ;;  %v5085_v54 = vld [vmem:[#allocation2 + $0x19] sm:$0xff]  ;;  %v5087_v55 = vld [vmem:[#allocation2 + $0x1] sm:$0xff] }
  0x8f   : > { %307 = vst.msk [vmem:[#allocation2 + $0x31] sm:$0xff] %vm302_vm5, %v287_v44  ;;  %7656 = vst [vmem:[#allocation11_spill] sm:$0xff] %v5085_v54 }
  0x91   : > { %v5041_v45 = vld [vmem:[#allocation2 + $0x20] sm:$0xff]  ;;  %v293_v47 = vpop.permute.xlu1 %292 }
  0x92   : > { %v5043_v46 = vld [vmem:[#allocation2 + $0x8] sm:$0xff]  ;;  %v291_v48 = vpop.permute.xlu0 %290  ;;  %349 = vrot.lane.b32.xlu1 %v5041_v45, %s4867_s26  ;;  %310 = vst.msk [vmem:[#allocation2 + $0x51] sm:$0xff] %vm302_vm5, %v293_v47  ;;  %v5161_v6 = vld [vmem:[#allocation2 + $0x1a] sm:$0xff]  ;;  %v571_v47 = vunpack.c.0.s8 %v570_v20 }
  0x93   : > { %345 = vrot.lane.b32.xlu0 %v5043_v46, %s4867_s26  ;;  %309 = vst.msk [vmem:[#allocation2 + $0x49] sm:$0xff] %vm302_vm5, %v291_v48  ;;  %v5055_v49 = vld [vmem:[#allocation2 + $0x21] sm:$0xff]  ;;  %v5057_v50 = vld [vmem:[#allocation2 + $0x9] sm:$0xff]  ;;  %7667 = vst [vmem:[#allocation22_spill] sm:$0xff] %v5161_v6 }
  0x94   : > { %v5067_v51 = vld [vmem:[#allocation2 + $0xa] sm:$0xff]  ;;  %v5097_v56 = vld [vmem:[#allocation2 + $0x2] sm:$0xff]  ;;  %v5258_v35 = vsub.s32 %v571_v47, %v4971_v5 }
  0x95   : > { %7657 = vst [vmem:[#allocation12_spill] sm:$0xff] %v5097_v56  ;;  %v5115_v59 = vld [vmem:[#allocation2 + $0x39] sm:$0xff]  ;;  %v5123_v61 = vld [vmem:[#allocation2 + $0x22] sm:$0xff] }
  0x96   : > { %373 = vrot.lane.b32.xlu1 %v5041_v45, %s4868_s27  ;;  %v5105_v58 = vld [vmem:[#allocation2 + $0x38] sm:$0xff]  ;;  %7660 = vst [vmem:[#allocation15_spill] sm:$0xff] %v5115_v59  ;;  %v5135_v63 = vld [vmem:[#allocation2 + $0x30] sm:$0xff] }
  0x97   : > { %369 = vrot.lane.b32.xlu0 %v5043_v46, %s4868_s27  ;;  %7659 = vst [vmem:[#allocation14_spill] sm:$0xff] %v5105_v58  ;;  %v5129_v62 = vld [vmem:[#allocation2 + $0x3a] sm:$0xff]  ;;  %7662 = vst [vmem:[#allocation17_spill] sm:$0xff] %v5135_v63  ;;  %v5147_v1 = vld [vmem:[#allocation2 + $0x31] sm:$0xff] }
  0x98   : > { %7661 = vst [vmem:[#allocation16_spill] sm:$0xff] %v5129_v62  ;;  %7664 = vst [vmem:[#allocation19_spill] sm:$0xff] %v5147_v1  ;;  %v5159_v4 = vld [vmem:[#allocation2 + $0x32] sm:$0xff] }
  0x99   : > { %v5117_v60 = vld [vmem:[#allocation2 + $0x51] sm:$0xff]  ;;  %7666 = vst [vmem:[#allocation21_spill] sm:$0xff] %v5159_v4 }
  0x9a   : > { %405 = vrot.lane.b32.xlu1 %v5055_v49, %s4867_s26  ;;  %v5103_v57 = vld [vmem:[#allocation2 + $0x50] sm:$0xff]  ;;  %v5141_v0 = vld [vmem:[#allocation2 + $0x48] sm:$0xff] }
  0x9b   : > { %401 = vrot.lane.b32.xlu0 %v5057_v50, %s4867_s26  ;;  %7658 = vst [vmem:[#allocation13_spill] sm:$0xff] %v5103_v57  ;;  %7663 = vst [vmem:[#allocation18_spill] sm:$0xff] %v5141_v0  ;;  %v5153_v2 = vld [vmem:[#allocation2 + $0x49] sm:$0xff]  ;;  %v5171_v7 = vld [vmem:[#allocation2 + $0x52] sm:$0xff] }
  0x9c   : > { %7665 = vst [vmem:[#allocation20_spill] sm:$0xff] %v5153_v2  ;;  %v5181_v8 = vld [vmem:[#allocation2 + $0x4a] sm:$0xff] }
  0x9e   : > { %429 = vrot.lane.b32.xlu1 %v5055_v49, %s4868_s27 }
  0x9f   : > { %425 = vrot.lane.b32.xlu0 %v5057_v50, %s4868_s27 }
  0xa2   : > { %481 = vrot.lane.b32.xlu1 %v5067_v51, %s4868_s27 }
  0xa3   : > { %457 = vrot.lane.b32.xlu0 %v5067_v51, %s4867_s26 }
  0xa6   : > { %347 = vrot.lane.b32.xlu1 %v5073_v52, %s4867_s26 }
  0xa7   : > { %343 = vrot.lane.b32.xlu0 %v5075_v53, %s4867_s26 }
  0xaa   : > { %371 = vrot.lane.b32.xlu1 %v5073_v52, %s4868_s27 }
  0xab   : > { %367 = vrot.lane.b32.xlu0 %v5075_v53, %s4868_s27 }
  0xae   : > { %403 = vrot.lane.b32.xlu1 %v5085_v54, %s4867_s26 }
  0xaf   : > { %399 = vrot.lane.b32.xlu0 %v5087_v55, %s4867_s26 }
  0xb2   : > { %427 = vrot.lane.b32.xlu1 %v5085_v54, %s4868_s27 }
  0xb3   : > { %423 = vrot.lane.b32.xlu0 %v5087_v55, %s4868_s27 }
  0xb6   : > { %479 = vrot.lane.b32.xlu1 %v5097_v56, %s4868_s27 }
  0xb7   : > { %455 = vrot.lane.b32.xlu0 %v5097_v56, %s4867_s26 }
  0xba   : > { %357 = vrot.lane.b32.xlu1 %v5103_v57, %s4867_s26 }
  0xbb   : > { %353 = vrot.lane.b32.xlu0 %v5105_v58, %s4867_s26 }
  0xbe   : > { %381 = vrot.lane.b32.xlu1 %v5103_v57, %s4868_s27 }
  0xbf   : > { %377 = vrot.lane.b32.xlu0 %v5105_v58, %s4868_s27 }
  0xc2   : > { %413 = vrot.lane.b32.xlu1 %v5117_v60, %s4867_s26 }
  0xc3   : > { %409 = vrot.lane.b32.xlu0 %v5115_v59, %s4867_s26 }
  0xc6   : > { %461 = vrot.lane.b32.xlu1 %v5123_v61, %s4867_s26 }
  0xc7   : > { %433 = vrot.lane.b32.xlu0 %v5115_v59, %s4868_s27 }
  0xca   : > { %485 = vrot.lane.b32.xlu1 %v5123_v61, %s4868_s27 }
  0xcb   : > { %465 = vrot.lane.b32.xlu0 %v5129_v62, %s4867_s26 }
  0xce   : > { %351 = vrot.lane.b32.xlu1 %v5135_v63, %s4867_s26 }
  0xcf   : > { %489 = vrot.lane.b32.xlu0 %v5129_v62, %s4868_s27 }
  0xd2   : > { %375 = vrot.lane.b32.xlu1 %v5135_v63, %s4868_s27 }
  0xd3   : > { %355 = vrot.lane.b32.xlu0 %v5141_v0, %s4867_s26 }
  0xd6   : > { %407 = vrot.lane.b32.xlu1 %v5147_v1, %s4867_s26 }
  0xd7   : > { %379 = vrot.lane.b32.xlu0 %v5141_v0, %s4868_s27 }
  0xda   : > { %431 = vrot.lane.b32.xlu1 %v5147_v1, %s4868_s27 }
  0xdb   : > { %411 = vrot.lane.b32.xlu0 %v5153_v2, %s4867_s26 }
  0xde   : > { %463 = vrot.lane.b32.xlu1 %v5159_v4, %s4867_s26 }
  0xdf   : > { %459 = vrot.lane.b32.xlu0 %v5161_v6, %s4867_s26 }
  0xe2   : > { %487 = vrot.lane.b32.xlu1 %v5159_v4, %s4868_s27 }
  0xe3   : > { %483 = vrot.lane.b32.xlu0 %v5161_v6, %s4868_s27 }
  0xe6   : > { %469 = vrot.lane.b32.xlu1 %v5171_v7, %s4867_s26 }
  0xe7   : > { %437 = vrot.lane.b32.xlu0 %v5117_v60, %s4868_s27 }
  0xea   : > { %435 = vrot.lane.b32.xlu1 %v5153_v2, %s4868_s27 }
  0xeb   : > { %493 = vrot.lane.b32.xlu0 %v5171_v7, %s4868_s27 }
  0xee   : > { %491 = vrot.lane.b32.xlu1 %v5181_v8, %s4868_s27 }
  0xef   : > { %467 = vrot.lane.b32.xlu0 %v5181_v8, %s4867_s26 }
 0x104   : > { %v5187_v9 = vpop.permute.xlu1 %349 }
 0x105   : > { %v5189_v10 = vpop.permute.xlu0 %345 }
 0x106   : > { %v1131_v39 = vcombine.low %v5189_v10, %v5057_v50 }
 0x108   : > { %v5191_v12 = vpop.permute.xlu1 %373  ;;  %v5233_v38 = vrot.slane %v1131_v39, %v4987_v11 }
 0x109   : > { %v5193_v13 = vpop.permute.xlu0 %369  ;;  %v1267_v40 = vcombine.low %v5041_v45, %v5191_v12 }
 0x10a   : > { %v1115_v23 = vcombine.low %v5043_v46, %v5193_v13 }
 0x10b   : > { %v5236_v33 = vrot.slane %v1267_v40, %v4987_v11 }
 0x10c   : > { %v5195_v14 = vpop.permute.xlu1 %405  ;;  %v5223_v48 = vrot.slane %v1115_v23, %v4987_v11 }
 0x10d   : > { %v5197_v15 = vpop.permute.xlu0 %401  ;;  %v1299_v24 = vcombine.low %v5195_v14, %v5123_v61 }
 0x10e   : > { %v1147_v44 = vcombine.low %v5197_v15, %v5067_v51  ;;  %v1179_v39 = vcombine.low %v5223_v48, %v5233_v38 }
 0x10f   : > { %v5226_v19 = vrot.slane %v1299_v24, %v4987_v11 }
 0x110   : > { %v5199_v16 = vpop.permute.xlu1 %429  ;;  %v5251_v36 = vrot.slane %v1147_v44, %v4987_v11  ;;  %v5273_v28 = vrot.slane %v1179_v39, %v5258_v35 }
 0x111   : > { %v5201_v17 = vpop.permute.xlu0 %425  ;;  %v1283_v18 = vcombine.low %v5055_v49, %v5199_v16 }
 0x112   : > { %7670 = vst [vmem:[#allocation25_spill] sm:$0xff] %v5273_v28 }
 0x113   : > { %v5214_v41 = vrot.slane %v1283_v18, %v4987_v11 }
 0x114   : > { %v5216_v42 = vpop.permute.xlu1 %481 }
 0x115   : > { %v5218_v43 = vpop.permute.xlu0 %457  ;;  %v1251_v34 = vcombine.low %v5216_v42, %v5187_v9  ;;  %v1347_v20 = vcombine.low %v5214_v41, %v5226_v19 }
 0x116   : > { %v1163_v18 = vcombine.low %v5201_v17, %v5218_v43 }
 0x117   : > { %v5241_v23 = vrot.slane %v1251_v34, %v4987_v11  ;;  %v5270_v44 = vrot.slane %v1347_v20, %v5258_v35 }
 0x118   : > { %v5244_v24 = vrot.slane %v1163_v18, %v4987_v11  ;;  %v5246_v37 = vpop.permute.xlu1 %347 }
 0x119   : > { %v5248_v32 = vpop.permute.xlu0 %343  ;;  %v1315_v40 = vcombine.low %v5241_v23, %v5236_v33  ;;  %7669 = vst [vmem:[#allocation24_spill] sm:$0xff] %v5270_v44 }
 0x11a   : > { %v1211_v34 = vcombine.low %v5251_v36, %v5244_v24  ;;  %v519_v29 = vcombine.low %v5248_v32, %v5087_v55 }
 0x11b   : > { %v5267_v3 = vrot.slane %v1315_v40, %v5258_v35 }
 0x11c   : > { %v5262_v18 = vpop.permute.xlu1 %371  ;;  %v5276_v22 = vrot.slane %v1211_v34, %v5258_v35 }
 0x11d   : > { %v5264_v31 = vpop.permute.xlu0 %367  ;;  %7668 = vst [vmem:[#allocation23_spill] sm:$0xff] %v5267_v3  ;;  %v655_v25 = vcombine.low %v5073_v52, %v5262_v18  ;;  %v5320_v3 = vrot.slane %v519_v29, %v4987_v11 }
 0x11e   : > { %7671 = vst [vmem:[#allocation26_spill] sm:$0xff] %v5276_v22  ;;  %v503_v39 = vcombine.low %v5075_v53, %v5264_v31 }
 0x11f   : > { %7679 = vst [vmem:[#allocation34_spill] sm:$0xff] %v5320_v3  ;;  %v5323_v44 = vrot.slane %v655_v25, %v4987_v11 }
 0x120   : > { %v5280_v47 = vpop.permute.xlu1 %403  ;;  %v5308_v28 = vrot.slane %v503_v39, %v4987_v11 }
 0x121   : > { %7672 = vst [vmem:[#allocation27_spill] sm:$0xff] %v5280_v47  ;;  %v5282_v30 = vpop.permute.xlu0 %399  ;;  %v687_v5 = vcombine.low %v5280_v47, %v5161_v6 }
 0x122   : > { %7673 = vst [vmem:[#allocation28_spill] sm:$0xff] %v5282_v30  ;;  %7677 = vst [vmem:[#allocation32_spill] sm:$0xff] %v5308_v28  ;;  %v535_v22 = vcombine.low %v5282_v30, %v5097_v56  ;;  %v567_v29 = vcombine.low %v5308_v28, %v5320_v3 }
 0x123   : > { %v5313_v47 = vrot.slane %v687_v5, %v4987_v11 }
 0x124   : > { %v5286_v26 = vpop.permute.xlu1 %427  ;;  %v5340_v56 = vrot.slane %v535_v22, %v4987_v11  ;;  %v5357_v28 = vrot.slane %v567_v29, %v5258_v35 }
 0x125   : > { %7674 = vst [vmem:[#allocation29_spill] sm:$0xff] %v5286_v26  ;;  %v5288_v20 = vpop.permute.xlu0 %423  ;;  %v671_v34 = vcombine.low %v5085_v54, %v5286_v26  ;;  %7678 = vst [vmem:[#allocation33_spill] sm:$0xff] %v5313_v47 }
 0x126   : > { %7675 = vst [vmem:[#allocation30_spill] sm:$0xff] %v5288_v20  ;;  %7683 = vst [vmem:[#allocation38_spill] sm:$0xff] %v5340_v56 }
 0x127   : > { %v5301_v40 = vrot.slane %v671_v34, %v4987_v11  ;;  %7687 = vst [vmem:[#allocation42_spill] sm:$0xff] %v5357_v28 }
 0x128   : > { %v5303_v27 = vpop.permute.xlu1 %479 }
 0x129   : > { %7676 = vst [vmem:[#allocation31_spill] sm:$0xff] %v5301_v40  ;;  %v5305_v21 = vpop.permute.xlu0 %455  ;;  %v639_v6 = vcombine.low %v5303_v27, %v5246_v37  ;;  %v735_v39 = vcombine.low %v5301_v40, %v5313_v47 }
 0x12a   : > { %v551_v34 = vcombine.low %v5288_v20, %v5305_v21 }
 0x12b   : > { %v5328_v54 = vrot.slane %v639_v6, %v4987_v11  ;;  %v5354_v20 = vrot.slane %v735_v39, %v5258_v35 }
 0x12c   : > { %v5331_v5 = vrot.slane %v551_v34, %v4987_v11  ;;  %v5333_v26 = vpop.permute.xlu1 %357 }
 0x12d   : > { %7680 = vst [vmem:[#allocation35_spill] sm:$0xff] %v5328_v54  ;;  %v5335_v30 = vpop.permute.xlu0 %353  ;;  %v703_v25 = vcombine.low %v5328_v54, %v5323_v44  ;;  %7686 = vst [vmem:[#allocation41_spill] sm:$0xff] %v5354_v20 }
 0x12e   : > { %7681 = vst [vmem:[#allocation36_spill] sm:$0xff] %v5331_v5  ;;  %7682 = vst [vmem:[#allocation37_spill] sm:$0xff] %v5335_v30  ;;  %v599_v6 = vcombine.low %v5340_v56, %v5331_v5 }
 0x12f   : > { %v5351_v47 = vrot.slane %v703_v25, %v5258_v35 }
 0x130   : > { %v5346_v40 = vpop.permute.xlu1 %381  ;;  %v5360_v22 = vrot.slane %v599_v6, %v5258_v35 }
 0x131   : > { %v5348_v34 = vpop.permute.xlu0 %377  ;;  %7685 = vst [vmem:[#allocation40_spill] sm:$0xff] %v5351_v47 }
 0x132   : > { %7684 = vst [vmem:[#allocation39_spill] sm:$0xff] %v5348_v34  ;;  %7688 = vst [vmem:[#allocation43_spill] sm:$0xff] %v5360_v22 }
 0x134   : > { %v5366_v5 = vpop.permute.xlu1 %413 }
 0x135   : > { %v5368_v54 = vpop.permute.xlu0 %409  ;;  %v1571_v56 = vcombine.low %v5346_v40, %v5366_v5 }
 0x136   : > { %7689 = vst [vmem:[#allocation44_spill] sm:$0xff] %v5368_v54  ;;  %v1419_v29 = vcombine.low %v5348_v34, %v5368_v54 }
 0x138   : > { %v5370_v25 = vpop.permute.xlu1 %461  ;;  %v5390_v22 = vrot.slane %v1419_v29, %v4987_v11 }
 0x139   : > { %7690 = vst [vmem:[#allocation45_spill] sm:$0xff] %v5370_v25  ;;  %v5372_v39 = vpop.permute.xlu0 %433  ;;  %v1387_v3 = vcombine.low %v5370_v25, %v5105_v58 }
 0x13a   : > { %7691 = vst [vmem:[#allocation46_spill] sm:$0xff] %v5372_v39  ;;  %v1435_v6 = vcombine.low %v5115_v59, %v5372_v39  ;;  %7695 = vst [vmem:[#allocation50_spill] sm:$0xff] %v5390_v22  ;;  %v1555_v59 = vcombine.low %v5333_v26, %v5117_v60  ;;  %v5405_v39 = vrot.slane %v1571_v56, %v4987_v11 }
 0x13b   : > { %v5397_v25 = vrot.slane %v1387_v3, %v4987_v11 }
 0x13c   : > { %v5383_v47 = vrot.slane %v1435_v6, %v4987_v11  ;;  %v5385_v20 = vpop.permute.xlu1 %485  ;;  %7698 = vst [vmem:[#allocation53_spill] sm:$0xff] %v5405_v39 }
 0x13d   : > { %7693 = vst [vmem:[#allocation48_spill] sm:$0xff] %v5385_v20  ;;  %v5387_v28 = vpop.permute.xlu0 %465  ;;  %v1403_v34 = vcombine.low %v5385_v20, %v5335_v30  ;;  %7696 = vst [vmem:[#allocation51_spill] sm:$0xff] %v5397_v25  ;;  %v5416_v30 = vrot.slane %v1555_v59, %v4987_v11 }
 0x13e   : > { %7692 = vst [vmem:[#allocation47_spill] sm:$0xff] %v5383_v47  ;;  %7694 = vst [vmem:[#allocation49_spill] sm:$0xff] %v5387_v28  ;;  %v1483_v6 = vcombine.low %v5390_v22, %v5383_v47  ;;  %v1539_v29 = vcombine.low %v5387_v28, %v5103_v57 }
 0x13f   : > { %v5402_v58 = vrot.slane %v1403_v34, %v4987_v11  ;;  %7701 = vst [vmem:[#allocation56_spill] sm:$0xff] %v5416_v30  ;;  %v1619_v28 = vcombine.low %v5416_v30, %v5405_v39 }
 0x140   : > { %v5409_v54 = vpop.permute.xlu1 %351  ;;  %v5424_v56 = vrot.slane %v1483_v6, %v5258_v35  ;;  %v5429_v57 = vrot.slane %v1539_v29, %v4987_v11 }
 0x141   : > { %7697 = vst [vmem:[#allocation52_spill] sm:$0xff] %v5402_v58  ;;  %7699 = vst [vmem:[#allocation54_spill] sm:$0xff] %v5409_v54  ;;  %v5411_v20 = vpop.permute.xlu0 %489  ;;  %v1451_v3 = vcombine.low %v5397_v25, %v5402_v58 }
 0x142   : > { %7700 = vst [vmem:[#allocation55_spill] sm:$0xff] %v5411_v20  ;;  %v1523_v34 = vcombine.low %v5129_v62, %v5411_v20  ;;  %7703 = vst [vmem:[#allocation58_spill] sm:$0xff] %v5424_v56 }
 0x143   : > { %v5421_v22 = vrot.slane %v1451_v3, %v5258_v35 }
 0x144   : > { %v5432_v47 = vrot.slane %v1523_v34, %v4987_v11  ;;  %v5434_v59 = vpop.permute.xlu1 %375  ;;  %v5450_v34 = vrot.slane %v1619_v28, %v5258_v35  ;;  %v1116_v28 = vcombine.high %v5043_v46, %v5193_v13  ;;  %v1268_v46 = vcombine.high %v5041_v45, %v5191_v12 }
 0x145   : > { %7702 = vst [vmem:[#allocation57_spill] sm:$0xff] %v5421_v22  ;;  %7705 = vst [vmem:[#allocation60_spill] sm:$0xff] %v5434_v59  ;;  %v5436_v25 = vpop.permute.xlu0 %355  ;;  %v1180_v45 = vcombine.high %v5223_v48, %v5233_v38  ;;  %v1284_v12 = vcombine.high %v5055_v49, %v5199_v16 }
 0x146   : > { %7704 = vst [vmem:[#allocation59_spill] sm:$0xff] %v5432_v47  ;;  %7706 = vst [vmem:[#allocation61_spill] sm:$0xff] %v5436_v25  ;;  %v1587_v6 = vcombine.low %v5432_v47, %v5429_v57  ;;  %v943_v58 = vcombine.low %v5436_v25, %v5153_v2  ;;  %v5523_v48 = vrot.slane %v1268_v46, %v4987_v11 }
 0x147   : > { %7710 = vst [vmem:[#allocation65_spill] sm:$0xff] %v5450_v34  ;;  %v5537_v46 = vrot.slane %v1284_v12, %v4987_v11  ;;  %v1252_v12 = vcombine.high %v5216_v42, %v5187_v9  ;;  %v1348_v9 = vcombine.high %v5214_v41, %v5226_v19 }
 0x148   : > { %v5442_v62 = vpop.permute.xlu1 %407  ;;  %v5447_v29 = vrot.slane %v1587_v6, %v5258_v35 }
 0x149   : > { %7707 = vst [vmem:[#allocation62_spill] sm:$0xff] %v5442_v62  ;;  %v5444_v20 = vpop.permute.xlu0 %379  ;;  %v807_v34 = vcombine.low %v5434_v59, %v5442_v62  ;;  %v5584_v41 = vrot.slane %v1252_v12, %v4987_v11  ;;  %v520_v12 = vcombine.high %v5248_v32, %v5087_v55 }
 0x14a   : > { %7708 = vst [vmem:[#allocation63_spill] sm:$0xff] %v5444_v20  ;;  %7709 = vst [vmem:[#allocation64_spill] sm:$0xff] %v5447_v29  ;;  %v1132_v29 = vcombine.high %v5189_v10, %v5057_v50  ;;  %v1130_v10 = vrot.slane %v1116_v28, %v4987_v11 }
 0x14b   : > { %v1331_v55 = vcombine.low %v5584_v41, %v5523_v48 }
 0x14c   : > { %v5454_v30 = vpop.permute.xlu1 %431  ;;  %v1146_v25 = vrot.slane %v1132_v29, %v4987_v11 }
 0x14d   : > { %7711 = vst [vmem:[#allocation66_spill] sm:$0xff] %v5454_v30  ;;  %v5456_v39 = vpop.permute.xlu0 %411  ;;  %v823_v6 = vcombine.low %v5147_v1, %v5454_v30 }
 0x14e   : > { %7712 = vst [vmem:[#allocation67_spill] sm:$0xff] %v5456_v39  ;;  %v959_v3 = vcombine.low %v5444_v20, %v5456_v39 }
 0x14f   : > { %v5486_v13 = vrot.slane %v823_v6, %v4987_v11  ;;  %v5504_v6 = vrot.slane %v807_v34, %v4987_v11  ;;  %v1195_v34 = vcombine.low %v1130_v10, %v1146_v25 }
 0x150   : > { %v5460_v22 = vpop.permute.xlu1 %463  ;;  %v5475_v20 = vrot.slane %v959_v3, %v4987_v11  ;;  %v5492_v3 = vrot.slane %v943_v58, %v4987_v11 }
 0x151   : > { %7713 = vst [vmem:[#allocation68_spill] sm:$0xff] %v5460_v22  ;;  %v5462_v56 = vpop.permute.xlu0 %459  ;;  %v927_v39 = vcombine.low %v5460_v22, %v5141_v0  ;;  %v871_v49 = vcombine.low %v5504_v6, %v5486_v13 }
 0x152   : > { %7714 = vst [vmem:[#allocation69_spill] sm:$0xff] %v5462_v56  ;;  %v775_v50 = vcombine.low %v5462_v56, %v5135_v63  ;;  %v1007_v58 = vcombine.low %v5492_v3, %v5475_v20  ;;  %v1148_v63 = vcombine.high %v5197_v15, %v5067_v51 }
 0x153   : > { %v5509_v28 = vrot.slane %v927_v39, %v4987_v11  ;;  %v1196_v39 = vcombine.high %v1130_v10, %v1146_v25 }
 0x154   : > { %v5479_v47 = vpop.permute.xlu1 %487  ;;  %v5520_v16 = vrot.slane %v775_v50, %v4987_v11  ;;  %v5534_v50 = vrot.slane %v1180_v45, %v5258_v35  ;;  %v5551_v45 = vrot.slane %v871_v49, %v5258_v35 }
 0x155   : > { %v5481_v1 = vpop.permute.xlu0 %483  ;;  %v911_v59 = vcombine.low %v5159_v4, %v5479_v47  ;;  %v7742_v4 = vld [vmem:[#allocation31_spill] sm:$0xff] }
 0x156   : > { %7715 = vst [vmem:[#allocation70_spill] sm:$0xff] %v5481_v1  ;;  %v791_v62 = vcombine.low %v5481_v1, %v5409_v54 }
 0x157   : > { %v5512_v2 = vrot.slane %v911_v59, %v4987_v11 }
 0x158   : > { %v5515_v29 = vrot.slane %v791_v62, %v4987_v11  ;;  %v470_v56 = vpop.permute.xlu1 %469  ;;  %v1300_v62 = vcombine.high %v5195_v14, %v5123_v61  ;;  %v5543_v61 = vrot.slane %v1007_v58, %v5258_v35 }
 0x159   : > { %v438_v38 = vpop.permute.xlu0 %437  ;;  %v975_v59 = vcombine.low %v5512_v2, %v5509_v28 }
 0x15a   : > { %v839_v22 = vcombine.low %v5520_v16, %v5515_v29  ;;  %v1659_v0 = vcombine.low %v438_v38, %v470_v56  ;;  %v1660_v1 = vcombine.high %v438_v38, %v470_v56  ;;  %v5561_v54 = vrot.slane %v1300_v62, %v4987_v11 }
 0x15b   : > { %v5540_v30 = vrot.slane %v975_v59, %v5258_v35  ;;  %v5556_v59 = vrot.slane %v1195_v34, %v5258_v35  ;;  %v5577_v62 = vrot.slane %v1196_v39, %v5258_v35 }
 0x15c   : > { %v436_v25 = vpop.permute.xlu1 %435  ;;  %v5548_v15 = vrot.slane %v839_v22, %v5258_v35  ;;  %v5573_v42 = vrot.slane %v1659_v0, %v4987_v11  ;;  %v1674_v0 = vrot.slane %v1660_v1, %v4987_v11 }
 0x15d   : > { %v494_v10 = vpop.permute.xlu0 %493 }
 0x15e   : > { %v1675_v51 = vcombine.low %v5171_v7, %v494_v10  ;;  %v1676_v14 = vcombine.high %v5171_v7, %v494_v10  ;;  %v1164_v7 = vcombine.high %v5201_v17, %v5218_v43  ;;  %7717 = vst [vmem:[#allocation72_spill] sm:$0xff] %v5573_v42  ;;  %v1363_v17 = vcombine.low %v5537_v46, %v5561_v54 }
 0x160   : > { %v5566_v22 = vrot.slane %v1675_v51, %v4987_v11  ;;  %v1690_v56 = vrot.slane %v1676_v14, %v4987_v11  ;;  %v492_v38 = vpop.permute.xlu1 %491  ;;  %v5590_v39 = vrot.slane %v1164_v7, %v4987_v11  ;;  %v5606_v7 = vrot.slane %v1148_v63, %v4987_v11 }
 0x161   : > { %v468_v34 = vpop.permute.xlu0 %467  ;;  %v1063_v43 = vcombine.low %v5181_v8, %v492_v38  ;;  %v1064_v10 = vcombine.high %v5181_v8, %v492_v38  ;;  %v5621_v63 = vrot.slane %v1348_v9, %v5258_v35  ;;  %v656_v9 = vcombine.high %v5073_v52, %v5262_v18  ;;  %v7724_v52 = vld [vmem:[#allocation12_spill] sm:$0xff] }
 0x162   : > { %7716 = vst [vmem:[#allocation71_spill] sm:$0xff] %v5566_v22  ;;  %v1047_v51 = vcombine.low %v436_v25, %v468_v34  ;;  %v1048_v19 = vcombine.high %v436_v25, %v468_v34  ;;  %v1692_v14 = vcombine.high %v5573_v42, %v5566_v22  ;;  %v1707_v38 = vcombine.low %v1674_v0, %v1690_v56  ;;  %v7725_v18 = vld [vmem:[#allocation28_spill] sm:$0xff]  ;;  %v7737_v42 = vld [vmem:[#allocation26_spill] sm:$0xff] }
 0x163   : > { %v5593_v49 = vrot.slane %v1063_v43, %v4987_v11  ;;  %v1078_v58 = vrot.slane %v1064_v10, %v4987_v11  ;;  %v1316_v34 = vcombine.high %v5241_v23, %v5236_v33  ;;  %v5624_v33 = vrot.slane %v1363_v17, %v5258_v35  ;;  %v7739_v22 = vld [vmem:[#allocation34_spill] sm:$0xff] }
 0x164   : > { %v5597_v8 = vrot.slane %v1047_v51, %v4987_v11  ;;  %v1062_v1 = vrot.slane %v1048_v19, %v4987_v11  ;;  %v5603_v25 = vrot.slane %v1692_v14, %v5258_v35  ;;  %v1212_v23 = vcombine.high %v5251_v36, %v5244_v24 }
 0x165   : > { %7718 = vst [vmem:[#allocation73_spill] sm:$0xff] %v5593_v49  ;;  %v1227_v51 = vcombine.low %v5606_v7, %v5590_v39  ;;  %v5634_v43 = vrot.slane %v520_v12, %v4987_v11  ;;  %v5639_v32 = vrot.slane %v1707_v38, %v5258_v35  ;;  %v1708_v17 = vcombine.high %v1674_v0, %v1690_v56  ;;  %v7727_v56 = vld [vmem:[#allocation11_spill] sm:$0xff] }
 0x166   : > { %7719 = vst [vmem:[#allocation74_spill] sm:$0xff] %v5597_v8  ;;  %7720 = vst [vmem:[#allocation75_spill] sm:$0xff] %v5603_v25  ;;  %v1080_v10 = vcombine.high %v5597_v8, %v5593_v49  ;;  %1900 = vrot.lane.b32.xlu0 %v5603_v25, %s4870_s28  ;;  %v1095_v14 = vcombine.low %v1062_v1, %v1078_v58  ;;  %v504_v36 = vcombine.high %v5075_v53, %v5264_v31  ;;  %v7726_v49 = vld [vmem:[#allocation29_spill] sm:$0xff]  ;;  %v7728_v31 = vld [vmem:[#allocation35_spill] sm:$0xff] }
 0x167   : > { %7722 = vst [vmem:[#allocation77_spill] sm:$0xff] %v5639_v32  ;;  %v640_v24 = vcombine.high %v5303_v27, %v5246_v37  ;;  %v5650_v12 = vrot.slane %v1316_v34, %v5258_v35  ;;  %v536_v38 = vcombine.high %v7725_v18, %v7724_v52  ;;  %v672_v0 = vcombine.high %v7727_v56, %v7726_v49  ;;  %v7730_v27 = vld [vmem:[#allocation23_spill] sm:$0xff] }
 0x168   : > { %v5631_v19 = vrot.slane %v1080_v10, %v5258_v35  ;;  %v7723_v10 = vld [vmem:[#allocation30_spill] sm:$0xff]  ;;  %v704_v53 = vcombine.high %v7728_v31, %v5323_v44  ;;  %v5665_v8 = vrot.slane %v1095_v14, %v5258_v35  ;;  %v1096_v52 = vcombine.high %v1062_v1, %v1078_v58  ;;  %v7735_v56 = vld [vmem:[#allocation27_spill] sm:$0xff]  ;;  %v7741_v14 = vld [vmem:[#allocation33_spill] sm:$0xff] }
 0x169   : > { %v552_v25 = vcombine.high %v7723_v10, %v5305_v21  ;;  %v7729_v21 = vld [vmem:[#allocation24_spill] sm:$0xff]  ;;  %v1226_v18 = vrot.slane %v1212_v23, %v5258_v35  ;;  %v5669_v49 = vrot.slane %v656_v9, %v4987_v11  ;;  %v7734_v44 = vld [vmem:[#allocation22_spill] sm:$0xff]  ;;  %v736_v58 = vcombine.high %v7742_v4, %v7741_v14 }
 0x16a   : > { %7721 = vst [vmem:[#allocation76_spill] sm:$0xff] %v5631_v19  ;;  %1760 = vrot.lane.b32.xlu1 %v5631_v19, %s4870_s28  ;;  %1940 = vrot.lane.b32.xlu0 %v5639_v32, %s4871_s29  ;;  %v1380_v37 = vcombine.high %v7730_v27, %v7729_v21  ;;  %v7731_v10 = vld [vmem:[#allocation36_spill] sm:$0xff]  ;;  %v7732_v19 = vld [vmem:[#allocation38_spill] sm:$0xff]  ;;  %7733 = vst [vmem:[#allocation30_spill] sm:$0xff] %v5665_v8  ;;  %v688_v31 = vcombine.high %v7735_v56, %v7734_v44 }
 0x16b   : > { %v600_v34 = vcombine.high %v7732_v19, %v7731_v10  ;;  %v5674_v32 = vrot.slane %v1708_v17, %v5258_v35  ;;  %v7738_v21 = vld [vmem:[#allocation25_spill] sm:$0xff]  ;;  %v7740_v19 = vld [vmem:[#allocation32_spill] sm:$0xff]  ;;  %v5683_v1 = vrot.slane %v640_v24, %v4987_v11  ;;  %v5686_v23 = vrot.slane %v552_v25, %v4987_v11  ;;  %v7744_v24 = vld [vmem:[#allocation43_spill] sm:$0xff] }
 0x16c   : > { %v1244_v27 = vcombine.high %v7738_v21, %v7737_v42  ;;  %v568_v10 = vcombine.high %v7740_v19, %v7739_v22  ;;  %v5691_v9 = vrot.slane %v504_v36, %v4987_v11  ;;  %v5694_v17 = vrot.slane %v536_v38, %v4987_v11  ;;  %v7745_v44 = vld [vmem:[#allocation42_spill] sm:$0xff]  ;;  %v7746_v36 = vld [vmem:[#allocation41_spill] sm:$0xff]  ;;  %v7747_v19 = vld [vmem:[#allocation40_spill] sm:$0xff] }
 0x16d   : > { %7736 = vst [vmem:[#allocation12_spill] sm:$0xff] %v5674_v32  ;;  %v5697_v22 = vrot.slane %v672_v0, %v4987_v11  ;;  %v718_v4 = vrot.slane %v704_v53, %v5258_v35  ;;  %v5703_v25 = vrot.slane %v1096_v52, %v5258_v35  ;;  %v632_v56 = vcombine.high %v7745_v44, %v7744_v24 }
 0x16e   : > { %1800 = vrot.lane.b32.xlu1 %v5665_v8, %s4871_s29  ;;  %1980 = vrot.lane.b32.xlu0 %v5674_v32, %s4872_s30  ;;  %v768_v14 = vcombine.high %v7747_v19, %v7746_v36  ;;  %v614_v38 = vrot.slane %v600_v34, %v5258_v35  ;;  %v5711_v0 = vrot.slane %v688_v31, %v4987_v11 }
 0x16f   : > { %7743 = vst [vmem:[#allocation28_spill] sm:$0xff] %v5703_v25  ;;  %v4575_v42 = vpack.i.bf16 %v1380_v37, %v1244_v27  ;;  %v1245_v21 = vcombine.low %v5534_v50, %v1226_v18  ;;  %v1381_v53 = vcombine.low %v5650_v12, %v5621_v63  ;;  %v719_v52 = vcombine.low %v5683_v1, %v5669_v49 }
 0x170   : > { %v615_v24 = vcombine.low %v5694_v17, %v5686_v23  ;;  %v582_v34 = vrot.slane %v568_v10, %v5258_v35  ;;  %v750_v31 = vrot.slane %v736_v58, %v5258_v35  ;;  %v1228_v27 = vcombine.high %v5606_v7, %v5590_v39 }
 0x171   : > { %v583_v37 = vcombine.low %v5691_v9, %v5634_v43  ;;  %v1235_v44 = vrot.slane %v1227_v51, %v5258_v35  ;;  %v1339_v36 = vrot.slane %v1331_v55, %v5258_v35  ;;  %v751_v19 = vcombine.low %v5697_v22, %v5711_v0 }
 0x172   : > { %1840 = vrot.lane.b32.xlu1 %v5703_v25, %s4872_s30  ;;  %4576 = vrot.lane.b32.xlu0 %v4575_v42, %s4873_s6  ;;  %v4580_v25 = vpack.i.bf16 %v768_v14, %v632_v56  ;;  %v633_v10 = vcombine.low %v582_v34, %v614_v38  ;;  %v769_v32 = vcombine.low %v718_v4, %v750_v31 }
 0x173   : > { %v1332_v58 = vcombine.high %v5584_v41, %v5523_v48  ;;  %v4585_v39 = vpack.i.bf16 %v1381_v53, %v1245_v21  ;;  %v1246_v7 = vcombine.high %v5534_v50, %v1226_v18  ;;  %v1382_v8 = vcombine.high %v5650_v12, %v5621_v63 }
 0x174   : > { %v584_v42 = vcombine.high %v5691_v9, %v5634_v43  ;;  %v623_v55 = vrot.slane %v615_v24, %v5258_v35  ;;  %v727_v51 = vrot.slane %v719_v52, %v5258_v35  ;;  %v7748_v56 = vcombine.high %v5537_v46, %v5561_v54  ;;  %v7753_v52 = vld [vmem:[#allocation64_spill] sm:$0xff] }
 0x175   : > { %v1247_v50 = vcombine.low %v5556_v59, %v1235_v44  ;;  %v1383_v41 = vcombine.low %v1339_v36, %v5624_v33  ;;  %v591_v43 = vrot.slane %v583_v37, %v5258_v35  ;;  %v5754_v63 = vrot.slane %v1228_v27, %v5258_v35 }
 0x176   : > { %4581 = vrot.lane.b32.xlu1 %v4580_v25, %s4873_s6  ;;  %v5747_v48 = vrot.slane %v7748_v56, %v5258_v35  ;;  %4586 = vrot.lane.b32.xlu0 %v4585_v39, %s4870_s28  ;;  %v4590_v12 = vpack.i.bf16 %v769_v32, %v633_v10  ;;  %v634_v21 = vcombine.high %v582_v34, %v614_v38  ;;  %v7754_v39 = vld [vmem:[#allocation58_spill] sm:$0xff] }
 0x177   : > { %v770_v18 = vcombine.high %v718_v4, %v750_v31  ;;  %v759_v9 = vrot.slane %v751_v19, %v5258_v35  ;;  %v4595_v25 = vpack.i.bf16 %v1382_v8, %v1246_v7  ;;  %v1248_v54 = vcombine.high %v5556_v59, %v1235_v44  ;;  %v7749_v19 = vld [vmem:[#allocation44_spill] sm:$0xff]  ;;  %v7750_v59 = vld [vmem:[#allocation39_spill] sm:$0xff]  ;;  %v7755_v7 = vld [vmem:[#allocation57_spill] sm:$0xff] }
 0x178   : > { %v1384_v46 = vcombine.high %v1339_v36, %v5624_v33  ;;  %v5760_v24 = vrot.slane %v1332_v58, %v5258_v35  ;;  %v1556_v14 = vcombine.high %v5333_v26, %v5117_v60  ;;  %v1572_v53 = vcombine.high %v5346_v40, %v5366_v5  ;;  %v7751_v26 = vld [vmem:[#allocation59_spill] sm:$0xff]  ;;  %v7752_v5 = vld [vmem:[#allocation65_spill] sm:$0xff] }
 0x179   : > { %v635_v32 = vcombine.low %v591_v43, %v623_v55  ;;  %v771_v4 = vcombine.low %v727_v51, %v759_v9  ;;  %v752_v8 = vcombine.high %v5697_v22, %v5711_v0  ;;  %v1420_v44 = vcombine.high %v7750_v59, %v7749_v19  ;;  %v7762_v19 = vld [vmem:[#allocation46_spill] sm:$0xff]  ;;  %v7763_v59 = vld [vmem:[#allocation15_spill] sm:$0xff]  ;;  %v7781_v22 = vld [vmem:[#allocation17_spill] sm:$0xff] }
 0x17a   : > { %4591 = vrot.lane.b32.xlu1 %v4590_v12, %s4870_s28  ;;  %4596 = vrot.lane.b32.xlu0 %v4595_v25, %s4874_s7  ;;  %v636_v33 = vcombine.high %v591_v43, %v623_v55  ;;  %v772_v36 = vcombine.high %v727_v51, %v759_v9  ;;  %v1588_v60 = vcombine.high %v7751_v26, %v5429_v57  ;;  %v7760_v12 = vld [vmem:[#allocation47_spill] sm:$0xff]  ;;  %v7764_v26 = vld [vmem:[#allocation14_spill] sm:$0xff]  ;;  %v7782_v0 = vld [vmem:[#allocation69_spill] sm:$0xff] }
 0x17b   : > { %v4605_v38 = vpack.i.bf16 %v1383_v41, %v1247_v50  ;;  %v4600_v40 = vpack.i.bf16 %v770_v18, %v634_v21  ;;  %v1652_v34 = vcombine.high %v7753_v52, %v7752_v5  ;;  %v720_v31 = vcombine.high %v5683_v1, %v5669_v49  ;;  %v7756_v49 = vld [vmem:[#allocation53_spill] sm:$0xff]  ;;  %v7757_v1 = vld [vmem:[#allocation56_spill] sm:$0xff]  ;;  %v7759_v50 = vld [vmem:[#allocation51_spill] sm:$0xff] }
 0x17c   : > { %v616_v27 = vcombine.high %v5694_v17, %v5686_v23  ;;  %v4620_v37 = vpack.i.bf16 %v1384_v46, %v1248_v54  ;;  %v1249_v10 = vcombine.low %v5577_v62, %v5754_v63  ;;  %v5783_v58 = vrot.slane %v1556_v14, %v4987_v11  ;;  %v7758_v17 = vld [vmem:[#allocation52_spill] sm:$0xff]  ;;  %v7761_v21 = vld [vmem:[#allocation50_spill] sm:$0xff] }
 0x17d   : > { %v5786_v57 = vrot.slane %v1572_v53, %v4987_v11  ;;  %v1516_v55 = vcombine.high %v7755_v7, %v7754_v39  ;;  %v4610_v51 = vpack.i.bf16 %v771_v4, %v635_v32  ;;  %v1620_v56 = vcombine.high %v7757_v1, %v7756_v49 }
 0x17e   : > { %4601 = vrot.lane.b32.xlu1 %v4600_v40, %s4874_s7  ;;  %v5794_v23 = vrot.slane %v1420_v44, %v4987_v11  ;;  %v1452_v41 = vcombine.high %v7759_v50, %v7758_v17  ;;  %4606 = vrot.lane.b32.xlu0 %v4605_v38, %s4871_s29  ;;  %v4630_v43 = vpack.i.bf16 %v772_v36, %v636_v33  ;;  %v7767_v40 = vld [vmem:[#allocation48_spill] sm:$0xff]  ;;  %v7771_v17 = vld [vmem:[#allocation49_spill] sm:$0xff] }
 0x17f   : > { %v1484_v18 = vcombine.high %v7761_v21, %v7760_v12  ;;  %v4615_v9 = vpack.i.bf16 %v1652_v34, %v1516_v55  ;;  %v5802_v25 = vrot.slane %v1588_v60, %v5258_v35  ;;  %v1385_v54 = vcombine.low %v5760_v24, %v5747_v48  ;;  %v7765_v60 = vld [vmem:[#allocation45_spill] sm:$0xff]  ;;  %v7769_v55 = vld [vmem:[#allocation16_spill] sm:$0xff] }
 0x180   : > { %v976_v46 = vcombine.high %v5512_v2, %v5509_v28  ;;  %v840_v14 = vcombine.high %v5520_v16, %v5515_v29  ;;  %v904_v53 = vcombine.high %v5548_v15, %v5551_v45  ;;  %v1040_v32 = vcombine.high %v5540_v30, %v5543_v61 }
 0x181   : > { %v1635_v4 = vcombine.low %v5783_v58, %v5786_v57  ;;  %v1436_v44 = vcombine.high %v7763_v59, %v7762_v19  ;;  %v5820_v33 = vrot.slane %v584_v42, %v5258_v35  ;;  %v5823_v2 = vrot.slane %v616_v27, %v5258_v35  ;;  %v7766_v42 = vld [vmem:[#allocation37_spill] sm:$0xff]  ;;  %v7768_v27 = vld [vmem:[#allocation55_spill] sm:$0xff] }
 0x182   : > { %4611 = vrot.lane.b32.xlu1 %v4610_v51, %s4871_s29  ;;  %v872_v28 = vcombine.high %v5504_v6, %v5486_v13  ;;  %v1008_v29 = vcombine.high %v5492_v3, %v5475_v20  ;;  %4616 = vrot.lane.b32.xlu0 %v4615_v9, %s4873_s6  ;;  %v1466_v16 = vrot.slane %v1452_v41, %v5258_v35 }
 0x183   : > { %v1634_v36 = vrot.slane %v1620_v56, %v5258_v35  ;;  %v1388_v38 = vcombine.high %v7765_v60, %v7764_v26  ;;  %v1404_v34 = vcombine.high %v7767_v40, %v7766_v42  ;;  %v1524_v51 = vcombine.high %v7769_v55, %v7768_v27  ;;  %v7770_v56 = vld [vmem:[#allocation13_spill] sm:$0xff]  ;;  %v7776_v26 = vld [vmem:[#allocation19_spill] sm:$0xff]  ;;  %v7780_v27 = vld [vmem:[#allocation68_spill] sm:$0xff] }
 0x184   : > { %v1498_v13 = vrot.slane %v1484_v18, %v5258_v35  ;;  %v4625_v6 = vpack.i.bf16 %v1040_v32, %v904_v53  ;;  %v5841_v3 = vrot.slane %v840_v14, %v5258_v35  ;;  %v5844_v49 = vrot.slane %v976_v46, %v5258_v35  ;;  %v7772_v53 = vld [vmem:[#allocation21_spill] sm:$0xff]  ;;  %v7777_v60 = vld [vmem:[#allocation67_spill] sm:$0xff] }
 0x185   : > { %v1653_v20 = vcombine.low %v5802_v25, %v1634_v36  ;;  %v5847_v1 = vrot.slane %v1436_v44, %v4987_v11  ;;  %v1540_v50 = vcombine.high %v7771_v17, %v7770_v56  ;;  %v4640_v41 = vpack.i.bf16 %v1385_v54, %v1249_v10  ;;  %v7773_v10 = vld [vmem:[#allocation54_spill] sm:$0xff]  ;;  %v7778_v42 = vld [vmem:[#allocation63_spill] sm:$0xff]  ;;  %v7783_v17 = vld [vmem:[#allocation20_spill] sm:$0xff] }
 0x186   : > { %4621 = vrot.lane.b32.xlu1 %v4620_v37, %s4875_s8  ;;  %v637_v12 = vcombine.low %v5820_v33, %v5823_v2  ;;  %4626 = vrot.lane.b32.xlu0 %v4625_v6, %s4873_s6  ;;  %v1517_v21 = vcombine.low %v1466_v16, %v1498_v13  ;;  %v886_v18 = vrot.slane %v872_v28, %v5258_v35  ;;  %v7774_v54 = vld [vmem:[#allocation70_spill] sm:$0xff] }
 0x187   : > { %v1022_v9 = vrot.slane %v1008_v29, %v5258_v35  ;;  %v5858_v46 = vrot.slane %v720_v31, %v5258_v35  ;;  %v5861_v14 = vrot.slane %v1404_v34, %v4987_v11  ;;  %v912_v37 = vcombine.high %v7772_v53, %v5479_v47  ;;  %v7775_v29 = vld [vmem:[#allocation66_spill] sm:$0xff] }
 0x188   : > { %v792_v32 = vcombine.high %v7774_v54, %v7773_v10  ;;  %v5871_v19 = vrot.slane %v752_v8, %v5258_v35  ;;  %v5874_v59 = vrot.slane %v1524_v51, %v4987_v11  ;;  %v4635_v31 = vpack.i.bf16 %v1653_v20, %v1517_v21  ;;  %v7779_v34 = vld [vmem:[#allocation18_spill] sm:$0xff]  ;;  %v7784_v21 = vld [vmem:[#allocation61_spill] sm:$0xff]  ;;  %v7786_v54 = vld [vmem:[#allocation60_spill] sm:$0xff] }
 0x189   : > { %v905_v44 = vcombine.low %v5841_v3, %v886_v18  ;;  %v1041_v28 = vcombine.low %v5844_v49, %v1022_v9  ;;  %v824_v47 = vcombine.high %v7776_v26, %v7775_v29  ;;  %v960_v40 = vcombine.high %v7778_v42, %v7777_v60  ;;  %v7785_v10 = vld [vmem:[#allocation62_spill] sm:$0xff] }
 0x18a   : > { %v928_v55 = vcombine.high %v7780_v27, %v7779_v34  ;;  %v776_v8 = vcombine.high %v7782_v0, %v7781_v22  ;;  %4631 = vrot.lane.b32.xlu1 %v4630_v43, %s4875_s8  ;;  %v5888_v51 = vrot.slane %v1388_v38, %v4987_v11  ;;  %v1499_v6 = vcombine.low %v5794_v23, %v5847_v1 }
 0x18b   : > { %v1554_v20 = vrot.slane %v1540_v50, %v4987_v11  ;;  %4636 = vrot.lane.b32.xlu0 %v4635_v31, %s4870_s28  ;;  %v773_v56 = vcombine.low %v5858_v46, %v5871_v19  ;;  %v944_v53 = vcombine.high %v7784_v21, %v7783_v17  ;;  %v808_v29 = vcombine.high %v7786_v54, %v7785_v10 }
 0x18c   : > { %v5901_v43 = vrot.slane %v912_v37, %v4987_v11  ;;  %v5904_v38 = vrot.slane %v792_v32, %v4987_v11  ;;  %v1467_v50 = vcombine.low %v5888_v51, %v5861_v14  ;;  %v4645_v26 = vpack.i.bf16 %v1041_v28, %v905_v44 }
 0x18d   : > { %v1603_v31 = vcombine.low %v5874_v59, %v1554_v20  ;;  %v1654_v60 = vcombine.high %v5802_v25, %v1634_v36  ;;  %v5911_v42 = vrot.slane %v824_v47, %v4987_v11  ;;  %v5914_v34 = vrot.slane %v960_v40, %v4987_v11 }
 0x18e   : > { %v942_v37 = vrot.slane %v928_v55, %v4987_v11  ;;  %v790_v27 = vrot.slane %v776_v8, %v4987_v11  ;;  %4641 = vrot.lane.b32.xlu1 %v4640_v41, %s4872_s30  ;;  %v1518_v32 = vcombine.high %v1466_v16, %v1498_v13  ;;  %v4650_v22 = vpack.i.bf16 %v773_v56, %v637_v12 }
 0x18f   : > { %4646 = vrot.lane.b32.xlu0 %v4645_v26, %s4870_s28  ;;  %v1250_v44 = vcombine.high %v5577_v62, %v5754_v63  ;;  %v1386_v25 = vcombine.high %v5760_v24, %v5747_v48  ;;  %v958_v36 = vrot.slane %v944_v53, %v4987_v11  ;;  %v822_v28 = vrot.slane %v808_v29, %v4987_v11 }
 0x190   : > { %v991_v47 = vcombine.low %v5901_v43, %v942_v37  ;;  %v855_v40 = vcombine.low %v790_v27, %v5904_v38  ;;  %v4655_v55 = vpack.i.bf16 %v1654_v60, %v1518_v32  ;;  %v906_v41 = vcombine.high %v5841_v3, %v886_v18  ;;  %v7787_v60 = vld [vmem:[#allocation71_spill] sm:$0xff] }
 0x191   : > { %v1042_v16 = vcombine.high %v5844_v49, %v1022_v9  ;;  %v1611_v13 = vrot.slane %v1603_v31, %v5258_v35  ;;  %v887_v62 = vcombine.low %v822_v28, %v5911_v42  ;;  %v1023_v63 = vcombine.low %v958_v36, %v5914_v34 }
 0x192   : > { %4651 = vrot.lane.b32.xlu1 %v4650_v22, %s4872_s30  ;;  %v1475_v48 = vrot.slane %v1467_v50, %v5258_v35  ;;  %v1643_v24 = vrot.slane %v1635_v4, %v5258_v35  ;;  %v638_v3 = vcombine.high %v5820_v33, %v5823_v2  ;;  %v774_v49 = vcombine.high %v5858_v46, %v5871_v19 }
 0x193   : > { %4656 = vrot.lane.b32.xlu0 %v4655_v55, %s4874_s7  ;;  %v4660_v12 = vpack.i.bf16 %v1386_v25, %v1250_v44  ;;  %v863_v18 = vrot.slane %v855_v40, %v5258_v35  ;;  %v999_v9 = vrot.slane %v991_v47, %v5258_v35  ;;  %v1604_v0 = vcombine.high %v5874_v59, %v1554_v20 }
 0x194   : > { %v4665_v8 = vpack.i.bf16 %v1042_v16, %v906_v41  ;;  %v1507_v56 = vrot.slane %v1499_v6, %v5258_v35  ;;  %v1655_v17 = vcombine.low %v1611_v13, %v1643_v24  ;;  %v895_v4 = vrot.slane %v887_v62, %v5258_v35 }
 0x195   : > { %v1031_v33 = vrot.slane %v1023_v63, %v5258_v35  ;;  %v1636_v2 = vcombine.high %v5783_v58, %v5786_v57  ;;  %v1468_v46 = vcombine.high %v5888_v51, %v5861_v14  ;;  %v4670_v59 = vpack.i.bf16 %v774_v49, %v638_v3  ;;  %v7790_v63 = vld [vmem:[#allocation74_spill] sm:$0xff] }
 0x196   : > { %4661 = vrot.lane.b32.xlu1 %v4660_v12, %s4876_s9  ;;  %v1519_v19 = vcombine.low %v1475_v48, %v1507_v56  ;;  %v992_v6 = vcombine.high %v5901_v43, %v942_v37  ;;  %v856_v20 = vcombine.high %v790_v27, %v5904_v38  ;;  %v907_v21 = vcombine.low %v863_v18, %v895_v4 }
 0x197   : > { %4666 = vrot.lane.b32.xlu0 %v4665_v8, %s4874_s7  ;;  %v1043_v53 = vcombine.low %v999_v9, %v1031_v33  ;;  %v1500_v10 = vcombine.high %v5794_v23, %v5847_v1  ;;  %v1656_v29 = vcombine.high %v1611_v13, %v1643_v24  ;;  %v1618_v58 = vrot.slane %v1604_v0, %v5258_v35 }
 0x198   : > { %v4675_v54 = vpack.i.bf16 %v1655_v17, %v1519_v19  ;;  %v888_v57 = vcombine.high %v822_v28, %v5911_v42  ;;  %v1024_v14 = vcombine.high %v958_v36, %v5914_v34  ;;  %v1520_v51 = vcombine.high %v1475_v48, %v1507_v56  ;;  %v7788_v42 = vld [vmem:[#allocation72_spill] sm:$0xff]  ;;  %v7791_v48 = vld [vmem:[#allocation73_spill] sm:$0xff]  ;;  %v7793_v56 = vld [vmem:[#allocation75_spill] sm:$0xff] }
 0x199   : > { %v1482_v43 = vrot.slane %v1468_v46, %v5258_v35  ;;  %v1650_v38 = vrot.slane %v1636_v2, %v5258_v35  ;;  %v908_v50 = vcombine.high %v863_v18, %v895_v4  ;;  %v4680_v31 = vpack.i.bf16 %v1043_v53, %v907_v21  ;;  %v7794_v4 = vld [vmem:[#allocation76_spill] sm:$0xff]  ;;  %v7795_v46 = vld [vmem:[#allocation77_spill] sm:$0xff] }
 0x19a   : > { %4671 = vrot.lane.b32.xlu1 %v4670_v59, %s4876_s9  ;;  %v1044_v23 = vcombine.high %v999_v9, %v1031_v33  ;;  %v870_v1 = vrot.slane %v856_v20, %v5258_v35  ;;  %v1006_v26 = vrot.slane %v992_v6, %v5258_v35  ;;  %v1691_v37 = vcombine.low %v7788_v42, %v7787_v60  ;;  %v7796_v59 = vld [vmem:[#allocation30_spill] sm:$0xff]  ;;  %v7797_v20 = vld [vmem:[#allocation12_spill] sm:$0xff] }
 0x19b   : > { %4676 = vrot.lane.b32.xlu0 %v4675_v54, %s4871_s29  ;;  %v4685_v34 = vpack.i.bf16 %v1656_v29, %v1520_v51  ;;  %v1514_v27 = vrot.slane %v1500_v10, %v5258_v35  ;;  %v1657_v32 = vcombine.low %v1618_v58, %v1650_v38  ;;  %v902_v22 = vrot.slane %v888_v57, %v5258_v35  ;;  %v7798_v53 = vld [vmem:[#allocation28_spill] sm:$0xff]  ;;  %v2085_v54 = vld [vmem:[%s7503_s2] sm:$0xf] }
 0x19c   : > { %v1038_v44 = vrot.slane %v1024_v14, %v5258_v35  ;;  %v4690_v36 = vpack.i.bf16 %v1044_v23, %v908_v50  ;;  %v5977_v55 = vrot.slane %v1691_v37, %v5258_v35  ;;  %v1658_v16 = vcombine.high %v1618_v58, %v1650_v38 }
 0x19d   : > { %v1521_v25 = vcombine.low %v1482_v43, %v1514_v27  ;;  %v909_v28 = vcombine.low %v870_v1, %v902_v22  ;;  %v7789_v13 = vmov 0.0   ;;  %v7792_v24 = vcombine.low %v7790_v63, %v7791_v48 }
 0x19e   : > { %4681 = vrot.lane.b32.xlu1 %v4680_v31, %s4871_s29  ;;  %v1045_v47 = vcombine.low %v1006_v26, %v1038_v44  ;;  %v1723_v62 = vcombine.high %v5977_v55, %v7789_v13  ;;  %v1522_v49 = vcombine.high %v1482_v43, %v1514_v27  ;;  %v910_v18 = vcombine.high %v870_v1, %v902_v22 }
 0x19f   : > { %4686 = vrot.lane.b32.xlu0 %v4685_v34, %s4875_s8  ;;  %v4695_v40 = vpack.i.bf16 %v1657_v32, %v1521_v25  ;;  %v5987_v3 = vrot.slane %v7792_v24, %v5258_v35  ;;  %v1046_v9 = vcombine.high %v1006_v26, %v1038_v44  ;;  %v1724_v17 = vcombine.high %v7793_v56, %v7789_v13 }
 0x1a0   : > { %v4700_v41 = vpack.i.bf16 %v1045_v47, %v909_v28  ;;  %v4705_v12 = vpack.i.bf16 %v1658_v16, %v1522_v49  ;;  %v1112_v33 = vcombine.high %v7794_v4, %v7789_v13  ;;  %v4877_v2 = vmov 0   ;;  %v7799_v49 = vld [vmem:[#allocation23_spill] sm:$0xff] }
 0x1a1   : > { %v1111_v0 = vcombine.high %v5987_v3, %v7789_v13  ;;  %v4710_v8 = vpack.i.bf16 %v1046_v9, %v910_v18  ;;  %4715 = vset.pattern.permute.xlu0 %v4877_v2  ;;  %v1725_v19 = vcombine.high %v7795_v46, %v7789_v13  ;;  %v1113_v6 = vcombine.high %v7796_v59, %v7789_v13  ;;  %v7805_v2 = vld [vmem:[#allocation40_spill] sm:$0xff]  ;;  %v7806_v46 = vld [vmem:[#allocation41_spill] sm:$0xff] }
 0x1a2   : > { %4691 = vrot.lane.b32.xlu1 %v4690_v36, %s4875_s8  ;;  %v1726_v21 = vcombine.high %v7797_v20, %v7789_v13  ;;  %v1114_v10 = vcombine.high %v7798_v53, %v7789_v13  ;;  %v7809_v20 = vld [vmem:[#allocation43_spill] sm:$0xff] }
 0x1a3   : > { %4696 = vrot.lane.b32.xlu0 %v4695_v40, %s4872_s30 }
 0x1a6   : > { %4701 = vrot.lane.b32.xlu1 %v4700_v41, %s4872_s30 }
 0x1a7   : > { %1880 = vrot.lane.b32.xlu0 %v1723_v62, %s4873_s6 }
 0x1aa   : > { %4706 = vrot.lane.b32.xlu1 %v4705_v12, %s4876_s9  ;;  %v7800_v12 = vld [vmem:[#allocation24_spill] sm:$0xff] }
 0x1ab   : > { %1740 = vrot.lane.b32.xlu0 %v1111_v0, %s4873_s6  ;;  %v7801_v18 = vcombine.low %v7799_v49, %v7800_v12  ;;  %v7802_v0 = vld [vmem:[#allocation25_spill] sm:$0xff] }
 0x1ae   : > { %4711 = vrot.lane.b32.xlu1 %v4710_v8, %s4876_s9  ;;  %v7803_v8 = vld [vmem:[#allocation26_spill] sm:$0xff] }
 0x1af   : > { %1920 = vrot.lane.b32.xlu0 %v1724_v17, %s4874_s7  ;;  %v7804_v56 = vcombine.low %v7802_v0, %v7803_v8 }
 0x1b2   : > { %1780 = vrot.lane.b32.xlu1 %v1112_v33, %s4874_s7 }
 0x1b3   : > { %1960 = vrot.lane.b32.xlu0 %v1725_v19, %s4875_s8  ;;  %v7807_v19 = vcombine.low %v7805_v2, %v7806_v46 }
 0x1b6   : > { %1820 = vrot.lane.b32.xlu1 %v1113_v6, %s4875_s8  ;;  %v7808_v6 = vld [vmem:[#allocation42_spill] sm:$0xff] }
 0x1b7   : > { %2000 = vrot.lane.b32.xlu0 %v1726_v21, %s4876_s9  ;;  %v7810_v21 = vcombine.low %v7808_v6, %v7809_v20 }
 0x1ba   : > { %1860 = vrot.lane.b32.xlu1 %v1114_v10, %s4876_s9 }
 0x1bb   : > { %2088 = vperm.xlu0 %4715, %v2085_v54  }
 0x1d8   : > { %v6017_v29 = vpop.permute.xlu0 %1900 }
 0x1dc   : > { %v6019_v58 = vpop.permute.xlu1 %1760  ;;  %v6021_v57 = vpop.permute.xlu0 %1940 }
 0x1e0   : > { %v6023_v14 = vpop.permute.xlu1 %1800  ;;  %v6025_v51 = vpop.permute.xlu0 %1980 }
 0x1e4   : > { %v6027_v43 = vpop.permute.xlu1 %1840  ;;  %v4577_v38 = vpop.permute.xlu0 %4576 }
 0x1e5   : > { %v4579_v44 = vunpack.i.h.bf16 %v4577_v38  ;;  %v4578_v25 = vunpack.i.l.bf16 %v4577_v38 }
 0x1e7   : > { %v2050_v9 = vsel %vm2007_vm6, %v7801_v18, %v4579_v44  ;;  %v2049_v17 = vsel %vm2007_vm6, %v7804_v56, %v4578_v25 }
 0x1e8   : > { %v4582_v50 = vpop.permute.xlu1 %4581  ;;  %v4587_v31 = vpop.permute.xlu0 %4586 }
 0x1e9   : > { %v4584_v36 = vunpack.i.h.bf16 %v4582_v50  ;;  %v4583_v28 = vunpack.i.l.bf16 %v4582_v50  ;;  %v4589_v40 = vunpack.i.h.bf16 %v4587_v31  ;;  %v4588_v41 = vunpack.i.l.bf16 %v4587_v31 }
 0x1eb   : > { %v2009_v59 = vsel %vm2007_vm6, %v7807_v19, %v4584_v36  ;;  %v2008_v53 = vsel %vm2007_vm6, %v7810_v21, %v4583_v28  ;;  %v2054_v50 = vsel %vm2013_vm7, %v2049_v17, %v4588_v41  ;;  %v2055_v31 = vsel %vm2013_vm7, %v2050_v9, %v4589_v40 }
 0x1ec   : > { %v4592_v23 = vpop.permute.xlu1 %4591  ;;  %v4597_v1 = vpop.permute.xlu0 %4596 }
 0x1ed   : > { %v4594_v16 = vunpack.i.h.bf16 %v4592_v23  ;;  %v4593_v62 = vunpack.i.l.bf16 %v4592_v23  ;;  %v4599_v48 = vunpack.i.h.bf16 %v4597_v1  ;;  %v4598_v24 = vunpack.i.l.bf16 %v4597_v1 }
 0x1ef   : > { %v2014_v23 = vsel %vm2013_vm7, %v2008_v53, %v4593_v62  ;;  %v2015_v1 = vsel %vm2013_vm7, %v2009_v59, %v4594_v16  ;;  %v2059_v44 = vsel %vm2019_vm8, %v2054_v50, %v4598_v24  ;;  %v2060_v25 = vsel %vm2019_vm8, %v2055_v31, %v4599_v48 }
 0x1f0   : > { %v6029_v26 = vpop.permute.xlu1 %4601  ;;  %v4607_v60 = vpop.permute.xlu0 %4606 }
 0x1f1   : > { %v4609_v4 = vunpack.i.h.bf16 %v4607_v60  ;;  %v4608_v33 = vunpack.i.l.bf16 %v4607_v60  ;;  %v4604_v28 = vunpack.i.h.bf16 %v6029_v26 }
 0x1f3   : > { %v2064_v41 = vsel %vm2025_vm9, %v2059_v44, %v4608_v33  ;;  %v2065_v40 = vsel %vm2025_vm9, %v2060_v25, %v4609_v4  ;;  %v2021_v33 = vsel %vm2019_vm8, %v2015_v1, %v4604_v28 }
 0x1f4   : > { %v6031_v42 = vpop.permute.xlu1 %4611  ;;  %v6033_v37 = vpop.permute.xlu0 %4616 }
 0x1f5   : > { %v4614_v62 = vunpack.i.h.bf16 %v6031_v42  ;;  %v4613_v16 = vunpack.i.l.bf16 %v6031_v42  ;;  %v4619_v25 = vunpack.i.h.bf16 %v6033_v37 }
 0x1f8   : > { %v4622_v34 = vpop.permute.xlu1 %4621  ;;  %v6035_v27 = vpop.permute.xlu0 %4626 }
 0x1f9   : > { %v4624_v10 = vunpack.i.h.bf16 %v4622_v34  ;;  %v4623_v54 = vunpack.i.l.bf16 %v4622_v34  ;;  %v4603_v34 = vunpack.i.l.bf16 %v6029_v26  ;;  %v4629_v28 = vunpack.i.h.bf16 %v6035_v27 }
 0x1fb   : > { %v2069_v18 = vsel %vm2031_vm10, %v2064_v41, %v4623_v54  ;;  %v2070_v24 = vsel %vm2031_vm10, %v2065_v40, %v4624_v10  ;;  %v2020_v42 = vsel %vm2019_vm8, %v2014_v23, %v4603_v34  ;;  %v4628_v34 = vunpack.i.l.bf16 %v6035_v27 }
 0x1fc   : > { %v6037_v32 = vpop.permute.xlu1 %4631  ;;  %v2026_v19 = vsel %vm2025_vm9, %v2020_v42, %v4613_v16  ;;  %v7811_v16 = vcombine.low %v7753_v52, %v7752_v5  ;;  %v7813_v5 = vcombine.low %v5540_v30, %v5543_v61 }
 0x1fd   : > { %v6039_v22 = vpop.permute.xlu0 %4636  ;;  %v4634_v48 = vunpack.i.h.bf16 %v6037_v32 }
 0x1fe   : > { %v4639_v41 = vunpack.i.h.bf16 %v6039_v22  ;;  %v4638_v40 = vunpack.i.l.bf16 %v6039_v22  ;;  %v2011_v52 = vsel %vm2007_vm6, %v7813_v5, %v4629_v28 }
 0x200   : > { %v4642_v47 = vpop.permute.xlu1 %4641 }
 0x201   : > { %v6041_v63 = vpop.permute.xlu0 %4646  ;;  %v4644_v36 = vunpack.i.h.bf16 %v4642_v47  ;;  %v4643_v49 = vunpack.i.l.bf16 %v4642_v47  ;;  %v4633_v47 = vunpack.i.l.bf16 %v6037_v32  ;;  %v2027_v32 = vsel %vm2025_vm9, %v2021_v33, %v4614_v62 }
 0x202   : > { %v2033_v54 = vsel %vm2031_vm10, %v2027_v32, %v4634_v48  ;;  %v7812_v48 = vcombine.low %v7755_v7, %v7754_v39 }
 0x203   : > { %v2074_v17 = vsel %vm2037_vm11, %v2069_v18, %v4643_v49  ;;  %v2075_v4 = vsel %vm2037_vm11, %v2070_v24, %v4644_v36  ;;  %v2032_v10 = vsel %vm2031_vm10, %v2026_v19, %v4633_v47  ;;  %v4618_v49 = vunpack.i.l.bf16 %v6033_v37 }
 0x204   : > { %v4652_v38 = vpop.permute.xlu1 %4651  ;;  %v4649_v18 = vunpack.i.h.bf16 %v6041_v63  ;;  %v4648_v24 = vunpack.i.l.bf16 %v6041_v63 }
 0x205   : > { %v6063_v60 = vpop.permute.xlu0 %4656  ;;  %v4654_v8 = vunpack.i.h.bf16 %v4652_v38  ;;  %v4653_v56 = vunpack.i.l.bf16 %v4652_v38  ;;  %v2051_v27 = vsel %vm2007_vm6, %v7812_v48, %v4618_v49 }
 0x206   : > { %v4659_v47 = vunpack.i.h.bf16 %v6063_v60  ;;  %v4658_v22 = vunpack.i.l.bf16 %v6063_v60  ;;  %v2056_v39 = vsel %vm2013_vm7, %v2051_v27, %v4638_v40  ;;  %v2017_v30 = vsel %vm2013_vm7, %v2011_v52, %v4649_v18 }
 0x207   : > { %v2038_v38 = vsel %vm2037_vm11, %v2032_v10, %v4653_v56  ;;  %v2039_v50 = vsel %vm2037_vm11, %v2033_v54, %v4654_v8 }
 0x208   : > { %v4662_v12 = vpop.permute.xlu1 %4661 }
 0x209   : > { %v4664_v9 = vunpack.i.h.bf16 %v4662_v12  ;;  %v4663_v0 = vunpack.i.l.bf16 %v4662_v12  ;;  %v4667_v26 = vpop.permute.xlu0 %4666  ;;  %v2052_v12 = vsel %vm2007_vm6, %v7811_v16, %v4619_v25 }
 0x20a   : > { %v4669_v8 = vunpack.i.h.bf16 %v4667_v26  ;;  %v2057_v7 = vsel %vm2013_vm7, %v2052_v12, %v4639_v41 }
 0x20b   : > { %v2079_v2 = vsel %vm2043_vm12, %v2074_v17, %v4663_v0  ;;  %v2080_v46 = vsel %vm2043_vm12, %v2075_v4, %v4664_v9  ;;  %v4668_v9 = vunpack.i.l.bf16 %v4667_v26  ;;  %v7814_v0 = vcombine.low %v5548_v15, %v5551_v45 }
 0x20c   : > { %v4672_v59 = vpop.permute.xlu1 %4671  ;;  %v4537_v6 = vpack.c.bf16 %v2080_v46, %v2079_v2  ;;  %v2061_v15 = vsel %vm2019_vm8, %v2056_v39, %v4658_v22  ;;  %v2062_v45 = vsel %vm2019_vm8, %v2057_v7, %v4659_v47  ;;  %v2023_v19 = vsel %vm2019_vm8, %v2017_v30, %v4669_v8 }
 0x20d   : > { %v4674_v20 = vunpack.i.h.bf16 %v4672_v59  ;;  %v4673_v21 = vunpack.i.l.bf16 %v4672_v59  ;;  %v4677_v53 = vpop.permute.xlu0 %4676  ;;  %v2010_v63 = vsel %vm2007_vm6, %v7814_v0, %v4628_v34 }
 0x20e   : > { %4538 = vmatprep.subr.bf16.mxu0 %v4537_v6  ;;  %v4678_v56 = vunpack.i.l.bf16 %v4677_v53  ;;  %v4679_v17 = vunpack.i.h.bf16 %v4677_v53  ;;  %v2016_v42 = vsel %vm2013_vm7, %v2010_v63, %v4648_v24 }
 0x20f   : > { %v2044_v31 = vsel %vm2043_vm12, %v2038_v38, %v4673_v21  ;;  %v2045_v23 = vsel %vm2043_vm12, %v2039_v50, %v4674_v20  ;;  %v2022_v26 = vsel %vm2019_vm8, %v2016_v42, %v4668_v9 }
 0x210   : > { %v4682_v1 = vpop.permute.xlu1 %4681  ;;  %v4539_v44 = vpack.c.bf16 %v2045_v23, %v2044_v31  ;;  %v2066_v32 = vsel %vm2025_vm9, %v2061_v15, %v4678_v56  ;;  %v2067_v20 = vsel %vm2025_vm9, %v2062_v45, %v4679_v17 }
 0x211   : > { %v4687_v36 = vpop.permute.xlu0 %4686  ;;  %v4684_v59 = vunpack.i.h.bf16 %v4682_v1  ;;  %v4683_v6 = vunpack.i.l.bf16 %v4682_v1 }
 0x212   : > { %4540 = vmatpush1.bf16.msra.mxu0 %v4539_v44  ;;  %v4688_v4 = vunpack.i.l.bf16 %v4687_v36  ;;  %v4689_v61 = vunpack.i.h.bf16 %v4687_v36 }
 0x213   : > { %v2028_v28 = vsel %vm2025_vm9, %v2022_v26, %v4683_v6  ;;  %v2029_v34 = vsel %vm2025_vm9, %v2023_v19, %v4684_v59 }
 0x214   : > { %v4692_v62 = vpop.permute.xlu1 %4691  ;;  %v2071_v21 = vsel %vm2031_vm10, %v2066_v32, %v4688_v4  ;;  %v2072_v38 = vsel %vm2031_vm10, %v2067_v20, %v4689_v61  ;;  %v2084_v61 = vld [vmem:[%s7502_s1] sm:$0xf] }
 0x215   : > { %v4697_v37 = vpop.permute.xlu0 %4696  ;;  %v4694_v53 = vunpack.i.h.bf16 %v4692_v62  ;;  %v4693_v10 = vunpack.i.l.bf16 %v4692_v62 }
 0x216   : > { %v4698_v33 = vunpack.i.l.bf16 %v4697_v37  ;;  %v4699_v46 = vunpack.i.h.bf16 %v4697_v37 }
 0x217   : > { %v2034_v62 = vsel %vm2031_vm10, %v2028_v28, %v4693_v10  ;;  %v2035_v16 = vsel %vm2031_vm10, %v2029_v34, %v4694_v53 }
 0x218   : > { %v4702_v60 = vpop.permute.xlu1 %4701  ;;  %v2076_v44 = vsel %vm2037_vm11, %v2071_v21, %v4698_v33  ;;  %v2077_v1 = vsel %vm2037_vm11, %v2072_v38, %v4699_v46 }
 0x219   : > { %v1881_v2 = vpop.permute.xlu0 %1880  ;;  %v4704_v25 = vunpack.i.h.bf16 %v4702_v60  ;;  %v4703_v36 = vunpack.i.l.bf16 %v4702_v60 }
 0x21a   : > { %v2053_v49 = vsel %vm2007_vm6, %v5977_v55, %v1881_v2 }
 0x21b   : > { %v2058_v48 = vsel %vm2013_vm7, %v2053_v49, %v6017_v29  ;;  %v2040_v22 = vsel %vm2037_vm11, %v2034_v62, %v4703_v36  ;;  %v2041_v9 = vsel %vm2037_vm11, %v2035_v16, %v4704_v25 }
 0x21c   : > { %v4707_v54 = vpop.permute.xlu1 %4706 }
 0x21d   : > { %v4709_v50 = vunpack.i.h.bf16 %v4707_v54  ;;  %v4708_v31 = vunpack.i.l.bf16 %v4707_v54  ;;  %v1741_v23 = vpop.permute.xlu0 %1740 }
 0x21e   : > { %v2012_v24 = vsel %vm2007_vm6, %v5987_v3, %v1741_v23 }
 0x21f   : > { %v2081_v41 = vsel %vm2043_vm12, %v2076_v44, %v4708_v31  ;;  %v2082_v40 = vsel %vm2043_vm12, %v2077_v1, %v4709_v50  ;;  %v2018_v3 = vsel %vm2013_vm7, %v2012_v24, %v6019_v58 }
 0x220   : > { %v4712_v12 = vpop.permute.xlu1 %4711  ;;  %v4541_v18 = vpack.c.bf16 %v2082_v40, %v2081_v41 }
 0x221   : > { %v4714_v55 = vunpack.i.h.bf16 %v4712_v12  ;;  %v4713_v37 = vunpack.i.l.bf16 %v4712_v12  ;;  %v1921_v27 = vpop.permute.xlu0 %1920 }
 0x222   : > { %v2063_v47 = vsel %vm2019_vm8, %v2058_v48, %v1921_v27  ;;  %4542 = vmatprep.subr.bf16.mxu0 %v4541_v18 }
 0x223   : > { %v2046_v5 = vsel %vm2043_vm12, %v2040_v22, %v4713_v37  ;;  %v2047_v52 = vsel %vm2043_vm12, %v2041_v9, %v4714_v55  ;;  %v2068_v29 = vsel %vm2025_vm9, %v2063_v47, %v6021_v57 }
 0x224   : > { %v1781_v0 = vpop.permute.xlu1 %1780  ;;  %v4543_v63 = vpack.c.bf16 %v2047_v52, %v2046_v5 }
 0x225   : > { %v2024_v8 = vsel %vm2019_vm8, %v2018_v3, %v1781_v0  ;;  %v1961_v56 = vpop.permute.xlu0 %1960 }
 0x226   : > { %v2073_v39 = vsel %vm2031_vm10, %v2068_v29, %v1961_v56  ;;  %4544 = vmatpush1.bf16.msra.mxu0 %v4543_v63  ;;  %v2030_v17 = vsel %vm2025_vm9, %v2024_v8, %v6023_v14 }
 0x227   : > { %v2078_v58 = vsel %vm2037_vm11, %v2073_v39, %v6025_v51 }
 0x228   : > { %v1821_v7 = vpop.permute.xlu1 %1820 }
 0x229   : > { %v2036_v4 = vsel %vm2031_vm10, %v2030_v17, %v1821_v7  ;;  %v2001_v60 = vpop.permute.xlu0 %2000 }
 0x22a   : > { %v2083_v42 = vsel %vm2043_vm12, %v2078_v58, %v2001_v60  ;;  %v2042_v30 = vsel %vm2037_vm11, %v2036_v4, %v6027_v43 }
 0x22b   : > { %4527 = vmatprep.subr.msk.mxu0 %vm2095_vm13, %v2083_v42 }
 0x22c   : > { %v1861_v57 = vpop.permute.xlu1 %1860 }
 0x22d   : > { %v2048_v14 = vsel %vm2043_vm12, %v2042_v30, %v1861_v57 }
 0x22e   : > { %4528 = vmatpush1.msk.msra.mxu0 %vm2095_vm13, %v2048_v14 }
 0x22f   : > { %4529 = vmatmul.mubr.msk.f32.vlgmr.msra.gmra.mrb[0].mxu0 %vm2091_vm14, %v2084_v61 }
 0x23a   : > { %v2089_v51 = vpop.permute.xlu0 %2088 }
 0x302   : > { %v2168_v33 = vpop.f32.mrb[0].mxu0 }
 0x303   : > { %v2169_v2 = vadd.f32 %v2168_v33, %v2089_v51  ;;  %v2170_v15 = vpop.f32.mrb[1].mxu0 }
 0x304   : > { %v2171_v43 = vadd.f32 %v2170_v15, %v2089_v51 }
 0x305   : > { %v2173_v45 = vmax.f32 %v2169_v2, 0.0 }
 0x306   : > { %v2174_v26 = vmax.f32 %v2171_v43, 0.0 }
 0x307   : > { %2182 = vrot.lane.b32.xlu0 %v2173_v45, %s4875_s8  ;;  %2176 = vrot.lane.b32.xlu1 %v2173_v45, %s4876_s9 }
 0x30b   : > { %2188 = vrot.lane.b32.xlu0 %v2173_v45, %s4874_s7  ;;  %2179 = vrot.lane.b32.xlu1 %v2173_v45, %s4872_s30 }
 0x30f   : > { %2194 = vrot.lane.b32.xlu0 %v2173_v45, %s4873_s6  ;;  %2185 = vrot.lane.b32.xlu1 %v2173_v45, %s4871_s29 }
 0x313   : > { %2201 = vrot.lane.b32.xlu0 %v2174_v26, %s4872_s30  ;;  %2191 = vrot.lane.b32.xlu1 %v2173_v45, %s4870_s28 }
 0x317   : > { %2207 = vrot.lane.b32.xlu0 %v2174_v26, %s4871_s29  ;;  %2198 = vrot.lane.b32.xlu1 %v2174_v26, %s4876_s9 }
 0x31b   : > { %2213 = vrot.lane.b32.xlu0 %v2174_v26, %s4870_s28  ;;  %2204 = vrot.lane.b32.xlu1 %v2174_v26, %s4875_s8 }
 0x31f   : > { %2210 = vrot.lane.b32.xlu1 %v2174_v26, %s4874_s7 }
 0x323   : > { %2216 = vrot.lane.b32.xlu1 %v2174_v26, %s4873_s6 }
 0x379   : > { %v2183_v46 = vpop.permute.xlu0 %2182  ;;  %v2177_v19 = vpop.permute.xlu1 %2176 }
 0x37a   : > { %v2227_v53 = vcombine.low %v2177_v19, %v2183_v46 }
 0x37c   : > { %v2234_v31 = vrot.slane %v2227_v53, %v4987_v11 }
 0x37d   : > { %v2189_v32 = vpop.permute.xlu0 %2188  ;;  %v2180_v59 = vpop.permute.xlu1 %2179 }
 0x37e   : > { %v2219_v6 = vcombine.low %v2173_v45, %v2180_v59 }
 0x380   : > { %v2226_v10 = vrot.slane %v2219_v6, %v4987_v11 }
 0x381   : > { %v2195_v20 = vpop.permute.xlu0 %2194  ;;  %v2186_v21 = vpop.permute.xlu1 %2185 }
 0x382   : > { %v2243_v54 = vcombine.low %v2189_v32, %v2195_v20  ;;  %v2251_v44 = vcombine.low %v2226_v10, %v2234_v31  ;;  %v2252_v12 = vcombine.high %v2226_v10, %v2234_v31 }
 0x384   : > { %v2250_v25 = vrot.slane %v2243_v54, %v4987_v11  ;;  %v2259_v34 = vrot.slane %v2251_v44, %v5258_v35  ;;  %v2266_v47 = vrot.slane %v2252_v12, %v5258_v35 }
 0x385   : > { %v2202_v38 = vpop.permute.xlu0 %2201  ;;  %v2192_v50 = vpop.permute.xlu1 %2191 }
 0x386   : > { %v2235_v23 = vcombine.low %v2186_v21, %v2192_v50  ;;  %v2287_v37 = vcombine.low %v2174_v26, %v2202_v38 }
 0x388   : > { %v2242_v36 = vrot.slane %v2235_v23, %v4987_v11  ;;  %v2294_v52 = vrot.slane %v2287_v37, %v4987_v11 }
 0x389   : > { %v2199_v49 = vpop.permute.xlu1 %2198  ;;  %v2208_v28 = vpop.permute.xlu0 %2207 }
 0x38a   : > { %v2267_v1 = vcombine.low %v2242_v36, %v2250_v25  ;;  %v2268_v62 = vcombine.high %v2242_v36, %v2250_v25 }
 0x38c   : > { %v2275_v41 = vrot.slane %v2267_v1, %v5258_v35  ;;  %v2282_v48 = vrot.slane %v2268_v62, %v5258_v35 }
 0x38d   : > { %v2205_v40 = vpop.permute.xlu1 %2204  ;;  %v2214_v24 = vpop.permute.xlu0 %2213 }
 0x38e   : > { %v2283_v16 = vcombine.low %v2259_v34, %v2275_v41  ;;  %v2295_v18 = vcombine.low %v2199_v49, %v2205_v40  ;;  %v2284_v27 = vcombine.high %v2259_v34, %v2275_v41  ;;  %v2303_v22 = vcombine.low %v2208_v28, %v2214_v24 }
 0x38f   : > { %v2285_v3 = vcombine.low %v2266_v47, %v2282_v48  ;;  %v2286_v39 = vcombine.high %v2266_v47, %v2282_v48 }
 0x390   : > { %2363 = vrot.lane.b32.xlu0 %v2283_v16, %s4866_s25  ;;  %v2302_v9 = vrot.slane %v2295_v18, %v4987_v11  ;;  %v2310_v63 = vrot.slane %v2303_v22, %v4987_v11 }
 0x391   : > { %v2211_v55 = vpop.permute.xlu1 %2210 }
 0x392   : > { %v2319_v8 = vcombine.low %v2294_v52, %v2302_v9  ;;  %v2320_v60 = vcombine.high %v2294_v52, %v2302_v9 }
 0x394   : > { %2367 = vrot.lane.b32.xlu0 %v2284_v27, %s4866_s25  ;;  %v2327_v7 = vrot.slane %v2319_v8, %v5258_v35  ;;  %v2334_v30 = vrot.slane %v2320_v60, %v5258_v35 }
 0x395   : > { %v2217_v5 = vpop.permute.xlu1 %2216 }
 0x396   : > { %v2311_v0 = vcombine.low %v2211_v55, %v2217_v5 }
 0x398   : > { %v2318_v29 = vrot.slane %v2311_v0, %v4987_v11  ;;  %2371 = vrot.lane.b32.xlu0 %v2285_v3, %s4866_s25 }
 0x39a   : > { %v2335_v56 = vcombine.low %v2310_v63, %v2318_v29  ;;  %v2336_v4 = vcombine.high %v2310_v63, %v2318_v29 }
 0x39c   : > { %v2343_v17 = vrot.slane %v2335_v56, %v5258_v35  ;;  %2375 = vrot.lane.b32.xlu0 %v2286_v39, %s4866_s25  ;;  %v2350_v42 = vrot.slane %v2336_v4, %v5258_v35 }
 0x39e   : > { %v2351_v58 = vcombine.low %v2327_v7, %v2343_v17  ;;  %v2352_v57 = vcombine.high %v2327_v7, %v2343_v17  ;;  %v2353_v61 = vcombine.low %v2334_v30, %v2350_v42  ;;  %v2354_v14 = vcombine.high %v2334_v30, %v2350_v42 }
 0x3a0   : > { %2365 = vrot.lane.b32.xlu1 %v2351_v58, %s4866_s25 }
 0x3a4   : > { %2369 = vrot.lane.b32.xlu1 %v2352_v57, %s4866_s25 }
 0x3a8   : > { %2373 = vrot.lane.b32.xlu1 %v2353_v61, %s4866_s25 }
 0x3ac   : > { %2377 = vrot.lane.b32.xlu1 %v2354_v14, %s4866_s25 }
 0x402   : > { %v2364_v51 = vpop.permute.xlu0 %2363 }
 0x403   : > { %2387 = vst.msk [vmem:[#allocation2 + $0x1] sm:$0xff] %vm302_vm5, %v2364_v51 }
 0x406   : > { %v2368_v33 = vpop.permute.xlu0 %2367 }
 0x407   : > { %2389 = vst.msk [vmem:[#allocation2 + $0x19] sm:$0xff] %vm302_vm5, %v2368_v33 }
 0x40a   : > { %v2372_v2 = vpop.permute.xlu0 %2371  ;;  %v6209_v15 = vld [vmem:[#allocation2] sm:$0xff] }
 0x40b   : > { %2391 = vst.msk [vmem:[#allocation2 + $0x31] sm:$0xff] %vm302_vm5, %v2372_v2  ;;  %2427 = vrot.lane.b32.xlu0 %v6209_v15, %s4867_s26  ;;  %v6221_v46 = vld [vmem:[#allocation2 + $0x1] sm:$0xff] }
 0x40e   : > { %v2376_v45 = vpop.permute.xlu0 %2375  ;;  %v6214_v43 = vld [vmem:[#allocation2 + $0x18] sm:$0xff] }
 0x40f   : > { %2393 = vst.msk [vmem:[#allocation2 + $0x49] sm:$0xff] %vm302_vm5, %v2376_v45  ;;  %2451 = vrot.lane.b32.xlu0 %v6209_v15, %s4868_s27  ;;  %2431 = vrot.lane.b32.xlu1 %v6214_v43, %s4867_s26  ;;  %v6228_v32 = vld [vmem:[#allocation2 + $0x19] sm:$0xff] }
 0x412   : > { %v2366_v26 = vpop.permute.xlu1 %2365  ;;  %v6242_v21 = vld [vmem:[#allocation2 + $0x30] sm:$0xff] }
 0x413   : > { %2388 = vst.msk [vmem:[#allocation2 + $0x9] sm:$0xff] %vm302_vm5, %v2366_v26  ;;  %2483 = vrot.lane.b32.xlu0 %v6221_v46, %s4867_s26  ;;  %2455 = vrot.lane.b32.xlu1 %v6214_v43, %s4868_s27  ;;  %v6255_v10 = vld [vmem:[#allocation2 + $0x31] sm:$0xff] }
 0x416   : > { %v2370_v19 = vpop.permute.xlu1 %2369  ;;  %v6235_v6 = vld [vmem:[#allocation2 + $0x48] sm:$0xff] }
 0x417   : > { %2390 = vst.msk [vmem:[#allocation2 + $0x21] sm:$0xff] %vm302_vm5, %v2370_v19  ;;  %2507 = vrot.lane.b32.xlu0 %v6221_v46, %s4868_s27  ;;  %2487 = vrot.lane.b32.xlu1 %v6228_v32, %s4867_s26  ;;  %v6249_v53 = vld [vmem:[#allocation2 + $0x49] sm:$0xff] }
 0x41a   : > { %v2374_v59 = vpop.permute.xlu1 %2373  ;;  %v6257_v54 = vld [vmem:[#allocation2 + $0x8] sm:$0xff] }
 0x41b   : > { %2392 = vst.msk [vmem:[#allocation2 + $0x39] sm:$0xff] %vm302_vm5, %v2374_v59  ;;  %2439 = vrot.lane.b32.xlu0 %v6235_v6, %s4867_s26  ;;  %2511 = vrot.lane.b32.xlu1 %v6228_v32, %s4868_s27  ;;  %v6267_v38 = vld [vmem:[#allocation2 + $0x9] sm:$0xff] }
 0x41c   : > { %v6279_v31 = vld [vmem:[#allocation2 + $0xa] sm:$0xff]  ;;  %v6285_v23 = vld [vmem:[#allocation2 + $0x2] sm:$0xff] }
 0x41e   : > { %v2378_v20 = vpop.permute.xlu1 %2377  ;;  %v6273_v50 = vld [vmem:[#allocation2 + $0x20] sm:$0xff] }
 0x41f   : > { %2394 = vst.msk [vmem:[#allocation2 + $0x51] sm:$0xff] %vm302_vm5, %v2378_v20  ;;  %2463 = vrot.lane.b32.xlu0 %v6235_v6, %s4868_s27  ;;  %2435 = vrot.lane.b32.xlu1 %v6242_v21, %s4867_s26  ;;  %v6287_v44 = vld [vmem:[#allocation2 + $0x21] sm:$0xff] }
 0x420   : > { %v2413_v34 = vld [vmem:[#allocation2 + $0x1a] sm:$0xff]  ;;  %v6327_v41 = vld [vmem:[#allocation2 + $0x22] sm:$0xff] }
 0x422   : > { %v6293_v25 = vld [vmem:[#allocation2 + $0x38] sm:$0xff] }
 0x423   : > { %2495 = vrot.lane.b32.xlu0 %v6249_v53, %s4867_s26  ;;  %2459 = vrot.lane.b32.xlu1 %v6242_v21, %s4868_s27  ;;  %v6303_v36 = vld [vmem:[#allocation2 + $0x39] sm:$0xff] }
 0x424   : > { %v6315_v1 = vld [vmem:[#allocation2 + $0x3a] sm:$0xff]  ;;  %v6335_v40 = vld [vmem:[#allocation2 + $0x32] sm:$0xff] }
 0x426   : > { %v6309_v49 = vld [vmem:[#allocation2 + $0x50] sm:$0xff] }
 0x427   : > { %2491 = vrot.lane.b32.xlu1 %v6255_v10, %s4867_s26  ;;  %2429 = vrot.lane.b32.xlu0 %v6257_v54, %s4867_s26  ;;  %v6321_v28 = vld [vmem:[#allocation2 + $0x51] sm:$0xff] }
 0x428   : > { %v6341_v62 = vld [vmem:[#allocation2 + $0x52] sm:$0xff]  ;;  %v6347_v16 = vld [vmem:[#allocation2 + $0x4a] sm:$0xff] }
 0x42b   : > { %2515 = vrot.lane.b32.xlu1 %v6255_v10, %s4868_s27  ;;  %2453 = vrot.lane.b32.xlu0 %v6257_v54, %s4868_s27 }
 0x42f   : > { %2519 = vrot.lane.b32.xlu1 %v6249_v53, %s4868_s27  ;;  %2485 = vrot.lane.b32.xlu0 %v6267_v38, %s4867_s26 }
 0x433   : > { %2509 = vrot.lane.b32.xlu0 %v6267_v38, %s4868_s27  ;;  %2433 = vrot.lane.b32.xlu1 %v6273_v50, %s4867_s26 }
 0x437   : > { %2541 = vrot.lane.b32.xlu0 %v6279_v31, %s4867_s26  ;;  %2457 = vrot.lane.b32.xlu1 %v6273_v50, %s4868_s27 }
 0x43b   : > { %2539 = vrot.lane.b32.xlu0 %v6285_v23, %s4867_s26  ;;  %2489 = vrot.lane.b32.xlu1 %v6287_v44, %s4867_s26 }
 0x43f   : > { %2513 = vrot.lane.b32.xlu1 %v6287_v44, %s4868_s27  ;;  %2437 = vrot.lane.b32.xlu0 %v6293_v25, %s4867_s26 }
 0x443   : > { %2565 = vrot.lane.b32.xlu1 %v6279_v31, %s4868_s27  ;;  %2461 = vrot.lane.b32.xlu0 %v6293_v25, %s4868_s27 }
 0x447   : > { %2563 = vrot.lane.b32.xlu1 %v6285_v23, %s4868_s27  ;;  %2493 = vrot.lane.b32.xlu0 %v6303_v36, %s4867_s26 }
 0x44b   : > { %2517 = vrot.lane.b32.xlu0 %v6303_v36, %s4868_s27  ;;  %2441 = vrot.lane.b32.xlu1 %v6309_v49, %s4867_s26 }
 0x44f   : > { %2549 = vrot.lane.b32.xlu0 %v6315_v1, %s4867_s26  ;;  %2465 = vrot.lane.b32.xlu1 %v6309_v49, %s4868_s27 }
 0x453   : > { %2573 = vrot.lane.b32.xlu0 %v6315_v1, %s4868_s27  ;;  %2497 = vrot.lane.b32.xlu1 %v6321_v28, %s4867_s26 }
 0x457   : > { %2543 = vrot.lane.b32.xlu0 %v2413_v34, %s4867_s26  ;;  %2545 = vrot.lane.b32.xlu1 %v6327_v41, %s4867_s26 }
 0x45b   : > { %2567 = vrot.lane.b32.xlu0 %v2413_v34, %s4868_s27  ;;  %2569 = vrot.lane.b32.xlu1 %v6327_v41, %s4868_s27 }
 0x45f   : > { %2521 = vrot.lane.b32.xlu0 %v6321_v28, %s4868_s27  ;;  %2547 = vrot.lane.b32.xlu1 %v6335_v40, %s4867_s26 }
 0x463   : > { %2577 = vrot.lane.b32.xlu0 %v6341_v62, %s4868_s27  ;;  %2571 = vrot.lane.b32.xlu1 %v6335_v40, %s4868_s27 }
 0x467   : > { %2551 = vrot.lane.b32.xlu0 %v6347_v16, %s4867_s26  ;;  %2553 = vrot.lane.b32.xlu1 %v6341_v62, %s4867_s26 }
 0x46b   : > { %2575 = vrot.lane.b32.xlu1 %v6347_v16, %s4868_s27 }
 0x47d   : > { %v6355_v12 = vpop.permute.xlu0 %2427 }
 0x481   : > { %v6357_v18 = vpop.permute.xlu0 %2451  ;;  %v6359_v24 = vpop.permute.xlu1 %2431 }
 0x485   : > { %v6361_v55 = vpop.permute.xlu0 %2483  ;;  %v6363_v37 = vpop.permute.xlu1 %2455 }
 0x489   : > { %v6365_v48 = vpop.permute.xlu0 %2507  ;;  %v2488_v27 = vpop.permute.xlu1 %2487 }
 0x48a   : > { %v2771_v47 = vcombine.low %v2488_v27, %v2413_v34  ;;  %v2772_v22 = vcombine.high %v2488_v27, %v2413_v34 }
 0x48c   : > { %v6370_v3 = vrot.slane %v2771_v47, %v4987_v11  ;;  %v6373_v63 = vrot.slane %v2772_v22, %v4987_v11 }
 0x48d   : > { %v2440_v9 = vpop.permute.xlu0 %2439  ;;  %v2512_v5 = vpop.permute.xlu1 %2511 }
 0x48e   : > { %v2755_v52 = vcombine.low %v6228_v32, %v2512_v5  ;;  %v2756_v0 = vcombine.high %v6228_v32, %v2512_v5  ;;  %v3027_v60 = vcombine.low %v2440_v9, %v6249_v53  ;;  %v3028_v42 = vcombine.high %v2440_v9, %v6249_v53 }
 0x490   : > { %v6376_v8 = vrot.slane %v2755_v52, %v4987_v11  ;;  %v6379_v29 = vrot.slane %v2756_v0, %v4987_v11  ;;  %v6394_v51 = vrot.slane %v3027_v60, %v4987_v11  ;;  %v6397_v33 = vrot.slane %v3028_v42, %v4987_v11 }
 0x491   : > { %v2464_v56 = vpop.permute.xlu0 %2463  ;;  %v6381_v39 = vpop.permute.xlu1 %2435  ;;  %v2603_v42 = vcombine.low %v6355_v12, %v6221_v46 }
 0x492   : > { %v2819_v7 = vcombine.low %v6376_v8, %v6370_v3 }
 0x495   : > { %v2496_v57 = vpop.permute.xlu0 %2495  ;;  %v2460_v30 = vpop.permute.xlu1 %2459 }
 0x496   : > { %v3043_v61 = vcombine.low %v2464_v56, %v2496_v57  ;;  %v3044_v14 = vcombine.high %v2464_v56, %v2496_v57 }
 0x498   : > { %v6400_v2 = vrot.slane %v3043_v61, %v4987_v11  ;;  %v6403_v45 = vrot.slane %v3044_v14, %v4987_v11  ;;  %v2587_v14 = vcombine.low %v6209_v15, %v6357_v18 }
 0x499   : > { %v2430_v26 = vpop.permute.xlu0 %2429  ;;  %v2492_v19 = vpop.permute.xlu1 %2491 }
 0x49a   : > { %v3215_v34 = vcombine.low %v2430_v26, %v6267_v38  ;;  %v3216_v27 = vcombine.high %v2430_v26, %v6267_v38  ;;  %v2891_v47 = vcombine.low %v2460_v30, %v2492_v19  ;;  %v2892_v22 = vcombine.high %v2460_v30, %v2492_v19 }
 0x49b   : > { %v2588_v26 = vcombine.high %v6209_v15, %v6357_v18  ;;  %v2611_v18 = vrot.slane %v2603_v42, %v4987_v11  ;;  %v2620_v42 = vcombine.high %v6361_v55, %v6285_v23 }
 0x49c   : > { %v6422_v57 = vrot.slane %v3215_v34, %v4987_v11  ;;  %v6425_v38 = vrot.slane %v3216_v27, %v4987_v11  ;;  %v6444_v19 = vrot.slane %v2891_v47, %v4987_v11  ;;  %v6447_v34 = vrot.slane %v2892_v22, %v4987_v11 }
 0x49d   : > { %v2454_v9 = vpop.permute.xlu0 %2453  ;;  %v2516_v5 = vpop.permute.xlu1 %2515  ;;  %v2602_v15 = vrot.slane %v2588_v26, %v4987_v11  ;;  %v2619_v26 = vcombine.low %v6361_v55, %v6285_v23  ;;  %v2740_v23 = vcombine.high %v6214_v43, %v6363_v37 }
 0x49e   : > { %v3199_v52 = vcombine.low %v6257_v54, %v2454_v9  ;;  %v3200_v0 = vcombine.high %v6257_v54, %v2454_v9  ;;  %v2907_v56 = vcombine.low %v6255_v10, %v2516_v5  ;;  %v2908_v60 = vcombine.high %v6255_v10, %v2516_v5 }
 0x4a0   : > { %v6428_v30 = vrot.slane %v3199_v52, %v4987_v11  ;;  %v6431_v61 = vrot.slane %v3200_v0, %v4987_v11  ;;  %v6434_v54 = vrot.slane %v2907_v56, %v4987_v11  ;;  %v6437_v10 = vrot.slane %v2908_v60, %v4987_v11 }
 0x4a1   : > { %v2486_v27 = vpop.permute.xlu0 %2485  ;;  %v6449_v9 = vpop.permute.xlu1 %2519  ;;  %v2604_v60 = vcombine.high %v6355_v12, %v6221_v46  ;;  %v2595_v0 = vrot.slane %v2587_v14, %v4987_v11 }
 0x4a2   : > { %v3263_v5 = vcombine.low %v6428_v30, %v6422_v57  ;;  %v3231_v20 = vcombine.low %v2486_v27, %v6279_v31  ;;  %v3232_v22 = vcombine.high %v2486_v27, %v6279_v31 }
 0x4a3   : > { %v2618_v47 = vrot.slane %v2604_v60, %v4987_v11  ;;  %v2651_v59 = vcombine.low %v2595_v0, %v2611_v18  ;;  %v2652_v46 = vcombine.high %v2595_v0, %v2611_v18  ;;  %v2739_v60 = vcombine.low %v6214_v43, %v6363_v37 }
 0x4a4   : > { %v6486_v31 = vrot.slane %v3231_v20, %v4987_v11  ;;  %v6489_v27 = vrot.slane %v3232_v22, %v4987_v11  ;;  %v6520_v37 = vrot.slane %v2619_v26, %v4987_v11  ;;  %v6530_v17 = vrot.slane %v3263_v5, %v5258_v35 }
 0x4a5   : > { %v2510_v52 = vpop.permute.xlu0 %2509  ;;  %v6470_v53 = vpop.permute.xlu1 %2433  ;;  %v2667_v12 = vcombine.low %v2602_v15, %v2618_v47  ;;  %v2668_v4 = vcombine.high %v2602_v15, %v2618_v47  ;;  %v6498_v15 = vrot.slane %v2651_v59, %v5258_v35  ;;  %v6505_v20 = vrot.slane %v2652_v46, %v5258_v35 }
 0x4a6   : > { %v6524_v46 = vrot.slane %v2620_v42, %v4987_v11  ;;  %7818 = vst [vmem:[#allocation36_spill] sm:$0xff] %v6530_v17  ;;  %v6542_v26 = vrot.slane %v2819_v7, %v5258_v35  ;;  %v7821_v42 = vcombine.high %v6376_v8, %v6370_v3  ;;  %v7824_v7 = vcombine.high %v6379_v29, %v6373_v63 }
 0x4a7   : > { %7815 = vst [vmem:[#allocation29_spill] sm:$0xff] %v6498_v15  ;;  %v6514_v59 = vrot.slane %v2667_v12, %v5258_v35  ;;  %v6517_v43 = vrot.slane %v2668_v4, %v5258_v35  ;;  %v6536_v4 = vrot.slane %v2740_v23, %v4987_v11  ;;  %v7822_v23 = vcombine.low %v6379_v29, %v6373_v63 }
 0x4a8   : > { %7820 = vst [vmem:[#allocation22_spill] sm:$0xff] %v6542_v26 }
 0x4a9   : > { %v2542_v56 = vpop.permute.xlu0 %2541  ;;  %v6477_v32 = vpop.permute.xlu1 %2457  ;;  %7816 = vst [vmem:[#allocation11_spill] sm:$0xff] %v6514_v59  ;;  %7817 = vst [vmem:[#allocation35_spill] sm:$0xff] %v6517_v43  ;;  %v6559_v13 = vrot.slane %v7822_v23, %v5258_v35  ;;  %v6565_v43 = vrot.slane %v7824_v7, %v5258_v35  ;;  %v7827_v23 = vcombine.high %v6394_v51, %v6400_v2 }
 0x4aa   : > { %v3247_v14 = vcombine.low %v2510_v52, %v2542_v56  ;;  %v3248_v58 = vcombine.high %v2510_v52, %v2542_v56  ;;  %v7829_v7 = vcombine.low %v6397_v33, %v6403_v45 }
 0x4ab   : > { %7823 = vst [vmem:[#allocation27_spill] sm:$0xff] %v6559_v13  ;;  %7825 = vst [vmem:[#allocation34_spill] sm:$0xff] %v6565_v43  ;;  %v6580_v13 = vrot.slane %v7827_v23, %v5258_v35  ;;  %v7833_v23 = vcombine.high %v6428_v30, %v6422_v57  ;;  %v7837_v57 = vcombine.high %v6431_v61, %v6425_v38 }
 0x4ac   : > { %v6492_v0 = vrot.slane %v3247_v14, %v4987_v11  ;;  %v6495_v52 = vrot.slane %v3248_v58, %v4987_v11  ;;  %v6527_v14 = vrot.slane %v2739_v60, %v4987_v11  ;;  %v6548_v60 = vrot.slane %v7821_v42, %v5258_v35 }
 0x4ad   : > { %v2540_v55 = vpop.permute.xlu0 %2539  ;;  %v6502_v18 = vpop.permute.xlu1 %2489  ;;  %7828 = vst [vmem:[#allocation32_spill] sm:$0xff] %v6580_v13  ;;  %v6590_v3 = vrot.slane %v7829_v7, %v5258_v35  ;;  %v6606_v13 = vrot.slane %v7833_v23, %v5258_v35  ;;  %v6629_v30 = vrot.slane %v7837_v57, %v5258_v35  ;;  %v7842_v23 = vcombine.low %v6447_v34, %v6437_v10 }
 0x4ae   : > { %v3295_v47 = vcombine.low %v6486_v31, %v6492_v0  ;;  %v3311_v22 = vcombine.low %v6489_v27, %v6495_v52  ;;  %v2635_v56 = vcombine.low %v6365_v48, %v2540_v55  ;;  %v3383_v29 = vcombine.low %v6502_v18, %v6327_v41 }
 0x4af   : > { %7830 = vst [vmem:[#allocation33_spill] sm:$0xff] %v6590_v3  ;;  %7834 = vst [vmem:[#allocation44_spill] sm:$0xff] %v6606_v13 }
 0x4b0   : > { %v6533_v12 = vrot.slane %v3295_v47, %v5258_v35  ;;  %v6551_v5 = vrot.slane %v2635_v56, %v4987_v11  ;;  %v7826_v56 = vcombine.low %v6394_v51, %v6400_v2  ;;  %v3351_v51 = vcombine.low %v6273_v50, %v6477_v32  ;;  %7838 = vst [vmem:[#allocation59_spill] sm:$0xff] %v6629_v30 }
 0x4b1   : > { %v6553_v47 = vpop.permute.xlu0 %2437  ;;  %v2514_v58 = vpop.permute.xlu1 %2513  ;;  %v3352_v2 = vcombine.high %v6273_v50, %v6477_v32  ;;  %v6609_v7 = vrot.slane %v3311_v22, %v5258_v35  ;;  %v7836_v50 = vcombine.low %v6431_v61, %v6425_v38  ;;  %v7839_v22 = vcombine.low %v6444_v19, %v6434_v54 }
 0x4b2   : > { %7819 = vst [vmem:[#allocation38_spill] sm:$0xff] %v6533_v12  ;;  %v3367_v8 = vcombine.low %v6287_v44, %v2514_v58  ;;  %v6574_v42 = vrot.slane %v7826_v56, %v5258_v35  ;;  %v2683_v63 = vcombine.low %v6520_v37, %v6551_v5  ;;  %v7831_v56 = vcombine.high %v6397_v33, %v6403_v45 }
 0x4b3   : > { %v6623_v32 = vrot.slane %v7836_v50, %v5258_v35  ;;  %v3391_v50 = vrot.slane %v3383_v29, %v4987_v11  ;;  %v3296_v38 = vcombine.high %v6486_v31, %v6492_v0  ;;  %v6646_v61 = vrot.slane %v3351_v51, %v4987_v11 }
 0x4b4   : > { %v6596_v43 = vrot.slane %v7831_v56, %v5258_v35  ;;  %v6612_v3 = vrot.slane %v2683_v63, %v5258_v35  ;;  %v6615_v33 = vrot.slane %v3367_v8, %v4987_v11  ;;  %v6635_v8 = vrot.slane %v7839_v22, %v5258_v35 }
 0x4b5   : > { %v6617_v45 = vpop.permute.xlu0 %2461  ;;  %v2566_v56 = vpop.permute.xlu1 %2565  ;;  %v2636_v63 = vcombine.high %v6365_v48, %v2540_v55  ;;  %v6649_v57 = vrot.slane %v3352_v2, %v4987_v11  ;;  %v3368_v48 = vcombine.high %v6287_v44, %v2514_v58  ;;  %v3384_v44 = vcombine.high %v6502_v18, %v6327_v41 }
 0x4b6   : > { %7832 = vst [vmem:[#allocation31_spill] sm:$0xff] %v6596_v43  ;;  %7835 = vst [vmem:[#allocation39_spill] sm:$0xff] %v6612_v3  ;;  %v3335_v43 = vcombine.low %v2566_v56, %v6470_v53  ;;  %v3336_v59 = vcombine.high %v2566_v56, %v6470_v53  ;;  %v3431_v55 = vcombine.low %v6615_v33, %v3391_v50 }
 0x4b7   : > { %7840 = vst [vmem:[#allocation65_spill] sm:$0xff] %v6635_v8  ;;  %v2650_v0 = vrot.slane %v2636_v63, %v4987_v11  ;;  %v7841_v41 = vcombine.high %v6444_v19, %v6434_v54  ;;  %v7844_v63 = vcombine.high %v6447_v34, %v6437_v10  ;;  %v6703_v54 = vrot.slane %v3296_v38, %v5258_v35 }
 0x4b8   : > { %v6654_v22 = vrot.slane %v3335_v43, %v4987_v11  ;;  %v6657_v29 = vrot.slane %v3336_v59, %v4987_v11  ;;  %v2684_v59 = vcombine.high %v6520_v37, %v6551_v5  ;;  %v6690_v37 = vrot.slane %v7842_v23, %v5258_v35 }
 0x4b9   : > { %v6659_v53 = vpop.permute.xlu0 %2493  ;;  %v6661_v56 = vpop.permute.xlu1 %2563  ;;  %v6684_v18 = vrot.slane %v7841_v41, %v5258_v35  ;;  %v3382_v5 = vrot.slane %v3368_v48, %v4987_v11  ;;  %v6700_v2 = vrot.slane %v7844_v63, %v5258_v35  ;;  %7846 = vst [vmem:[#allocation57_spill] sm:$0xff] %v6703_v54  ;;  %v6706_v19 = vrot.slane %v3431_v55, %v5258_v35 }
 0x4ba   : > { %v3504_v58 = vcombine.high %v6617_v45, %v6659_v53  ;;  %v2723_v43 = vcombine.low %v6661_v56, %v6359_v24  ;;  %v3399_v51 = vcombine.low %v6654_v22, %v6646_v61  ;;  %7843 = vst [vmem:[#allocation64_spill] sm:$0xff] %v6690_v37  ;;  %v2700_v37 = vcombine.high %v6524_v46, %v2650_v0 }
 0x4bb   : > { %7845 = vst [vmem:[#allocation58_spill] sm:$0xff] %v6700_v2  ;;  %7847 = vst [vmem:[#allocation53_spill] sm:$0xff] %v6706_v19  ;;  %v3398_v10 = vrot.slane %v3384_v44, %v4987_v11  ;;  %v7849_v38 = vcombine.high %v6489_v27, %v6495_v52 }
 0x4bc   : > { %v6694_v31 = vrot.slane %v2723_v43, %v4987_v11  ;;  %v6709_v23 = vrot.slane %v3399_v51, %v5258_v35  ;;  %v2699_v43 = vcombine.low %v6524_v46, %v2650_v0  ;;  %v6725_v51 = vrot.slane %v2684_v59, %v5258_v35 }
 0x4bd   : > { %v6711_v41 = vpop.permute.xlu0 %2517  ;;  %v2442_v48 = vpop.permute.xlu1 %2441  ;;  %v6722_v55 = vrot.slane %v7849_v38, %v5258_v35  ;;  %v3432_v0 = vcombine.high %v6615_v33, %v3391_v50  ;;  %v3447_v44 = vcombine.low %v3382_v5, %v3398_v10  ;;  %v3448_v2 = vcombine.high %v3382_v5, %v3398_v10 }
 0x4be   : > { %7848 = vst [vmem:[#allocation56_spill] sm:$0xff] %v6709_v23  ;;  %v2787_v34 = vcombine.low %v6694_v31, %v6527_v14  ;;  %v3520_v46 = vcombine.high %v6303_v36, %v6711_v41  ;;  %v6736_v27 = vrot.slane %v3504_v58, %v4987_v11  ;;  %v6746_v33 = vrot.slane %v2699_v43, %v5258_v35 }
 0x4bf   : > { %7850 = vst [vmem:[#allocation52_spill] sm:$0xff] %v6722_v55  ;;  %v6749_v50 = vrot.slane %v2700_v37, %v5258_v35  ;;  %v6762_v55 = vrot.slane %v3432_v0, %v5258_v35  ;;  %v6765_v37 = vrot.slane %v3447_v44, %v5258_v35  ;;  %v6768_v58 = vrot.slane %v3448_v2, %v5258_v35 }
 0x4c0   : > { %v6733_v30 = vrot.slane %v2787_v34, %v5258_v35  ;;  %v6739_v52 = vrot.slane %v3520_v46, %v4987_v11  ;;  %v3503_v10 = vcombine.low %v6617_v45, %v6659_v53  ;;  %v2724_v34 = vcombine.high %v6661_v56, %v6359_v24 }
 0x4c1   : > { %v2550_v59 = vpop.permute.xlu0 %2549  ;;  %v2466_v38 = vpop.permute.xlu1 %2465  ;;  %v3640_v0 = vcombine.high %v2442_v48, %v6321_v28  ;;  %v3400_v5 = vcombine.high %v6654_v22, %v6646_v61  ;;  %v3519_v45 = vcombine.low %v6303_v36, %v6711_v41  ;;  %v2788_v22 = vcombine.high %v6694_v31, %v6527_v14 }
 0x4c2   : > { %7851 = vst [vmem:[#allocation51_spill] sm:$0xff] %v6733_v30  ;;  %v3623_v46 = vcombine.low %v2550_v59, %v6309_v49  ;;  %v3624_v43 = vcombine.high %v2550_v59, %v6309_v49  ;;  %v3639_v49 = vcombine.low %v2442_v48, %v6321_v28  ;;  %v2738_v36 = vrot.slane %v2724_v34, %v4987_v11 }
 0x4c3   : > { %v6809_v48 = vrot.slane %v3640_v0, %v4987_v11  ;;  %v6821_v31 = vrot.slane %v3400_v5, %v5258_v35  ;;  %v7858_v5 = vcombine.high %v6657_v29, %v6649_v57 }
 0x4c4   : > { %v6785_v24 = vrot.slane %v3623_v46, %v4987_v11  ;;  %v6788_v53 = vrot.slane %v3624_v43, %v4987_v11  ;;  %v6806_v41 = vrot.slane %v3639_v49, %v4987_v11  ;;  %v6812_v46 = vrot.slane %v3503_v10, %v4987_v11 }
 0x4c5   : > { %v2574_v59 = vpop.permute.xlu0 %2573  ;;  %v2498_v63 = vpop.permute.xlu1 %2497  ;;  %v7857_v49 = vcombine.low %v6657_v29, %v6649_v57  ;;  %v6848_v10 = vrot.slane %v2788_v22, %v5258_v35  ;;  %v2803_v43 = vcombine.low %v2738_v36, %v6536_v4 }
 0x4c6   : > { %v3607_v44 = vcombine.low %v6315_v1, %v2574_v59  ;;  %v3608_v2 = vcombine.high %v6315_v1, %v2574_v59  ;;  %v3655_v54 = vcombine.low %v2466_v38, %v2498_v63  ;;  %v3656_v13 = vcombine.high %v2466_v38, %v2498_v63  ;;  %7852 = vst [vmem:[#allocation47_spill] sm:$0xff] %v6785_v24 }
 0x4c7   : > { %7855 = vst [vmem:[#allocation15_spill] sm:$0xff] %v6806_v41  ;;  %7856 = vst [vmem:[#allocation14_spill] sm:$0xff] %v6812_v46  ;;  %v6833_v0 = vrot.slane %v7857_v49, %v5258_v35  ;;  %v6839_v59 = vrot.slane %v7858_v5, %v5258_v35  ;;  %v2804_v49 = vcombine.high %v2738_v36, %v6536_v4 }
 0x4c8   : > { %v6791_v28 = vrot.slane %v3607_v44, %v4987_v11  ;;  %v6794_v56 = vrot.slane %v3608_v2, %v4987_v11  ;;  %v6797_v1 = vrot.slane %v3655_v54, %v4987_v11  ;;  %v6800_v61 = vrot.slane %v3656_v13, %v4987_v11 }
 0x4c9   : > { %v2544_v63 = vpop.permute.xlu0 %2543  ;;  %v2546_v38 = vpop.permute.xlu1 %2545  ;;  %v6842_v44 = vrot.slane %v3519_v45, %v4987_v11 }
 0x4ca   : > { %7853 = vst [vmem:[#allocation50_spill] sm:$0xff] %v6791_v28  ;;  %7854 = vst [vmem:[#allocation46_spill] sm:$0xff] %v6797_v1  ;;  %v3671_v13 = vcombine.low %v6791_v28, %v6785_v24  ;;  %v3703_v34 = vcombine.low %v6806_v41, %v6797_v1  ;;  %v2859_v29 = vcombine.low %v2544_v63, %v6242_v21 }
 0x4cb   : > { %7859 = vst [vmem:[#allocation45_spill] sm:$0xff] %v6842_v44  ;;  %v2860_v45 = vcombine.high %v2544_v63, %v6242_v21  ;;  %v3471_v5 = vcombine.low %v2546_v38, %v6293_v25  ;;  %v3472_v63 = vcombine.high %v2546_v38, %v6293_v25 }
 0x4cc   : > { %v6845_v2 = vrot.slane %v3671_v13, %v5258_v35  ;;  %v6853_v14 = vrot.slane %v3703_v34, %v5258_v35  ;;  %v3464_v13 = vcombine.high %v6709_v23, %v6706_v19  ;;  %v3567_v34 = vcombine.low %v6812_v46, %v6842_v44 }
 0x4cd   : > { %v2568_v54 = vpop.permute.xlu0 %2567  ;;  %v2570_v57 = vpop.permute.xlu1 %2569  ;;  %v2867_v1 = vrot.slane %v2859_v29, %v4987_v11  ;;  %v6869_v21 = vrot.slane %v2860_v45, %v4987_v11  ;;  %v6883_v29 = vrot.slane %v2803_v43, %v5258_v35  ;;  %v6886_v45 = vrot.slane %v2804_v49, %v5258_v35 }
 0x4ce   : > { %7860 = vst [vmem:[#allocation37_spill] sm:$0xff] %v6845_v2  ;;  %7861 = vst [vmem:[#allocation48_spill] sm:$0xff] %v6853_v14  ;;  %v2875_v41 = vcombine.low %v2568_v54, %v6381_v39  ;;  %v2876_v4 = vcombine.high %v2568_v54, %v6381_v39  ;;  %v3487_v36 = vcombine.low %v2570_v57, %v6553_v47 }
 0x4cf   : > { %v3488_v23 = vcombine.high %v2570_v57, %v6553_v47  ;;  %v6889_v25 = vrot.slane %v3471_v5, %v4987_v11  ;;  %v7862_v43 = vcombine.high %v6530_v17, %v6533_v12  ;;  %v6903_v49 = vrot.slane %v3472_v63, %v4987_v11 }
 0x4d0   : > { %v2883_v19 = vrot.slane %v2875_v41, %v4987_v11  ;;  %v6874_v22 = vrot.slane %v2876_v4, %v4987_v11  ;;  %v6878_v39 = vrot.slane %v3487_v36, %v4987_v11  ;;  %v3467_v41 = vcombine.low %v6833_v0, %v6765_v37 }
 0x4d1   : > { %v2522_v54 = vpop.permute.xlu0 %2521  ;;  %v6880_v2 = vpop.permute.xlu1 %2547  ;;  %v6900_v4 = vpack.i.bf16 %v3464_v13, %v7862_v43  ;;  %v6906_v5 = vrot.slane %v3488_v23, %v4987_v11  ;;  %v2852_v14 = vcombine.high %v6733_v30, %v6542_v26  ;;  %v6913_v28 = vrot.slane %v3567_v34, %v5258_v35 }
 0x4d2   : > { %v2923_v38 = vcombine.low %v2867_v1, %v2883_v19  ;;  %v2939_v47 = vcombine.low %v6869_v21, %v6874_v22  ;;  %v3535_v36 = vcombine.low %v6889_v25, %v6878_v39  ;;  %v7864_v13 = vcombine.low %v6736_v27, %v6739_v52 }
 0x4d3   : > { %7863 = vst [vmem:[#allocation55_spill] sm:$0xff] %v6913_v28  ;;  %v7865_v23 = vcombine.high %v6736_v27, %v6739_v52  ;;  %v3551_v30 = vcombine.low %v6903_v49, %v6906_v5  ;;  %v3011_v17 = vcombine.low %v6880_v2, %v6235_v6  ;;  %v7868_v27 = vcombine.low %v6794_v56, %v6788_v53 }
 0x4d4   : > { %v6919_v43 = vrot.slane %v7864_v13, %v5258_v35  ;;  %v6928_v57 = vrot.slane %v2923_v38, %v5258_v35  ;;  %v6931_v34 = vrot.slane %v3535_v36, %v5258_v35  ;;  %v3552_v13 = vcombine.high %v6903_v49, %v6906_v5 }
 0x4d5   : > { %v6925_v63 = vrot.slane %v7865_v23, %v5258_v35  ;;  %v2578_v12 = vpop.permute.xlu0 %2577  ;;  %v2572_v26 = vpop.permute.xlu1 %2571  ;;  %v2924_v23 = vcombine.high %v2867_v1, %v2883_v19  ;;  %v7867_v5 = vcombine.high %v6498_v15, %v6612_v3  ;;  %v6959_v52 = vrot.slane %v7868_v27, %v5258_v35 }
 0x4d6   : > { %7866 = vst [vmem:[#allocation16_spill] sm:$0xff] %v6931_v34  ;;  %v2995_v49 = vcombine.low %v6335_v40, %v2572_v26  ;;  %v7869_v19 = vcombine.high %v6794_v56, %v6788_v53  ;;  %v3759_v24 = vcombine.low %v6341_v62, %v2578_v12  ;;  %v7872_v27 = vcombine.low %v6809_v48, %v6800_v61 }
 0x4d7   : > { %v6953_v46 = vpack.i.bf16 %v2852_v14, %v7867_v5  ;;  %v7870_v14 = vcombine.low %v6623_v32, %v6609_v7  ;;  %v3019_v15 = vrot.slane %v3011_v17, %v4987_v11  ;;  %v6990_v34 = vrot.slane %v2924_v23, %v5258_v35 }
 0x4d8   : > { %v6965_v1 = vrot.slane %v7869_v19, %v5258_v35  ;;  %v6977_v3 = vrot.slane %v7872_v27, %v5258_v35  ;;  %v3003_v53 = vrot.slane %v2995_v49, %v4987_v11  ;;  %v7873_v19 = vcombine.high %v6809_v48, %v6800_v61 }
 0x4d9   : > { %v2552_v38 = vpop.permute.xlu0 %2551  ;;  %v2554_v36 = vpop.permute.xlu1 %2553  ;;  %v6971_v5 = vpack.i.bf16 %v3467_v41, %v7870_v14  ;;  %v3760_v41 = vcombine.high %v6341_v62, %v2578_v12  ;;  %v2996_v14 = vcombine.high %v6335_v40, %v2572_v26  ;;  %v3012_v17 = vcombine.high %v6880_v2, %v6235_v6 }
 0x4da   : > { %v3743_v56 = vcombine.low %v2522_v54, %v2554_v36  ;;  %v6985_v44 = vrot.slane %v7873_v19, %v5258_v35  ;;  %v3059_v27 = vcombine.low %v3003_v53, %v3019_v15  ;;  %v3131_v49 = vcombine.low %v6449_v9, %v2552_v38 }
 0x4db   : > { %7871 = vst [vmem:[#allocation13_spill] sm:$0xff] %v6971_v5  ;;  %v3744_v5 = vcombine.high %v2522_v54, %v2554_v36  ;;  %v6996_v28 = vrot.slane %v3759_v24, %v4987_v11  ;;  %v3132_v61 = vcombine.high %v6449_v9, %v2552_v38  ;;  %v7004_v12 = vrot.slane %v2939_v47, %v5258_v35 }
 0x4dc   : > { %v7000_v48 = vrot.slane %v3743_v56, %v4987_v11  ;;  %v7007_v26 = vrot.slane %v3059_v27, %v5258_v35  ;;  %v3774_v24 = vrot.slane %v3760_v41, %v4987_v11  ;;  %v3010_v9 = vrot.slane %v2996_v14, %v4987_v11 }
 0x4dd   : > { %v3758_v40 = vrot.slane %v3744_v5, %v4987_v11  ;;  %v2576_v62 = vpop.permute.xlu1 %2575  ;;  %v3060_v54 = vcombine.high %v3003_v53, %v3019_v15  ;;  %v3026_v36 = vrot.slane %v3012_v17, %v4987_v11  ;;  %v7019_v23 = vrot.slane %v3131_v49, %v4987_v11 }
 0x4de   : > { %v3147_v6 = vcombine.low %v6347_v16, %v2576_v62  ;;  %v3148_v2 = vcombine.high %v6347_v16, %v2576_v62  ;;  %v3776_v38 = vcombine.high %v7000_v48, %v6996_v28  ;;  %v3146_v16 = vrot.slane %v3132_v61, %v4987_v11 }
 0x4df   : > { %v3791_v56 = vcombine.low %v3758_v40, %v3774_v24  ;;  %v7875_v53 = vcombine.high %v6869_v21, %v6874_v22  ;;  %v7036_v14 = vrot.slane %v3551_v30, %v5258_v35  ;;  %v3074_v49 = vrot.slane %v3060_v54, %v5258_v35  ;;  %v7876_v30 = vld [vmem:[#allocation11_spill] sm:$0xff] }
 0x4e0   : > { %v7022_v5 = vrot.slane %v3147_v6, %v4987_v11  ;;  %v3162_v19 = vrot.slane %v3148_v2, %v4987_v11  ;;  %v7027_v15 = vrot.slane %v3776_v38, %v5258_v35  ;;  %v7043_v11 = vrot.slane %v3552_v13, %v5258_v35  ;;  %v7877_v6 = vld [vmem:[#allocation27_spill] sm:$0xff] }
 0x4e1   : > { %v7033_v41 = vrot.slane %v7875_v53, %v5258_v35  ;;  %v3075_v61 = vcombine.low %v3010_v9, %v3026_v36  ;;  %v2719_v21 = vcombine.low %v7876_v30, %v6746_v33  ;;  %v2855_v2 = vcombine.low %v6883_v29, %v7877_v6 }
 0x4e2   : > { %7874 = vst [vmem:[#allocation49_spill] sm:$0xff] %v7027_v15  ;;  %v3164_v27 = vcombine.high %v7019_v23, %v7022_v5  ;;  %v3179_v62 = vcombine.low %v3146_v16, %v3162_v19  ;;  %3984 = vrot.lane.b32.xlu0 %v7027_v15, %s4870_s28  ;;  %v2988_v13 = vcombine.high %v6928_v57, %v6635_v8 }
 0x4e3   : > { %v3076_v38 = vcombine.high %v3010_v9, %v3026_v36  ;;  %v3792_v53 = vcombine.high %v3758_v40, %v3774_v24  ;;  %v7058_v54 = vrot.slane %v3791_v56, %v5258_v35  ;;  %v3124_v47 = vcombine.high %v7007_v26, %v6574_v42  ;;  %v7880_v56 = vld [vmem:[#allocation59_spill] sm:$0xff] }
 0x4e4   : > { %v7049_v22 = vrot.slane %v3164_v27, %v5258_v35  ;;  %v3180_v17 = vcombine.high %v3146_v16, %v3162_v19  ;;  %v7064_v27 = vpack.i.bf16 %v2855_v2, %v2719_v21  ;;  %v3332_v15 = vcombine.high %v6623_v32, %v6609_v7  ;;  %v7878_v32 = vld [vmem:[#allocation32_spill] sm:$0xff] }
 0x4e5   : > { %v3468_v8 = vcombine.high %v6833_v0, %v6765_v37  ;;  %v7073_v40 = vrot.slane %v3179_v62, %v5258_v35  ;;  %v7075_v24 = vpack.i.bf16 %v3124_v47, %v2988_v13  ;;  %v2720_v9 = vcombine.high %v7876_v30, %v6746_v33  ;;  %v7879_v0 = vld [vmem:[#allocation52_spill] sm:$0xff] }
 0x4e6   : > { %3844 = vrot.lane.b32.xlu1 %v7049_v22, %s4870_s28  ;;  %4024 = vrot.lane.b32.xlu0 %v7058_v54, %s4871_s29  ;;  %v2856_v36 = vcombine.high %v6883_v29, %v7877_v6  ;;  %v2989_v7 = vcombine.low %v6990_v34, %v6684_v18  ;;  %v3125_v37 = vcombine.low %v3074_v49, %v7878_v32  ;;  %v7882_v6 = vld [vmem:[#allocation34_spill] sm:$0xff] }
 0x4e7   : > { %v7081_v16 = vpack.i.bf16 %v3468_v8, %v3332_v15  ;;  %v3333_v19 = vcombine.low %v7880_v56, %v7879_v0  ;;  %v3083_v62 = vrot.slane %v3075_v61, %v5258_v35  ;;  %v7090_v47 = vrot.slane %v3792_v53, %v5258_v35  ;;  %v7881_v15 = vld [vmem:[#allocation35_spill] sm:$0xff] }
 0x4e8   : > { %v7092_v21 = vpack.i.bf16 %v2856_v36, %v2720_v9  ;;  %v3469_v33 = vcombine.low %v6839_v59, %v6768_v58  ;;  %v3090_v8 = vrot.slane %v3076_v38, %v5258_v35  ;;  %v7099_v29 = vpack.i.bf16 %v3125_v37, %v2989_v7 }
 0x4e9   : > { %v2721_v30 = vcombine.low %v7881_v15, %v6749_v50  ;;  %v2857_v61 = vcombine.low %v6886_v45, %v7882_v6  ;;  %v2990_v13 = vcombine.high %v6990_v34, %v6684_v18  ;;  %v3126_v38 = vcombine.high %v3074_v49, %v7878_v32  ;;  %v7883_v32 = vld [vmem:[#allocation64_spill] sm:$0xff] }
 0x4ea   : > { %3884 = vrot.lane.b32.xlu1 %v7073_v40, %s4871_s29  ;;  %4064 = vrot.lane.b32.xlu0 %v7090_v47, %s4872_s30  ;;  %v7107_v2 = vpack.i.bf16 %v3469_v33, %v3333_v19  ;;  %v3334_v53 = vcombine.high %v7880_v56, %v7879_v0  ;;  %v7115_v9 = vrot.slane %v3180_v17, %v5258_v35 }
 0x4eb   : > { %v7117_v36 = vpack.i.bf16 %v2857_v61, %v2721_v30  ;;  %v3470_v7 = vcombine.high %v6839_v59, %v6768_v58  ;;  %v3603_v37 = vcombine.low %v7036_v14, %v6919_v43  ;;  %v7123_v19 = vpack.i.bf16 %v3126_v38, %v2990_v13 }
 0x4ec   : > { %v3739_v18 = vcombine.low %v6959_v52, %v6977_v3  ;;  %v2722_v34 = vcombine.high %v7881_v15, %v6749_v50  ;;  %v2858_v17 = vcombine.high %v6886_v45, %v7882_v6  ;;  %v3604_v58 = vcombine.high %v7036_v14, %v6919_v43  ;;  %v7884_v45 = vld [vmem:[#allocation33_spill] sm:$0xff]  ;;  %v7885_v14 = vld [vmem:[#allocation44_spill] sm:$0xff] }
 0x4ed   : > { %v7133_v49 = vpack.i.bf16 %v3470_v7, %v3334_v53  ;;  %v3740_v59 = vcombine.high %v6959_v52, %v6977_v3  ;;  %v2991_v0 = vcombine.low %v7004_v12, %v7883_v32  ;;  %v3127_v33 = vcombine.low %v3083_v62, %v7884_v45  ;;  %v7886_v6 = vld [vmem:[#allocation57_spill] sm:$0xff]  ;;  %v7889_v53 = vld [vmem:[#allocation58_spill] sm:$0xff] }
 0x4ee   : > { %3924 = vrot.lane.b32.xlu1 %v7115_v9, %s4872_s30  ;;  %4717 = vrot.lane.b32.xlu0 %v6900_v4, %s4873_s6  ;;  %v4816_v50 = vpack.i.bf16 %v3739_v18, %v3603_v37  ;;  %v4811_v56 = vpack.i.bf16 %v2858_v17, %v2722_v34  ;;  %v3605_v15 = vcombine.low %v7043_v11, %v6925_v63  ;;  %v7890_v37 = vld [vmem:[#allocation31_spill] sm:$0xff] }
 0x4ef   : > { %v4826_v30 = vpack.i.bf16 %v3740_v59, %v3604_v58  ;;  %v3741_v43 = vcombine.low %v6965_v1, %v6985_v44  ;;  %v2992_v3 = vcombine.high %v7004_v12, %v7883_v32  ;;  %v3128_v52 = vcombine.high %v3083_v62, %v7884_v45 }
 0x4f0   : > { %v7887_v61 = vcombine.low %v7885_v14, %v7886_v6  ;;  %v7888_v4 = vcombine.low %v6821_v31, %v6762_v55  ;;  %v4821_v38 = vpack.i.bf16 %v3127_v33, %v2991_v0  ;;  %v2993_v7 = vcombine.low %v7033_v41, %v7889_v53 }
 0x4f1   : > { %v3129_v18 = vcombine.low %v3090_v8, %v7890_v37  ;;  %v4836_v34 = vpack.i.bf16 %v3741_v43, %v3605_v15  ;;  %v4831_v12 = vpack.i.bf16 %v3128_v52, %v2992_v3  ;;  %v3606_v62 = vcombine.high %v7043_v11, %v6925_v63  ;;  %v7894_v3 = vld [vmem:[#allocation55_spill] sm:$0xff]  ;;  %v7895_v52 = vld [vmem:[#allocation16_spill] sm:$0xff] }
 0x4f2   : > { %v4726_v13 = vpack.i.bf16 %v7888_v4, %v7887_v61  ;;  %4722 = vrot.lane.b32.xlu1 %v6953_v46, %s4873_s6  ;;  %v3742_v17 = vcombine.high %v6965_v1, %v6985_v44  ;;  %v3330_v58 = vcombine.high %v7885_v14, %v7886_v6  ;;  %v2994_v32 = vcombine.high %v7033_v41, %v7889_v53  ;;  %v7898_v14 = vld [vmem:[#allocation47_spill] sm:$0xff]  ;;  %v7899_v6 = vld [vmem:[#allocation50_spill] sm:$0xff]  ;;  %v7903_v53 = vld [vmem:[#allocation48_spill] sm:$0xff] }
 0x4f3   : > { %v4841_v59 = vpack.i.bf16 %v3129_v18, %v2993_v7  ;;  %v3130_v0 = vcombine.high %v3090_v8, %v7890_v37  ;;  %v7891_v46 = vcombine.low %v6505_v20, %v6725_v51  ;;  %v7892_v63 = vcombine.low %v6848_v10, %v6548_v60  ;;  %v7900_v4 = vld [vmem:[#allocation46_spill] sm:$0xff]  ;;  %v7904_v7 = vld [vmem:[#allocation37_spill] sm:$0xff] }
 0x4f4   : > { %4727 = vrot.lane.b32.xlu0 %v4726_v13, %s4870_s28  ;;  %v2854_v44 = vcombine.high %v6848_v10, %v6548_v60  ;;  %v4846_v1 = vpack.i.bf16 %v3742_v17, %v3606_v62  ;;  %v7893_v45 = vcombine.high %v6821_v31, %v6762_v55  ;;  %v2718_v41 = vcombine.high %v6505_v20, %v6725_v51  ;;  %v7896_v10 = vld [vmem:[#allocation45_spill] sm:$0xff]  ;;  %v7897_v55 = vld [vmem:[#allocation14_spill] sm:$0xff]  ;;  %v7901_v13 = vld [vmem:[#allocation15_spill] sm:$0xff] }
 0x4f5   : > { %v4731_v11 = vpack.i.bf16 %v7892_v63, %v7891_v46  ;;  %v4851_v15 = vpack.i.bf16 %v3130_v0, %v2994_v32  ;;  %v3536_v43 = vcombine.high %v6889_v25, %v6878_v39  ;;  %v3600_v60 = vcombine.high %v7895_v52, %v7894_v3  ;;  %v7902_v51 = vld [vmem:[#allocation13_spill] sm:$0xff] }
 0x4f6   : > { %v4736_v33 = vpack.i.bf16 %v7893_v45, %v3330_v58  ;;  %v4741_v8 = vpack.i.bf16 %v2854_v44, %v2718_v41  ;;  %v3568_v31 = vcombine.high %v7897_v55, %v7896_v10  ;;  %v3672_v61 = vcombine.high %v7899_v6, %v7898_v14  ;;  %v7919_v55 = vld [vmem:[#allocation4_spill] sm:$0xff] }
 0x4f7   : > { %4732 = vrot.lane.b32.xlu1 %v4731_v11, %s4870_s28  ;;  %v3704_v20 = vcombine.high %v7901_v13, %v7900_v4  ;;  %v3736_v39 = vcombine.high %v7904_v7, %v7903_v53  ;;  %v3550_v25 = vrot.slane %v3536_v43, %v5258_v35  ;;  %v7917_v43 = vld [vmem:[#allocation10_spill] sm:$0xff] }
 0x4f8   : > { %4737 = vrot.lane.b32.xlu0 %v4736_v33, %s4874_s7  ;;  %v3582_v18 = vrot.slane %v3568_v31, %v5258_v35  ;;  %v3686_v62 = vrot.slane %v3672_v61, %v5258_v35  ;;  %v7920_v31 = vld [vmem:[#allocation8_spill] sm:$0xff] }
 0x4f9   : > { %v4756_v37 = vpack.i.bf16 %v3736_v39, %v3600_v60  ;;  %v3718_v17 = vrot.slane %v3704_v20, %v5258_v35  ;;  %v7921_v14 = vcombine.low %v7919_v55, %v7920_v31 }
 0x4fa   : > { %v3601_v58 = vcombine.low %v3550_v25, %v3582_v18 }
 0x4fb   : > { %4742 = vrot.lane.b32.xlu1 %v4741_v8, %s4874_s7  ;;  %v3737_v32 = vcombine.low %v3686_v62, %v3718_v17  ;;  %v3738_v46 = vcombine.high %v3686_v62, %v3718_v17  ;;  %v7916_v8 = vld [vmem:[#allocation6_spill] sm:$0xff]  ;;  %v4372_v6 = vrot.slane %v7921_v14, %v5258_v35 }
 0x4fc   : > { %4747 = vrot.lane.b32.xlu0 %v7902_v51, %s4871_s29  ;;  %v7918_v60 = vcombine.low %v7916_v8, %v7917_v43  ;;  %v7922_v13 = vcombine.high %v7916_v8, %v7917_v43  ;;  %v7923_v51 = vcombine.high %v7919_v55, %v7920_v31  ;;  %v7930_v55 = vld [vmem:[#allocation51_spill] sm:$0xff]  ;;  %v7931_v31 = vld [vmem:[#allocation22_spill] sm:$0xff] }
 0x4fd   : > { %v4776_v0 = vpack.i.bf16 %v3737_v32, %v3601_v58  ;;  %v7932_v14 = vcombine.low %v7930_v55, %v7931_v31 }
 0x4fe   : > { %v4304_v10 = vrot.slane %v7918_v60, %v5258_v35  ;;  %v4311_v20 = vrot.slane %v7922_v13, %v5258_v35  ;;  %v4379_v39 = vrot.slane %v7923_v51, %v5258_v35 }
 0x4ff   : > { %4752 = vrot.lane.b32.xlu1 %v7064_v27, %s4871_s29  ;;  %v3602_v27 = vcombine.high %v3550_v25, %v3582_v18 }
 0x500   : > { %4757 = vrot.lane.b32.xlu0 %v4756_v37, %s4873_s6 }
 0x501   : > { %v4796_v63 = vpack.i.bf16 %v3738_v46, %v3602_v27 }
 0x503   : > { %4762 = vrot.lane.b32.xlu1 %v7081_v16, %s4875_s8 }
 0x504   : > { %4767 = vrot.lane.b32.xlu0 %v7075_v24, %s4873_s6  ;;  %v3775_v24 = vcombine.low %v7000_v48, %v6996_v28 }
 0x506   : > { %v7234_v16 = vrot.slane %v3775_v24, %v5258_v35 }
 0x507   : > { %4772 = vrot.lane.b32.xlu1 %v7092_v21, %s4875_s8  ;;  %v7905_v21 = vcombine.low %v7019_v23, %v7022_v5 }
 0x508   : > { %4777 = vrot.lane.b32.xlu0 %v4776_v0, %s4870_s28 }
 0x50b   : > { %4782 = vrot.lane.b32.xlu1 %v7107_v2, %s4872_s30  ;;  %v7906_v2 = vmov 0.0  }
 0x50c   : > { %4787 = vrot.lane.b32.xlu0 %v7099_v29, %s4870_s28  ;;  %v7242_v29 = vrot.slane %v7905_v21, %v5258_v35  ;;  %v3807_v28 = vcombine.high %v7234_v16, %v7906_v2  ;;  %v3196_v23 = vcombine.high %v7049_v22, %v7906_v2  ;;  %v3809_v5 = vcombine.high %v7058_v54, %v7906_v2  ;;  %v4162_v54 = vld [vmem:[%s7505_s4] sm:$0xf] }
 0x50d   : > { %v3198_v22 = vcombine.high %v7115_v9, %v7906_v2  ;;  %v4314_v61 = vcombine.high %v4304_v10, %v7906_v2  ;;  %v4382_v4 = vcombine.high %v4372_v6, %v7906_v2  ;;  %v4315_v25 = vcombine.high %v4311_v20, %v7906_v2 }
 0x50e   : > { %v3195_v48 = vcombine.high %v7242_v29, %v7906_v2  ;;  %v4383_v37 = vcombine.high %v4379_v39, %v7906_v2 }
 0x50f   : > { %4792 = vrot.lane.b32.xlu1 %v7117_v36, %s4872_s30  ;;  %v7907_v36 = vld [vmem:[#allocation49_spill] sm:$0xff] }
 0x510   : > { %4797 = vrot.lane.b32.xlu0 %v4796_v63, %s4874_s7 }
 0x513   : > { %4802 = vrot.lane.b32.xlu1 %v7133_v49, %s4876_s9  ;;  %v3197_v49 = vcombine.high %v7073_v40, %v7906_v2 }
 0x514   : > { %4807 = vrot.lane.b32.xlu0 %v7123_v19, %s4874_s7  ;;  %v3808_v19 = vcombine.high %v7907_v36, %v7906_v2 }
 0x517   : > { %4812 = vrot.lane.b32.xlu1 %v4811_v56, %s4876_s9  ;;  %v7908_v56 = vld [vmem:[#allocation3_spill] sm:$0xff] }
 0x518   : > { %4817 = vrot.lane.b32.xlu0 %v4816_v50, %s4871_s29  ;;  %v3810_v50 = vcombine.high %v7090_v47, %v7906_v2  ;;  %v7911_v47 = vld [vmem:[#allocation5_spill] sm:$0xff] }
 0x51b   : > { %4822 = vrot.lane.b32.xlu1 %v4821_v38, %s4871_s29 }
 0x51c   : > { %4827 = vrot.lane.b32.xlu0 %v4826_v30, %s4875_s8  ;;  %v7909_v30 = vld [vmem:[#allocation7_spill] sm:$0xff] }
 0x51d   : > { %v7910_v40 = vcombine.low %v7908_v56, %v7909_v30  ;;  %v7915_v45 = vcombine.high %v7908_v56, %v7909_v30 }
 0x51f   : > { %4832 = vrot.lane.b32.xlu1 %v4831_v12, %s4875_s8  ;;  %v7278_v38 = vrot.slane %v7910_v40, %v5258_v35  ;;  %v4363_v33 = vrot.slane %v7915_v45, %v5258_v35 }
 0x520   : > { %4837 = vrot.lane.b32.xlu0 %v4836_v34, %s4872_s30  ;;  %v7912_v34 = vld [vmem:[#allocation9_spill] sm:$0xff] }
 0x521   : > { %v7913_v12 = vcombine.low %v7911_v47, %v7912_v34  ;;  %v4380_v9 = vcombine.high %v7278_v38, %v7906_v2  ;;  %v7914_v44 = vcombine.high %v7911_v47, %v7912_v34  ;;  %v4381_v41 = vcombine.high %v4363_v33, %v7906_v2 }
 0x523   : > { %4842 = vrot.lane.b32.xlu1 %v4841_v59, %s4872_s30  ;;  %v7284_v59 = vrot.slane %v7913_v12, %v5258_v35 }
 0x524   : > { %3964 = vrot.lane.b32.xlu0 %v3807_v28, %s4873_s6 }
 0x525   : > { %v4312_v11 = vcombine.high %v7284_v59, %v7906_v2 }
 0x527   : > { %4847 = vrot.lane.b32.xlu1 %v4846_v1, %s4876_s9  ;;  %v4295_v1 = vrot.slane %v7914_v44, %v5258_v35  ;;  %v7924_v44 = vld [vmem:[#allocation56_spill] sm:$0xff] }
 0x528   : > { %3824 = vrot.lane.b32.xlu0 %v3195_v48, %s4873_s6 }
 0x52b   : > { %4852 = vrot.lane.b32.xlu1 %v4851_v15, %s4876_s9  ;;  %v4313_v15 = vcombine.high %v4295_v1, %v7906_v2 }
 0x52c   : > { %4004 = vrot.lane.b32.xlu0 %v3808_v19, %s4874_s7 }
 0x52f   : > { %3864 = vrot.lane.b32.xlu1 %v3196_v23, %s4874_s7 }
 0x530   : > { %4044 = vrot.lane.b32.xlu0 %v3809_v5, %s4875_s8 }
 0x533   : > { %3904 = vrot.lane.b32.xlu1 %v3197_v49, %s4875_s8 }
 0x534   : > { %4084 = vrot.lane.b32.xlu0 %v3810_v50, %s4876_s9 }
 0x537   : > { %3944 = vrot.lane.b32.xlu1 %v3198_v22, %s4876_s9 }
 0x538   : > { %4165 = vperm.xlu0 %4715, %v4162_v54  }
 0x53b   : > { %4385 = vrot.lane.b32.xlu1 %v4312_v11, %s4873_s6 }
 0x53c   : > { %4413 = vrot.lane.b32.xlu0 %v4380_v9, %s4873_s6 }
 0x53f   : > { %4389 = vrot.lane.b32.xlu1 %v4295_v1, %s4870_s28  ;;  %v7925_v1 = vld [vmem:[#allocation53_spill] sm:$0xff] }
 0x540   : > { %4417 = vrot.lane.b32.xlu0 %v4363_v33, %s4870_s28  ;;  %v7926_v45 = vcombine.low %v7924_v44, %v7925_v1 }
 0x543   : > { %4393 = vrot.lane.b32.xlu1 %v4313_v15, %s4874_s7  ;;  %v7927_v15 = vld [vmem:[#allocation36_spill] sm:$0xff] }
 0x544   : > { %4421 = vrot.lane.b32.xlu0 %v4381_v41, %s4874_s7  ;;  %v7928_v41 = vld [vmem:[#allocation38_spill] sm:$0xff] }
 0x545   : > { %v7929_v8 = vcombine.low %v7927_v15, %v7928_v41 }
 0x547   : > { %4397 = vrot.lane.b32.xlu1 %v4304_v10, %s4871_s29 }
 0x548   : > { %4425 = vrot.lane.b32.xlu0 %v4372_v6, %s4871_s29 }
 0x54b   : > { %4401 = vrot.lane.b32.xlu1 %v4314_v61, %s4875_s8  ;;  %v7933_v61 = vld [vmem:[#allocation29_spill] sm:$0xff] }
 0x54c   : > { %4429 = vrot.lane.b32.xlu0 %v4382_v4, %s4875_s8  ;;  %v7934_v4 = vld [vmem:[#allocation39_spill] sm:$0xff] }
 0x54d   : > { %v7935_v13 = vcombine.low %v7933_v61, %v7934_v4 }
 0x54f   : > { %4405 = vrot.lane.b32.xlu1 %v4311_v20, %s4872_s30 }
 0x550   : > { %4433 = vrot.lane.b32.xlu0 %v4379_v39, %s4872_s30 }
 0x553   : > { %4409 = vrot.lane.b32.xlu1 %v4315_v25, %s4876_s9 }
 0x554   : > { %4437 = vrot.lane.b32.xlu0 %v4383_v37, %s4876_s9  ;;  %v7334_v18 = vpop.permute.xlu0 %3984 }
 0x558   : > { %v7336_v62 = vpop.permute.xlu1 %3844  ;;  %v7338_v17 = vpop.permute.xlu0 %4024 }
 0x55c   : > { %v7340_v58 = vpop.permute.xlu1 %3884  ;;  %v7342_v35 = vpop.permute.xlu0 %4064 }
 0x560   : > { %v7344_v32 = vpop.permute.xlu1 %3924  ;;  %v4718_v0 = vpop.permute.xlu0 %4717 }
 0x561   : > { %v4720_v49 = vunpack.i.h.bf16 %v4718_v0  ;;  %v4719_v50 = vunpack.i.l.bf16 %v4718_v0 }
 0x563   : > { %v4127_v33 = vsel %vm2007_vm6, %v7926_v45, %v4720_v49  ;;  %v4126_v43 = vsel %vm2007_vm6, %v7929_v8, %v4719_v50 }
 0x564   : > { %v4723_v27 = vpop.permute.xlu1 %4722 }
 0x565   : > { %v4725_v22 = vunpack.i.h.bf16 %v4723_v27  ;;  %v4724_v54 = vunpack.i.l.bf16 %v4723_v27 }
 0x566   : > { %v4728_v46 = vpop.permute.xlu0 %4727 }
 0x567   : > { %v4730_v30 = vunpack.i.h.bf16 %v4728_v46  ;;  %v4729_v40 = vunpack.i.l.bf16 %v4728_v46  ;;  %v4092_v6 = vsel %vm2007_vm6, %v7932_v14, %v4725_v22  ;;  %v4091_v20 = vsel %vm2007_vm6, %v7935_v13, %v4724_v54 }
 0x569   : > { %v4733_v63 = vpop.permute.xlu1 %4732  ;;  %v4131_v37 = vsel %vm2013_vm7, %v4126_v43, %v4729_v40  ;;  %v4132_v0 = vsel %vm2013_vm7, %v4127_v33, %v4730_v30 }
 0x56a   : > { %v4738_v24 = vpop.permute.xlu0 %4737  ;;  %v4735_v47 = vunpack.i.h.bf16 %v4733_v63  ;;  %v4734_v34 = vunpack.i.l.bf16 %v4733_v63 }
 0x56b   : > { %v4740_v9 = vunpack.i.h.bf16 %v4738_v24  ;;  %v4739_v11 = vunpack.i.l.bf16 %v4738_v24 }
 0x56c   : > { %v4096_v27 = vsel %vm2013_vm7, %v4091_v20, %v4734_v34  ;;  %v4097_v46 = vsel %vm2013_vm7, %v4092_v6, %v4735_v47 }
 0x56d   : > { %v4743_v21 = vpop.permute.xlu1 %4742  ;;  %v4136_v24 = vsel %vm2019_vm8, %v4131_v37, %v4739_v11 }
 0x56e   : > { %v4748_v2 = vpop.permute.xlu0 %4747  ;;  %v4745_v54 = vunpack.i.h.bf16 %v4743_v21  ;;  %v4744_v40 = vunpack.i.l.bf16 %v4743_v21 }
 0x56f   : > { %v4750_v60 = vunpack.i.h.bf16 %v4748_v2  ;;  %v4749_v10 = vunpack.i.l.bf16 %v4748_v2  ;;  %v4137_v2 = vsel %vm2019_vm8, %v4132_v0, %v4740_v9 }
 0x570   : > { %v4101_v21 = vsel %vm2019_vm8, %v4096_v27, %v4744_v40  ;;  %v7936_v40 = vcombine.low %v7904_v7, %v7903_v53  ;;  %v7938_v53 = vcombine.low %v7007_v26, %v6574_v42 }
 0x571   : > { %v4753_v28 = vpop.permute.xlu1 %4752  ;;  %v4141_v22 = vsel %vm2025_vm9, %v4136_v24, %v4749_v10 }
 0x572   : > { %v7346_v48 = vpop.permute.xlu0 %4757  ;;  %v4755_v44 = vunpack.i.h.bf16 %v4753_v28  ;;  %v4754_v30 = vunpack.i.l.bf16 %v4753_v28  ;;  %v4102_v28 = vsel %vm2019_vm8, %v4097_v46, %v4745_v54 }
 0x573   : > { %v4760_v46 = vunpack.i.h.bf16 %v7346_v48 }
 0x574   : > { %v4107_v55 = vsel %vm2025_vm9, %v4102_v28, %v4755_v44 }
 0x575   : > { %v4763_v36 = vpop.permute.xlu1 %4762  ;;  %v4129_v44 = vsel %vm2007_vm6, %v7936_v40, %v4760_v46 }
 0x576   : > { %v7348_v19 = vpop.permute.xlu0 %4767  ;;  %v4765_v51 = vunpack.i.h.bf16 %v4763_v36  ;;  %v4764_v39 = vunpack.i.l.bf16 %v4763_v36  ;;  %v4142_v36 = vsel %vm2025_vm9, %v4137_v2, %v4750_v60  ;;  %v4759_v2 = vunpack.i.l.bf16 %v7346_v48 }
 0x578   : > { %v4146_v34 = vsel %vm2031_vm10, %v4141_v22, %v4764_v39  ;;  %v4147_v47 = vsel %vm2031_vm10, %v4142_v36, %v4765_v51 }
 0x579   : > { %v4773_v23 = vpop.permute.xlu1 %4772 }
 0x57a   : > { %v7350_v5 = vpop.permute.xlu0 %4777  ;;  %v4775_v45 = vunpack.i.h.bf16 %v4773_v23  ;;  %v4774_v33 = vunpack.i.l.bf16 %v4773_v23  ;;  %v4106_v23 = vsel %vm2025_vm9, %v4101_v21, %v4754_v30 }
 0x57b   : > { %v4780_v22 = vunpack.i.h.bf16 %v7350_v5  ;;  %v4779_v36 = vunpack.i.l.bf16 %v7350_v5 }
 0x57c   : > { %v4111_v6 = vsel %vm2031_vm10, %v4106_v23, %v4774_v33  ;;  %v4112_v61 = vsel %vm2031_vm10, %v4107_v55, %v4775_v45  ;;  %v7939_v33 = vld [vmem:[#allocation65_spill] sm:$0xff] }
 0x57d   : > { %v4783_v56 = vpop.permute.xlu1 %4782 }
 0x57e   : > { %v7352_v12 = vpop.permute.xlu0 %4787  ;;  %v4785_v49 = vunpack.i.h.bf16 %v4783_v56  ;;  %v4784_v50 = vunpack.i.l.bf16 %v4783_v56 }
 0x57f   : > { %v4790_v30 = vunpack.i.h.bf16 %v7352_v12 }
 0x580   : > { %v4151_v8 = vsel %vm2037_vm11, %v4146_v34, %v4784_v50  ;;  %v4152_v43 = vsel %vm2037_vm11, %v4147_v47, %v4785_v49  ;;  %v4770_v49 = vunpack.i.h.bf16 %v7348_v19  ;;  %v4769_v50 = vunpack.i.l.bf16 %v7348_v19 }
 0x581   : > { %v4793_v25 = vpop.permute.xlu1 %4792  ;;  %v7937_v34 = vcombine.low %v7895_v52, %v7894_v3 }
 0x582   : > { %v7374_v63 = vpop.permute.xlu0 %4797  ;;  %v4795_v56 = vunpack.i.h.bf16 %v4793_v25  ;;  %v4794_v41 = vunpack.i.l.bf16 %v4793_v25  ;;  %v4094_v7 = vsel %vm2007_vm6, %v7938_v53, %v4770_v49 }
 0x583   : > { %v4128_v19 = vsel %vm2007_vm6, %v7937_v34, %v4759_v2  ;;  %v4800_v47 = vunpack.i.h.bf16 %v7374_v63  ;;  %v4799_v5 = vunpack.i.l.bf16 %v7374_v63  ;;  %v4099_v42 = vsel %vm2013_vm7, %v4094_v7, %v4790_v30 }
 0x584   : > { %v4116_v51 = vsel %vm2037_vm11, %v4111_v6, %v4794_v41  ;;  %v4117_v39 = vsel %vm2037_vm11, %v4112_v61, %v4795_v56  ;;  %v4134_v56 = vsel %vm2013_vm7, %v4129_v44, %v4780_v22 }
 0x585   : > { %v4803_v1 = vpop.permute.xlu1 %4802 }
 0x586   : > { %v7382_v11 = vpop.permute.xlu0 %4807  ;;  %v4805_v9 = vunpack.i.h.bf16 %v4803_v1  ;;  %v4804_v15 = vunpack.i.l.bf16 %v4803_v1  ;;  %v4789_v1 = vunpack.i.l.bf16 %v7352_v12  ;;  %v7940_v12 = vcombine.low %v6928_v57, %v7939_v33 }
 0x587   : > { %v4809_v45 = vunpack.i.l.bf16 %v7382_v11  ;;  %v4810_v3 = vunpack.i.h.bf16 %v7382_v11 }
 0x588   : > { %v4156_v60 = vsel %vm2043_vm12, %v4151_v8, %v4804_v15  ;;  %v4157_v10 = vsel %vm2043_vm12, %v4152_v43, %v4805_v9  ;;  %v4093_v9 = vsel %vm2007_vm6, %v7940_v12, %v4769_v50  ;;  %v4133_v15 = vsel %vm2013_vm7, %v4128_v19, %v4779_v36 }
 0x589   : > { %v4813_v31 = vpop.permute.xlu1 %4812  ;;  %v4545_v14 = vpack.c.bf16 %v4157_v10, %v4156_v60  ;;  %v4098_v43 = vsel %vm2013_vm7, %v4093_v9, %v4789_v1  ;;  %v4138_v57 = vsel %vm2019_vm8, %v4133_v15, %v4799_v5  ;;  %v4139_v60 = vsel %vm2019_vm8, %v4134_v56, %v4800_v47 }
 0x58a   : > { %v4818_v4 = vpop.permute.xlu0 %4817  ;;  %v4815_v13 = vunpack.i.h.bf16 %v4813_v31  ;;  %v4814_v20 = vunpack.i.l.bf16 %v4813_v31  ;;  %v4103_v11 = vsel %vm2019_vm8, %v4098_v43, %v4809_v45  ;;  %v4104_v23 = vsel %vm2019_vm8, %v4099_v42, %v4810_v3  ;;  %v4161_v42 = vld [vmem:[%s7504_s3] sm:$0xf] }
 0x58b   : > { %4546 = vmatprep.subr.bf16.mxu1 %v4545_v14  ;;  %v4819_v52 = vunpack.i.l.bf16 %v4818_v4  ;;  %v4820_v63 = vunpack.i.h.bf16 %v4818_v4 }
 0x58c   : > { %v4121_v25 = vsel %vm2043_vm12, %v4116_v51, %v4814_v20  ;;  %v4122_v37 = vsel %vm2043_vm12, %v4117_v39, %v4815_v13 }
 0x58d   : > { %v4823_v0 = vpop.permute.xlu1 %4822  ;;  %v4547_v27 = vpack.c.bf16 %v4122_v37, %v4121_v25  ;;  %v4143_v55 = vsel %vm2025_vm9, %v4138_v57, %v4819_v52  ;;  %v4144_v6 = vsel %vm2025_vm9, %v4139_v60, %v4820_v63 }
 0x58e   : > { %v4828_v24 = vpop.permute.xlu0 %4827  ;;  %v4825_v31 = vunpack.i.h.bf16 %v4823_v0  ;;  %v4824_v14 = vunpack.i.l.bf16 %v4823_v0 }
 0x58f   : > { %4548 = vmatpush1.bf16.msra.mxu1 %v4547_v27  ;;  %v4829_v41 = vunpack.i.l.bf16 %v4828_v24  ;;  %v4830_v26 = vunpack.i.h.bf16 %v4828_v24 }
 0x590   : > { %v4109_v49 = vsel %vm2025_vm9, %v4104_v23, %v4825_v31  ;;  %v4108_v50 = vsel %vm2025_vm9, %v4103_v11, %v4824_v14 }
 0x591   : > { %v4833_v54 = vpop.permute.xlu1 %4832  ;;  %v4148_v61 = vsel %vm2031_vm10, %v4143_v55, %v4829_v41  ;;  %v4149_v51 = vsel %vm2031_vm10, %v4144_v6, %v4830_v26 }
 0x592   : > { %v4838_v48 = vpop.permute.xlu0 %4837  ;;  %v4835_v4 = vunpack.i.h.bf16 %v4833_v54  ;;  %v4834_v13 = vunpack.i.l.bf16 %v4833_v54 }
 0x593   : > { %v4839_v21 = vunpack.i.l.bf16 %v4838_v48  ;;  %v4840_v10 = vunpack.i.h.bf16 %v4838_v48 }
 0x594   : > { %v4113_v54 = vsel %vm2031_vm10, %v4108_v50, %v4834_v13  ;;  %v4114_v40 = vsel %vm2031_vm10, %v4109_v49, %v4835_v4 }
 0x595   : > { %v4843_v8 = vpop.permute.xlu1 %4842  ;;  %v4153_v39 = vsel %vm2037_vm11, %v4148_v61, %v4839_v21  ;;  %v4154_v46 = vsel %vm2037_vm11, %v4149_v51, %v4840_v10 }
 0x596   : > { %v3965_v28 = vpop.permute.xlu0 %3964  ;;  %v4845_v0 = vunpack.i.h.bf16 %v4843_v8  ;;  %v4844_v2 = vunpack.i.l.bf16 %v4843_v8 }
 0x597   : > { %v4130_v24 = vsel %vm2007_vm6, %v7234_v16, %v3965_v28 }
 0x598   : > { %v4135_v34 = vsel %vm2013_vm7, %v4130_v24, %v7334_v18  ;;  %v4118_v47 = vsel %vm2037_vm11, %v4113_v54, %v4844_v2  ;;  %v4119_v5 = vsel %vm2037_vm11, %v4114_v40, %v4845_v0 }
 0x599   : > { %v4848_v20 = vpop.permute.xlu1 %4847 }
 0x59a   : > { %v4850_v25 = vunpack.i.h.bf16 %v4848_v20  ;;  %v4849_v37 = vunpack.i.l.bf16 %v4848_v20  ;;  %v3825_v27 = vpop.permute.xlu0 %3824 }
 0x59b   : > { %v4095_v1 = vsel %vm2007_vm6, %v7242_v29, %v3825_v27 }
 0x59c   : > { %v4158_v22 = vsel %vm2043_vm12, %v4153_v39, %v4849_v37  ;;  %v4159_v36 = vsel %vm2043_vm12, %v4154_v46, %v4850_v25  ;;  %v4100_v29 = vsel %vm2013_vm7, %v4095_v1, %v7336_v62 }
 0x59d   : > { %v4853_v44 = vpop.permute.xlu1 %4852  ;;  %v4549_v30 = vpack.c.bf16 %v4159_v36, %v4158_v22 }
 0x59e   : > { %v4855_v16 = vunpack.i.h.bf16 %v4853_v44  ;;  %v4854_v48 = vunpack.i.l.bf16 %v4853_v44  ;;  %v4005_v19 = vpop.permute.xlu0 %4004 }
 0x59f   : > { %v4140_v45 = vsel %vm2019_vm8, %v4135_v34, %v4005_v19  ;;  %4550 = vmatprep.subr.bf16.mxu1 %v4549_v30 }
 0x5a0   : > { %v4123_v53 = vsel %vm2043_vm12, %v4118_v47, %v4854_v48  ;;  %v4124_v7 = vsel %vm2043_vm12, %v4119_v5, %v4855_v16  ;;  %v4145_v18 = vsel %vm2025_vm9, %v4140_v45, %v7338_v17 }
 0x5a1   : > { %v3865_v33 = vpop.permute.xlu1 %3864  ;;  %v4551_v12 = vpack.c.bf16 %v4124_v7, %v4123_v53 }
 0x5a2   : > { %v4105_v9 = vsel %vm2019_vm8, %v4100_v29, %v3865_v33  ;;  %v4045_v3 = vpop.permute.xlu0 %4044 }
 0x5a3   : > { %v4150_v52 = vsel %vm2031_vm10, %v4145_v18, %v4045_v3  ;;  %4552 = vmatpush1.bf16.msra.mxu1 %v4551_v12  ;;  %v4110_v56 = vsel %vm2025_vm9, %v4105_v9, %v7340_v58 }
 0x5a4   : > { %v4155_v41 = vsel %vm2037_vm11, %v4150_v52, %v7342_v35 }
 0x5a5   : > { %v3905_v15 = vpop.permute.xlu1 %3904 }
 0x5a6   : > { %v4115_v63 = vsel %vm2031_vm10, %v4110_v56, %v3905_v15  ;;  %v4085_v62 = vpop.permute.xlu0 %4084 }
 0x5a7   : > { %v4160_v8 = vsel %vm2043_vm12, %v4155_v41, %v4085_v62  ;;  %v4120_v17 = vsel %vm2037_vm11, %v4115_v63, %v7344_v32 }
 0x5a8   : > { %4530 = vmatprep.subr.msk.mxu1 %vm2095_vm13, %v4160_v8 }
 0x5a9   : > { %v3945_v43 = vpop.permute.xlu1 %3944 }
 0x5aa   : > { %v4125_v58 = vsel %vm2043_vm12, %v4120_v17, %v3945_v43 }
 0x5ab   : > { %4531 = vmatpush1.msk.msra.mxu1 %vm2095_vm13, %v4125_v58 }
 0x5ac   : > { %4532 = vmatmul.mubr.msk.f32.vlgmr.msra.gmra.mrb[0].mxu1 %vm2091_vm14, %v4161_v42 }
 0x5ad   : > { %v4386_v26 = vpop.permute.xlu1 %4385 }
 0x5ae   : > { %v4440_v32 = vsel %vm2007_vm6, %v7284_v59, %v4386_v26 }
 0x5b1   : > { %v4390_v28 = vpop.permute.xlu1 %4389 }
 0x5b2   : > { %v4441_v31 = vsel %vm2013_vm7, %v4440_v32, %v4390_v28 }
 0x5b5   : > { %v4394_v60 = vpop.permute.xlu1 %4393 }
 0x5b6   : > { %v4442_v4 = vsel %vm2019_vm8, %v4441_v31, %v4394_v60 }
 0x5b7   : > { %v4166_v35 = vpop.permute.xlu0 %4165 }
 0x5b9   : > { %v4398_v10 = vpop.permute.xlu1 %4397 }
 0x5ba   : > { %v4443_v20 = vsel %vm2025_vm9, %v4442_v4, %v4398_v10 }
 0x5bb   : > { %v4414_v21 = vpop.permute.xlu0 %4413 }
 0x5bc   : > { %v4447_v55 = vsel %vm2007_vm6, %v7278_v38, %v4414_v21 }
 0x5bd   : > { %v4402_v14 = vpop.permute.xlu1 %4401 }
 0x5be   : > { %v4444_v25 = vsel %vm2031_vm10, %v4443_v20, %v4402_v14 }
 0x5bf   : > { %v4418_v57 = vpop.permute.xlu0 %4417 }
 0x5c0   : > { %v4448_v6 = vsel %vm2013_vm7, %v4447_v55, %v4418_v57 }
 0x5c1   : > { %v4406_v51 = vpop.permute.xlu1 %4405 }
 0x5c2   : > { %v4445_v37 = vsel %vm2037_vm11, %v4444_v25, %v4406_v51 }
 0x5c3   : > { %v4422_v11 = vpop.permute.xlu0 %4421 }
 0x5c4   : > { %v4449_v13 = vsel %vm2019_vm8, %v4448_v6, %v4422_v11 }
 0x5c5   : > { %v4410_v27 = vpop.permute.xlu1 %4409 }
 0x5c6   : > { %v4446_v50 = vsel %vm2043_vm12, %v4445_v37, %v4410_v27 }
 0x5c7   : > { %v4426_v23 = vpop.permute.xlu0 %4425 }
 0x5c8   : > { %v4450_v39 = vsel %vm2025_vm9, %v4449_v13, %v4426_v23 }
 0x5cb   : > { %v4430_v61 = vpop.permute.xlu0 %4429 }
 0x5cc   : > { %v4451_v38 = vsel %vm2031_vm10, %v4450_v39, %v4430_v61 }
 0x5cf   : > { %v4434_v59 = vpop.permute.xlu0 %4433 }
 0x5d0   : > { %v4452_v46 = vsel %vm2037_vm11, %v4451_v38, %v4434_v59 }
 0x5d3   : > { %v4438_v24 = vpop.permute.xlu0 %4437 }
 0x5d4   : > { %v4453_v36 = vsel %vm2043_vm12, %v4452_v46, %v4438_v24 }
 0x67f   : > { %v4243_v0 = vpop.f32.mrb[0].mxu1 }
 0x680   : > { %v4244_v2 = vadd.f32 %v4243_v0, %v4166_v35  ;;  %v4245_v49 = vpop.f32.mrb[1].mxu1 }
 0x681   : > { %v4246_v22 = vadd.f32 %v4245_v49, %v4166_v35 }
 0x682   : > { %v4454_v54 = vadd.f32 %v4446_v50, %v4244_v2 }
 0x683   : > { %v4455_v40 = vadd.f32 %v4453_v36, %v4246_v22 }
 0x684   : > { %v4456_v44 = vmax.f32 %v4454_v54, 0.0 }
 0x685   : > { %v4457_v30 = vmax.f32 %v4455_v40, 0.0 }
 0x687   : > { %v4460_v1 = vcombine.low %v4456_v44, %v4457_v30 }
 0x689   : > { %4462 = vst [vmem:[%s224_s23] sm:$0xff] %v4460_v1 }
 0x68a PF: > { %s15_s18 = sadd.s32 1, %s4862_s18  }
 0x68b   : > { %p12_p4 = scmp.ge.s32.totalorder %s15_s18, 4  }
 0x68d   :  { %14 = sbr.rel (!%p12_p4) target bundleno = 1 (0x1), region = 70 }

</bundles_post_ra>
